<compile_context>
chip_gen: v7x
topology: tpu7x:2x2x1
jax: 0.10.0
libtpu: 0.0.40
codegen_flags: <defaults>
</compile_context>

<pallas_src>
import functools
import numpy as np

import jax
import jax.numpy as jnp
from jax.experimental import pallas as pl
from jax.experimental.pallas import tpu as pltpu

# ----------------------------------------------------------------------------
# Config (stand-in for the detectron2 cfg used by the module's __init__)
# ----------------------------------------------------------------------------
NUM_CONV = 2                      # cfg.MODEL.ROI_MASK_HEAD.RECON_NET.NUM_CONV
CONV_DIMS = 8                     # cfg.MODEL.ROI_MASK_HEAD.RECON_NET.CONV_DIM
NUM_CLASSES = 4                   # cfg.MODEL.ROI_HEADS.NUM_CLASSES
K_CODES = 16                      # K codebook entries per class (small synthetic K)
D_SPATIAL = {1: 14, 2: 7, 3: 4}[NUM_CONV]
EMB_DIM = CONV_DIMS * D_SPATIAL ** 2   # codebook embedding dim

CONV_DTYPE = jnp.bfloat16         # bf16 MXU path, f32 accumulation (review item 9)
_M_TILE = 512                     # lane-tile for large convs (review item 7)
_M_TILE_MIN = 1024                # below this, a single block is cheaper than a grid


# ----------------------------------------------------------------------------
# Static interpolation matrices (bilinear 2x, align_corners=True), numpy only.
# ----------------------------------------------------------------------------
def _bilinear_mat_np(hin, hout):
    a = np.zeros((hout, hin), dtype=np.float32)
    if hin == 1:
        a[:, 0] = 1.0
        return a
    scale = (hin - 1) / (hout - 1)
    for i in range(hout):
        src = i * scale
        lo = min(int(np.floor(src)), hin - 1)
        hi = min(lo + 1, hin - 1)
        frac = src - lo
        a[i, lo] += 1.0 - frac
        a[i, hi] += frac
    return a


def _upsample_kron_T_np(h, w):
    """Right-multiplication matrix (h*w, 4*h*w): flat(x) @ U^T == flat(upsample2x(x))."""
    u = np.kron(_bilinear_mat_np(h, 2 * h), _bilinear_mat_np(w, 2 * w))  # (4hw, hw)
    return np.ascontiguousarray(u.T).astype(np.float32)                  # (hw, 4hw)


def _blockdiag_np(mat, reps):
    r, c = mat.shape
    out = np.zeros((reps * r, reps * c), dtype=np.float32)
    for i in range(reps):
        out[i * r:(i + 1) * r, i * c:(i + 1) * c] = mat
    return out


# ----------------------------------------------------------------------------
# Pallas kernels
# ----------------------------------------------------------------------------
def _apply_act(y, act):
    if act == "relu":
        return jnp.maximum(y, 0.0)
    if act == "sigmoid":
        return jax.nn.sigmoid(y)
    return y


def _conv_kernel(act, p_ref, w_ref, b_ref, o_ref):
    """o(Cout, M) = act(W(Cout, Cin*9) @ patches(Cin*9, M) + b); lane-dense output."""
    y = jnp.dot(w_ref[...], p_ref[...], preferred_element_type=jnp.float32)
    o_ref[...] = _apply_act(y + b_ref[...], act)


def _conv_up_kernel(act, p_ref, w_ref, b_ref, u_ref, o_ref):
    """Conv + bias + act, then a fused 2x bilinear upsample epilogue.

    u_ref is block-diagonal over samples (per-sample kron(Ah, Aw)^T), so the
    epilogue is a plain matmul: no in-kernel reshape/relayout is needed.
    """
    y = jnp.dot(w_ref[...], p_ref[...], preferred_element_type=jnp.float32)
    y = _apply_act(y + b_ref[...], act)
    o_ref[...] = jnp.dot(y, u_ref[...], preferred_element_type=jnp.float32)


def _vq_up_kernel(c_ref, z_ref, code_ref, u_ref, zq_ref, zqu_ref):
    """Class-conditioned nearest-codebook VQ for one sample + fused 2x upsample.

    The (K, D) codebook slab of this sample's class was selected by the
    scalar-prefetch index_map, so no XLA gather of per-sample codebooks happens.
    Distance drops the constant ||z||^2 (argmin unchanged) and replicates
    torch.min's first-minimum tie rule (review correctness note #3).
    """
    del c_ref                                       # consumed by the index_maps
    z = z_ref[0]                                    # (1, D)
    code = code_ref[0]                              # (K, D)
    sq = jnp.sum(code * code, axis=1, keepdims=True)                  # (K, 1)
    dots = jnp.dot(code, z.T, preferred_element_type=jnp.float32)     # (K, 1)
    dist = sq - 2.0 * dots
    m = jnp.min(dist)
    row = jax.lax.broadcasted_iota(jnp.int32, dist.shape, 0)
    idx = jnp.min(jnp.where(dist == m, row, dist.shape[0]))           # first-min tie
    onehot = (row == idx).astype(jnp.float32)                         # (K, 1)
    zq = jnp.dot(onehot.T, code, preferred_element_type=jnp.float32)  # (1, D)
    zq_ref[0] = zq
    # fused decoder-side 2x bilinear upsample (block-diagonal over channels)
    zqu_ref[0] = jnp.dot(zq, u_ref[...], preferred_element_type=jnp.float32)


# ----------------------------------------------------------------------------
# Pallas wrappers
# ----------------------------------------------------------------------------
def conv_cm(x_cm, w, b, *, stride, pad, act, up_mat=None):
    """3x3 conv on channel-major activations (Cin, N, H, W) -> (Cout, N, Ho, Wo).

    Patch gathering (9 strided slices, no transposes) is XLA glue; the matmul,
    bias, activation and optional 2x-upsample epilogue run in one pallas_call
    with a lane-dense (Cout, N*Ho*Wo) output.
    """
    cin, n, h, wd = x_cm.shape
    cout = w.shape[0]
    ho = (h + 2 * pad - 3) // stride + 1
    wo = (wd + 2 * pad - 3) // stride + 1
    m = n * ho * wo

    xp = jnp.pad(x_cm, ((0, 0), (0, 0), (pad, pad), (pad, pad)))
    taps = []
    for i in range(3):
        for j in range(3):
            taps.append(xp[:, :, i:i + stride * ho:stride, j:j + stride * wo:stride])
    patches = jnp.stack(taps, axis=1).reshape(cin * 9, m).astype(CONV_DTYPE)
    wmat = w.reshape(cout, cin * 9).astype(CONV_DTYPE)
    bcol = b.reshape(cout, 1).astype(jnp.float32)

    if up_mat is not None:
        # single fused program: conv + bias + act + 2x bilinear upsample epilogue
        up_bd = jnp.asarray(_blockdiag_np(up_mat, n))          # (n*hw, n*4hw)
        out_up = pl.pallas_call(
            functools.partial(_conv_up_kernel, act),
            out_shape=jax.ShapeDtypeStruct((cout, n * 4 * ho * wo), jnp.float32),
        )(patches, wmat, bcol, up_bd)
        return out_up.reshape(cout, n, 2 * ho, 2 * wo)

    if m > _M_TILE_MIN:
        # tile the lane (M) axis; blocks are ~70 KiB so they fit v7x's 64 MiB VMEM
        # with large headroom, and the axis is "parallel" for v7x's 2 TensorCores.
        tm = _M_TILE
        mpad = ((m + tm - 1) // tm) * tm
        patches = jnp.pad(patches, ((0, 0), (0, mpad - m)))
        out = pl.pallas_call(
            functools.partial(_conv_kernel, act),
            grid=(mpad // tm,),
            in_specs=[
                pl.BlockSpec((cin * 9, tm), lambda mi: (0, mi)),
                pl.BlockSpec((cout, cin * 9), lambda mi: (0, 0)),
                pl.BlockSpec((cout, 1), lambda mi: (0, 0)),
            ],
            out_specs=pl.BlockSpec((cout, tm), lambda mi: (0, mi)),
            out_shape=jax.ShapeDtypeStruct((cout, mpad), jnp.float32),
            compiler_params=pltpu.CompilerParams(dimension_semantics=("parallel",)),
        )(patches, wmat, bcol)
        out = out[:, :m]
    else:
        out = pl.pallas_call(
            functools.partial(_conv_kernel, act),
            out_shape=jax.ShapeDtypeStruct((cout, m), jnp.float32),
        )(patches, wmat, bcol)
    return out.reshape(cout, n, ho, wo)


def vq_class_conditioned(z_e, emb_w, c):
    """Class-conditioned VQ with a fused first-decoder-upsample epilogue.

    z_e: (N, D) latents (per-sample (C,H,W) flatten); emb_w: (NUM_CLASSES*K, D);
    c: (N,) int32 class labels.  Returns (z_q (N, D), z_q_up (N, C*(2H)*(2W))).
    """
    n, d = z_e.shape
    codes = emb_w.reshape(NUM_CLASSES, K_CODES, d)
    # per-channel kron(Ah, Aw)^T, block-diagonal over channels -> (D, D_up)
    bd = jnp.asarray(
        _blockdiag_np(_upsample_kron_T_np(D_SPATIAL, D_SPATIAL), CONV_DIMS))
    d_up = bd.shape[1]

    grid_spec = pltpu.PrefetchScalarGridSpec(
        num_scalar_prefetch=1,                # class labels -> SMEM, drive index_maps
        grid=(n,),
        in_specs=[
            pl.BlockSpec((1, 1, d), lambda i, c_ref: (i, 0, 0)),
            pl.BlockSpec((1, K_CODES, d), lambda i, c_ref: (c_ref[i], 0, 0)),
            pl.BlockSpec((d, d_up), lambda i, c_ref: (0, 0)),
        ],
        out_specs=(
            pl.BlockSpec((1, 1, d), lambda i, c_ref: (i, 0, 0)),
            pl.BlockSpec((1, 1, d_up), lambda i, c_ref: (i, 0, 0)),
        ),
    )
    z_q, z_q_up = pl.pallas_call(
        _vq_up_kernel,
        grid_spec=grid_spec,
        out_shape=(jax.ShapeDtypeStruct((n, 1, d), jnp.float32),
                   jax.ShapeDtypeStruct((n, 1, d_up), jnp.float32)),
        compiler_params=pltpu.CompilerParams(dimension_semantics=("parallel",)),
    )(c.astype(jnp.int32), z_e.reshape(n, 1, d), codes, bd)
    return z_q.reshape(n, d), z_q_up.reshape(n, d_up)


# ----------------------------------------------------------------------------
# Parameters (deterministic synthetic init; shapes follow the module __init__)
# ----------------------------------------------------------------------------
def init_params(key):
    p = {}
    ks = iter(jax.random.split(key, 4 * NUM_CONV + 3))
    cin = 1
    for k in range(NUM_CONV):
        p[f"enc{k}_w"] = 0.1 * jax.random.normal(next(ks), (CONV_DIMS, cin, 3, 3), jnp.float32)
        p[f"enc{k}_b"] = 0.01 * jax.random.normal(next(ks), (CONV_DIMS,), jnp.float32)
        cin = CONV_DIMS
    for k in range(NUM_CONV):
        p[f"dec{k}_w"] = 0.1 * jax.random.normal(next(ks), (CONV_DIMS, CONV_DIMS, 3, 3), jnp.float32)
        p[f"dec{k}_b"] = 0.01 * jax.random.normal(next(ks), (CONV_DIMS,), jnp.float32)
    p["out_w"] = 0.1 * jax.random.normal(next(ks), (1, CONV_DIMS, 3, 3), jnp.float32)
    p["out_b"] = 0.01 * jax.random.normal(next(ks), (1,), jnp.float32)
    # nn.Embedding(K * num_classes, D)
    p["emb_w"] = jax.random.uniform(
        next(ks), (K_CODES * NUM_CLASSES, EMB_DIM), jnp.float32,
        minval=-1.0 / K_CODES, maxval=1.0 / K_CODES)
    return p


# ----------------------------------------------------------------------------
# Forward pass (== C2VQ_Recon_Net.forward, with C2VQEmbedding.straight_through)
# ----------------------------------------------------------------------------
def c2vq_recon_forward(params, x, c):
    n = x.shape[0]
    # channel-major layout for the whole conv pipeline: (C, N, H, W)
    h = jnp.transpose(x, (1, 0, 2, 3))
    for k in range(NUM_CONV):
        act = "relu" if k != NUM_CONV - 1 else "none"
        h = conv_cm(h, params[f"enc{k}_w"], params[f"enc{k}_b"],
                    stride=2, pad=1, act=act)

    # per-sample (C, H, W) flatten, matching torch's x.view(N, -1)
    z_e = jnp.transpose(h, (1, 0, 2, 3)).reshape(n, -1)
    z_e_x = z_e.reshape(n, -1, 1, 1)       # returned in ORIGINAL batch order

    # class-conditioned VQ; the first decoder 2x upsample is fused in its epilogue
    z_q, z_q_up = vq_class_conditioned(z_e, params["emb_w"], c)

    # C2VQEmbedding.straight_through concatenates per-class groups in sorted-class
    # order (torch.unique is sorted, per-class indices keep batch order) == a
    # stable argsort of c.  z_q_x is therefore permuted relative to z_e_x, exactly
    # as in the torch reference (review correctness note #1).
    perm = jnp.argsort(c, stable=True)
    z_q_x = z_q[perm].reshape(n, -1, 1, 1)
    zu = z_q_up[perm]                      # (N, C * (2*D_SPATIAL)^2), grouped order

    # decoder (runs on the grouped order, like the torch recon net)
    # NOTE: the padding schedule below is hard-wired to NUM_CONV == 2
    # (review correctness note #2); assert rather than silently mis-shape.
    assert NUM_CONV == 2, "decoder padding schedule assumes NUM_CONV == 2"
    s = 2 * D_SPATIAL                      # first 2x upsample already applied
    xd = jnp.transpose(zu.reshape(n, CONV_DIMS, s, s), (1, 0, 2, 3))
    for k in range(NUM_CONV):
        pad = 0 if k == NUM_CONV - 2 else 1
        ho = s + 2 * pad - 2
        if k < NUM_CONV - 1:
            # fuse the NEXT decoder block's 2x bilinear upsample into this conv
            xd = conv_cm(xd, params[f"dec{k}_w"], params[f"dec{k}_b"],
                         stride=1, pad=pad, act="relu",
                         up_mat=_upsample_kron_T_np(ho, ho))
            s = 2 * ho
        else:
            xd = conv_cm(xd, params[f"dec{k}_w"], params[f"dec{k}_b"],
                         stride=1, pad=pad, act="relu")
            s = ho

    x_tilde_cm = conv_cm(xd, params["out_w"], params["out_b"],
                         stride=1, pad=1, act="sigmoid")
    x_tilde = jnp.transpose(x_tilde_cm, (1, 0, 2, 3))
    # TODO(synk): the straight-through gradient estimator is backward-only; it has
    # no effect on forward values and is not represented here.
    return x_tilde, z_e_x, z_q_x


# ----------------------------------------------------------------------------
if __name__ == "__main__":
    key = jax.random.PRNGKey(0)
    kp, kx = jax.random.split(key)
    params = init_params(kp)

    # input: ROI mask logits (N, 1, 28, 28); class labels per ROI
    x = jax.random.normal(kx, (2, 1, 28, 28), jnp.float32)
    c = jnp.array([2, 0], dtype=jnp.int32)

    fwd = jax.jit(c2vq_recon_forward)
    x_tilde, z_e_x, z_q_x = fwd(params, x, c)
    jax.block_until_ready((x_tilde, z_e_x, z_q_x))

    assert x_tilde.shape == (2, 1, 24, 24)
    assert z_e_x.shape == (2, EMB_DIM, 1, 1)
    assert z_q_x.shape == (2, EMB_DIM, 1, 1)
    print("KERNEL_OK")
</pallas_src>

<mosaic_0001>
module attributes {stable_mosaic.version = 11 : i64} {
  func.func @_conv_kernel(%arg0: memref<9x392xbf16, #tpu.memory_space<vmem>>, %arg1: memref<8x9xbf16, #tpu.memory_space<vmem>>, %arg2: memref<8x1xf32, #tpu.memory_space<vmem>>, %arg3: memref<8x392xf32, #tpu.memory_space<vmem>>) attributes {dimension_semantics = [], scalar_prefetch = 0 : i64, scratch_operands = 0 : i64, tpu.core_type = #tpu.core_type<tc>} {
    %c0 = arith.constant 0 : index
    %c0_0 = arith.constant 0 : index
    %0 = vector.load %arg1[%c0, %c0_0] : memref<8x9xbf16, #tpu.memory_space<vmem>>, vector<8x9xbf16>
    %c0_1 = arith.constant 0 : index
    %c0_2 = arith.constant 0 : index
    %1 = vector.load %arg0[%c0_1, %c0_2] : memref<9x392xbf16, #tpu.memory_space<vmem>>, vector<9x392xbf16>
    %cst = arith.constant dense<0.000000e+00> : vector<8x392xf32>
    %2 = tpu.matmul %0, %1, %cst {dimension_numbers = #tpu.dot_dimension_numbers<[1], [0], [0], [1], [0, 0, 1, 1], [], []>} : vector<8x9xbf16>, vector<9x392xbf16>, vector<8x392xf32> -> vector<8x392xf32>
    %c0_3 = arith.constant 0 : index
    %c0_4 = arith.constant 0 : index
    %3 = vector.load %arg2[%c0_3, %c0_4] : memref<8x1xf32, #tpu.memory_space<vmem>>, vector<8x1xf32>
    %4 = vector.broadcast %3 : vector<8x1xf32> to vector<8x392xf32>
    %5 = arith.addf %2, %4 : vector<8x392xf32>
    %cst_5 = arith.constant 0.000000e+00 : f32
    %6 = vector.broadcast %cst_5 : f32 to vector<8x392xf32>
    %7 = arith.maximumf %5, %6 : vector<8x392xf32>
    %c0_6 = arith.constant 0 : index
    %c0_7 = arith.constant 0 : index
    %8 = vector.load %arg3[%c0_6, %c0_7] : memref<8x392xf32, #tpu.memory_space<vmem>>, vector<8x392xf32>
    tpu.vector_store %arg3[%c0_6, %c0_7], %7 {strides = array<i32>} : memref<8x392xf32, #tpu.memory_space<vmem>>, vector<8x392xf32>,
    return
  }
}

module attributes {stable_mosaic.version = 11 : i64} {
  func.func @_conv_kernel(%arg0: memref<72x98xbf16, #tpu.memory_space<vmem>>, %arg1: memref<8x72xbf16, #tpu.memory_space<vmem>>, %arg2: memref<8x1xf32, #tpu.memory_space<vmem>>, %arg3: memref<8x98xf32, #tpu.memory_space<vmem>>) attributes {dimension_semantics = [], scalar_prefetch = 0 : i64, scratch_operands = 0 : i64, tpu.core_type = #tpu.core_type<tc>} {
    %c0 = arith.constant 0 : index
    %c0_0 = arith.constant 0 : index
    %0 = vector.load %arg1[%c0, %c0_0] : memref<8x72xbf16, #tpu.memory_space<vmem>>, vector<8x72xbf16>
    %c0_1 = arith.constant 0 : index
    %c0_2 = arith.constant 0 : index
    %1 = vector.load %arg0[%c0_1, %c0_2] : memref<72x98xbf16, #tpu.memory_space<vmem>>, vector<72x98xbf16>
    %cst = arith.constant dense<0.000000e+00> : vector<8x98xf32>
    %2 = tpu.matmul %0, %1, %cst {dimension_numbers = #tpu.dot_dimension_numbers<[1], [0], [0], [1], [0, 0, 1, 1], [], []>} : vector<8x72xbf16>, vector<72x98xbf16>, vector<8x98xf32> -> vector<8x98xf32>
    %c0_3 = arith.constant 0 : index
    %c0_4 = arith.constant 0 : index
    %3 = vector.load %arg2[%c0_3, %c0_4] : memref<8x1xf32, #tpu.memory_space<vmem>>, vector<8x1xf32>
    %4 = vector.broadcast %3 : vector<8x1xf32> to vector<8x98xf32>
    %5 = arith.addf %2, %4 : vector<8x98xf32>
    %c0_5 = arith.constant 0 : index
    %c0_6 = arith.constant 0 : index
    %6 = vector.load %arg3[%c0_5, %c0_6] : memref<8x98xf32, #tpu.memory_space<vmem>>, vector<8x98xf32>
    tpu.vector_store %arg3[%c0_5, %c0_6], %5 {strides = array<i32>} : memref<8x98xf32, #tpu.memory_space<vmem>>, vector<8x98xf32>,
    return
  }
}

module attributes {stable_mosaic.version = 11 : i64} {
  func.func @_vq_up_kernel(%arg0: i32, %arg1: memref<2xi32, #tpu.memory_space<smem>>, %arg2: memref<1x1x392xf32, #tpu.memory_space<vmem>>, %arg3: memref<1x16x392xf32, #tpu.memory_space<vmem>>, %arg4: memref<392x1568xf32, #tpu.memory_space<vmem>>, %arg5: memref<1x1x392xf32, #tpu.memory_space<vmem>>, %arg6: memref<1x1x1568xf32, #tpu.memory_space<vmem>>) attributes {dimension_semantics = [#tpu.dimension_semantics<parallel>], iteration_bounds = array<i64: 2>, scalar_prefetch = 1 : i64, scratch_operands = 0 : i64, tpu.core_type = #tpu.core_type<tc>, window_params = [{transform_indices = @transform_0, window_bounds = array<i64: 1, 1, 392>}, {transform_indices = @transform_1, window_bounds = array<i64: 1, 16, 392>}, {pipeline_mode = #tpu.pipeline_mode<synchronous>, transform_indices = @transform_2, window_bounds = array<i64: 392, 1568>}, {transform_indices = @transform_3, window_bounds = array<i64: 1, 1, 392>}, {transform_indices = @transform_4, window_bounds = array<i64: 1, 1, 1568>}]} {
    %c0 = arith.constant 0 : index
    %c0_0 = arith.constant 0 : index
    %c0_1 = arith.constant 0 : index
    %0 = vector.load %arg2[%c0, %c0_0, %c0_1] : memref<1x1x392xf32, #tpu.memory_space<vmem>>, vector<1x1x392xf32>
    %1 = vector.shape_cast %0 : vector<1x1x392xf32> to vector<1x392xf32>
    %c0_2 = arith.constant 0 : index
    %c0_3 = arith.constant 0 : index
    %c0_4 = arith.constant 0 : index
    %2 = vector.load %arg3[%c0_2, %c0_3, %c0_4] : memref<1x16x392xf32, #tpu.memory_space<vmem>>, vector<1x16x392xf32>
    %3 = vector.shape_cast %2 : vector<1x16x392xf32> to vector<16x392xf32>
    %4 = arith.mulf %3, %3 : vector<16x392xf32>
    %cst = arith.constant dense<0.000000e+00> : vector<16xf32>
    %5 = vector.multi_reduction <add>, %4, %cst [1] : vector<16x392xf32> to vector<16xf32>
    %6 = vector.shape_cast %5 : vector<16xf32> to vector<16x1xf32>
    %7 = tpu.transpose %1, [1, 0] : vector<1x392xf32> -> vector<392x1xf32>
    %cst_5 = arith.constant dense<0.000000e+00> : vector<16x1xf32>
    %8 = tpu.matmul %3, %7, %cst_5 {dimension_numbers = #tpu.dot_dimension_numbers<[1], [0], [0], [1], [0, 0, 1, 1], [], []>} : vector<16x392xf32>, vector<392x1xf32>, vector<16x1xf32> -> vector<16x1xf32>
    %cst_6 = arith.constant 2.000000e+00 : f32
    %9 = vector.broadcast %cst_6 : f32 to vector<16x1xf32>
    %10 = arith.mulf %9, %8 : vector<16x1xf32>
    %11 = arith.subf %6, %10 : vector<16x1xf32>
    %12 = vector.shape_cast %11 : vector<16x1xf32> to vector<1x16x1xf32>
    %cst_7 = arith.constant dense<0x7F800000> : vector<1xf32>
    %13 = vector.multi_reduction <minimumf>, %12, %cst_7 [1, 2] : vector<1x16x1xf32> to vector<1xf32>
    %14 = vector.shape_cast %13 : vector<1xf32> to vector<1x1x1xf32>
    %15 = vector.extract %14[0, 0, 0] : f32 from vector<1x1x1xf32>
    %16 = tpu.iota {dimensions = array<i32: 0>} : vector<16x1xi32>
    %17 = vector.broadcast %15 : f32 to vector<16x1xf32>
    %18 = arith.cmpf oeq, %11, %17 : vector<16x1xf32>
    %c16_i32 = arith.constant 16 : i32
    %19 = vector.broadcast %c16_i32 : i32 to vector<16x1xi32>
    %20 = arith.select %18, %16, %19 : vector<16x1xi1>, vector<16x1xi32>
    %21 = vector.shape_cast %20 : vector<16x1xi32> to vector<1x16x1xi32>
    %cst_8 = arith.constant dense<2147483647> : vector<1xi32>
    %22 = vector.multi_reduction <minsi>, %21, %cst_8 [1, 2] : vector<1x16x1xi32> to vector<1xi32>
    %23 = vector.shape_cast %22 : vector<1xi32> to vector<1x1x1xi32>
    %24 = vector.extract %23[0, 0, 0] : i32 from vector<1x1x1xi32>
    %25 = vector.broadcast %24 : i32 to vector<16x1xi32>
    %26 = arith.cmpi eq, %16, %25 : vector<16x1xi32>
    %27 = arith.extui %26 : vector<16x1xi1> to vector<16x1xi32>
    %28 = arith.sitofp %27 : vector<16x1xi32> to vector<16x1xf32>
    %29 = tpu.transpose %28, [1, 0] : vector<16x1xf32> -> vector<1x16xf32>
    %cst_9 = arith.constant dense<0.000000e+00> : vector<1x392xf32>
    %30 = tpu.matmul %29, %3, %cst_9 {dimension_numbers = #tpu.dot_dimension_numbers<[1], [0], [0], [1], [0, 0, 1, 1], [], []>} : vector<1x16xf32>, vector<16x392xf32>, vector<1x392xf32> -> vector<1x392xf32>
    %c0_10 = arith.constant 0 : index
    %c0_11 = arith.constant 0 : index
    %c0_12 = arith.constant 0 : index
    %31 = vector.load %arg5[%c0_10, %c0_11, %c0_12] : memref<1x1x392xf32, #tpu.memory_space<vmem>>, vector<1x1x392xf32>
    %32 = vector.shape_cast %31 : vector<1x1x392xf32> to vector<1x392xf32>
    %33 = vector.shape_cast %30 : vector<1x392xf32> to vector<1x1x392xf32>
    tpu.vector_store %arg5[%c0_10, %c0_11, %c0_12], %33 {strides = array<i32>} : memref<1x1x392xf32, #tpu.memory_space<vmem>>, vector<1x1x392xf32>,
    %c0_13 = arith.constant 0 : index
    %c0_14 = arith.constant 0 : index
    %34 = vector.load %arg4[%c0_13, %c0_14] : memref<392x1568xf32, #tpu.memory_space<vmem>>, vector<392x1568xf32>
    %cst_15 = arith.constant dense<0.000000e+00> : vector<1x1568xf32>
    %35 = tpu.matmul %30, %34, %cst_15 {dimension_numbers = #tpu.dot_dimension_numbers<[1], [0], [0], [1], [0, 0, 1, 1], [], []>} : vector<1x392xf32>, vector<392x1568xf32>, vector<1x1568xf32> -> vector<1x1568xf32>
    %c0_16 = arith.constant 0 : index
    %c0_17 = arith.constant 0 : index
    %c0_18 = arith.constant 0 : index
    %36 = vector.load %arg6[%c0_16, %c0_17, %c0_18] : memref<1x1x1568xf32, #tpu.memory_space<vmem>>, vector<1x1x1568xf32>
    %37 = vector.shape_cast %36 : vector<1x1x1568xf32> to vector<1x1568xf32>
    %38 = vector.shape_cast %35 : vector<1x1568xf32> to vector<1x1x1568xf32>
    tpu.vector_store %arg6[%c0_16, %c0_17, %c0_18], %38 {strides = array<i32>} : memref<1x1x1568xf32, #tpu.memory_space<vmem>>, vector<1x1x1568xf32>,
    return
  }
  func.func @transform_0(%arg0: i32, %arg1: memref<2xi32, #tpu.memory_space<smem>>) -> (i32, i32, i32) {
    %c0_i32 = arith.constant 0 : i32
    %c0_i32_0 = arith.constant 0 : i32
    %c0_i32_1 = arith.constant 0 : i32
    return %arg0, %c0_i32, %c0_i32_0 : i32, i32, i32
  }
  func.func @transform_1(%arg0: i32, %arg1: memref<2xi32, #tpu.memory_space<smem>>) -> (i32, i32, i32) {
    %0 = arith.index_cast %arg0 : i32 to index
    %1 = memref.load %arg1[%0] : memref<2xi32, #tpu.memory_space<smem>>
    %c0_i32 = arith.constant 0 : i32
    %c0_i32_0 = arith.constant 0 : i32
    %c0_i32_1 = arith.constant 0 : i32
    return %1, %c0_i32, %c0_i32_0 : i32, i32, i32
  }
  func.func @transform_2(%arg0: i32, %arg1: memref<2xi32, #tpu.memory_space<smem>>) -> (i32, i32) {
    %c0_i32 = arith.constant 0 : i32
    %c0_i32_0 = arith.constant 0 : i32
    %c0_i32_1 = arith.constant 0 : i32
    return %c0_i32, %c0_i32_0 : i32, i32
  }
  func.func @transform_3(%arg0: i32, %arg1: memref<2xi32, #tpu.memory_space<smem>>) -> (i32, i32, i32) {
    %c0_i32 = arith.constant 0 : i32
    %c0_i32_0 = arith.constant 0 : i32
    %c0_i32_1 = arith.constant 0 : i32
    return %arg0, %c0_i32, %c0_i32_0 : i32, i32, i32
  }
  func.func @transform_4(%arg0: i32, %arg1: memref<2xi32, #tpu.memory_space<smem>>) -> (i32, i32, i32) {
    %c0_i32 = arith.constant 0 : i32
    %c0_i32_0 = arith.constant 0 : i32
    %c0_i32_1 = arith.constant 0 : i32
    return %arg0, %c0_i32, %c0_i32_0 : i32, i32, i32
  }
}

module attributes {stable_mosaic.version = 11 : i64} {
  func.func @_conv_up_kernel(%arg0: memref<72x288xbf16, #tpu.memory_space<vmem>>, %arg1: memref<8x72xbf16, #tpu.memory_space<vmem>>, %arg2: memref<8x1xf32, #tpu.memory_space<vmem>>, %arg3: memref<288x1152xf32, #tpu.memory_space<vmem>>, %arg4: memref<8x1152xf32, #tpu.memory_space<vmem>>) attributes {dimension_semantics = [], scalar_prefetch = 0 : i64, scratch_operands = 0 : i64, tpu.core_type = #tpu.core_type<tc>} {
    %c0 = arith.constant 0 : index
    %c0_0 = arith.constant 0 : index
    %0 = vector.load %arg1[%c0, %c0_0] : memref<8x72xbf16, #tpu.memory_space<vmem>>, vector<8x72xbf16>
    %c0_1 = arith.constant 0 : index
    %c0_2 = arith.constant 0 : index
    %1 = vector.load %arg0[%c0_1, %c0_2] : memref<72x288xbf16, #tpu.memory_space<vmem>>, vector<72x288xbf16>
    %cst = arith.constant dense<0.000000e+00> : vector<8x288xf32>
    %2 = tpu.matmul %0, %1, %cst {dimension_numbers = #tpu.dot_dimension_numbers<[1], [0], [0], [1], [0, 0, 1, 1], [], []>} : vector<8x72xbf16>, vector<72x288xbf16>, vector<8x288xf32> -> vector<8x288xf32>
    %c0_3 = arith.constant 0 : index
    %c0_4 = arith.constant 0 : index
    %3 = vector.load %arg2[%c0_3, %c0_4] : memref<8x1xf32, #tpu.memory_space<vmem>>, vector<8x1xf32>
    %4 = vector.broadcast %3 : vector<8x1xf32> to vector<8x288xf32>
    %5 = arith.addf %2, %4 : vector<8x288xf32>
    %cst_5 = arith.constant 0.000000e+00 : f32
    %6 = vector.broadcast %cst_5 : f32 to vector<8x288xf32>
    %7 = arith.maximumf %5, %6 : vector<8x288xf32>
    %c0_6 = arith.constant 0 : index
    %c0_7 = arith.constant 0 : index
    %8 = vector.load %arg3[%c0_6, %c0_7] : memref<288x1152xf32, #tpu.memory_space<vmem>>, vector<288x1152xf32>
    %cst_8 = arith.constant dense<0.000000e+00> : vector<8x1152xf32>
    %9 = tpu.matmul %7, %8, %cst_8 {dimension_numbers = #tpu.dot_dimension_numbers<[1], [0], [0], [1], [0, 0, 1, 1], [], []>} : vector<8x288xf32>, vector<288x1152xf32>, vector<8x1152xf32> -> vector<8x1152xf32>
    %c0_9 = arith.constant 0 : index
    %c0_10 = arith.constant 0 : index
    %10 = vector.load %arg4[%c0_9, %c0_10] : memref<8x1152xf32, #tpu.memory_space<vmem>>, vector<8x1152xf32>
    tpu.vector_store %arg4[%c0_9, %c0_10], %9 {strides = array<i32>} : memref<8x1152xf32, #tpu.memory_space<vmem>>, vector<8x1152xf32>,
    return
  }
}

module attributes {stable_mosaic.version = 11 : i64} {
  func.func @_conv_kernel(%arg0: i32, %arg1: memref<72x512xbf16, #tpu.memory_space<vmem>>, %arg2: memref<8x72xbf16, #tpu.memory_space<vmem>>, %arg3: memref<8x1xf32, #tpu.memory_space<vmem>>, %arg4: memref<8x512xf32, #tpu.memory_space<vmem>>) attributes {dimension_semantics = [#tpu.dimension_semantics<parallel>], iteration_bounds = array<i64: 3>, scalar_prefetch = 0 : i64, scratch_operands = 0 : i64, tpu.core_type = #tpu.core_type<tc>, window_params = [{transform_indices = @transform_0, window_bounds = array<i64: 72, 512>}, {pipeline_mode = #tpu.pipeline_mode<synchronous>, transform_indices = @transform_1, window_bounds = array<i64: 8, 72>}, {pipeline_mode = #tpu.pipeline_mode<synchronous>, transform_indices = @transform_2, window_bounds = array<i64: 8, 1>}, {transform_indices = @transform_3, window_bounds = array<i64: 8, 512>}]} {
    %c0 = arith.constant 0 : index
    %c0_0 = arith.constant 0 : index
    %0 = vector.load %arg2[%c0, %c0_0] : memref<8x72xbf16, #tpu.memory_space<vmem>>, vector<8x72xbf16>
    %c0_1 = arith.constant 0 : index
    %c0_2 = arith.constant 0 : index
    %1 = vector.load %arg1[%c0_1, %c0_2] : memref<72x512xbf16, #tpu.memory_space<vmem>>, vector<72x512xbf16>
    %cst = arith.constant dense<0.000000e+00> : vector<8x512xf32>
    %2 = tpu.matmul %0, %1, %cst {dimension_numbers = #tpu.dot_dimension_numbers<[1], [0], [0], [1], [0, 0, 1, 1], [], []>} : vector<8x72xbf16>, vector<72x512xbf16>, vector<8x512xf32> -> vector<8x512xf32>
    %c0_3 = arith.constant 0 : index
    %c0_4 = arith.constant 0 : index
    %3 = vector.load %arg3[%c0_3, %c0_4] : memref<8x1xf32, #tpu.memory_space<vmem>>, vector<8x1xf32>
    %4 = vector.broadcast %3 : vector<8x1xf32> to vector<8x512xf32>
    %5 = arith.addf %2, %4 : vector<8x512xf32>
    %cst_5 = arith.constant 0.000000e+00 : f32
    %6 = vector.broadcast %cst_5 : f32 to vector<8x512xf32>
    %7 = arith.maximumf %5, %6 : vector<8x512xf32>
    %c0_6 = arith.constant 0 : index
    %c0_7 = arith.constant 0 : index
    %8 = vector.load %arg4[%c0_6, %c0_7] : memref<8x512xf32, #tpu.memory_space<vmem>>, vector<8x512xf32>
    tpu.vector_store %arg4[%c0_6, %c0_7], %7 {strides = array<i32>} : memref<8x512xf32, #tpu.memory_space<vmem>>, vector<8x512xf32>,
    return
  }
  func.func @transform_0(%arg0: i32) -> (i32, i32) {
    %c0_i32 = arith.constant 0 : i32
    %c0_i32_0 = arith.constant 0 : i32
    return %c0_i32, %arg0 : i32, i32
  }
  func.func @transform_1(%arg0: i32) -> (i32, i32) {
    %c0_i32 = arith.constant 0 : i32
    %c0_i32_0 = arith.constant 0 : i32
    %c0_i32_1 = arith.constant 0 : i32
    return %c0_i32, %c0_i32_0 : i32, i32
  }
  func.func @transform_2(%arg0: i32) -> (i32, i32) {
    %c0_i32 = arith.constant 0 : i32
    %c0_i32_0 = arith.constant 0 : i32
    %c0_i32_1 = arith.constant 0 : i32
    return %c0_i32, %c0_i32_0 : i32, i32
  }
  func.func @transform_3(%arg0: i32) -> (i32, i32) {
    %c0_i32 = arith.constant 0 : i32
    %c0_i32_0 = arith.constant 0 : i32
    return %c0_i32, %arg0 : i32, i32
  }
}

module attributes {stable_mosaic.version = 11 : i64} {
  func.func @_conv_kernel(%arg0: i32, %arg1: memref<72x512xbf16, #tpu.memory_space<vmem>>, %arg2: memref<1x72xbf16, #tpu.memory_space<vmem>>, %arg3: memref<1x1xf32, #tpu.memory_space<vmem>>, %arg4: memref<1x512xf32, #tpu.memory_space<vmem>>) attributes {dimension_semantics = [#tpu.dimension_semantics<parallel>], iteration_bounds = array<i64: 3>, scalar_prefetch = 0 : i64, scratch_operands = 0 : i64, tpu.core_type = #tpu.core_type<tc>, window_params = [{transform_indices = @transform_0, window_bounds = array<i64: 72, 512>}, {pipeline_mode = #tpu.pipeline_mode<synchronous>, transform_indices = @transform_1, window_bounds = array<i64: 1, 72>}, {pipeline_mode = #tpu.pipeline_mode<synchronous>, transform_indices = @transform_2, window_bounds = array<i64: 1, 1>}, {transform_indices = @transform_3, window_bounds = array<i64: 1, 512>}]} {
    %c0 = arith.constant 0 : index
    %c0_0 = arith.constant 0 : index
    %0 = vector.load %arg2[%c0, %c0_0] : memref<1x72xbf16, #tpu.memory_space<vmem>>, vector<1x72xbf16>
    %c0_1 = arith.constant 0 : index
    %c0_2 = arith.constant 0 : index
    %1 = vector.load %arg1[%c0_1, %c0_2] : memref<72x512xbf16, #tpu.memory_space<vmem>>, vector<72x512xbf16>
    %cst = arith.constant dense<0.000000e+00> : vector<1x512xf32>
    %2 = tpu.matmul %0, %1, %cst {dimension_numbers = #tpu.dot_dimension_numbers<[1], [0], [0], [1], [0, 0, 1, 1], [], []>} : vector<1x72xbf16>, vector<72x512xbf16>, vector<1x512xf32> -> vector<1x512xf32>
    %c0_3 = arith.constant 0 : index
    %c0_4 = arith.constant 0 : index
    %3 = vector.load %arg3[%c0_3, %c0_4] : memref<1x1xf32, #tpu.memory_space<vmem>>, vector<1x1xf32>
    %4 = vector.broadcast %3 : vector<1x1xf32> to vector<1x512xf32>
    %5 = arith.addf %2, %4 : vector<1x512xf32>
    %6 = arith.negf %5 : vector<1x512xf32>
    %7 = math.exp %6 : vector<1x512xf32>
    %cst_5 = arith.constant 1.000000e+00 : f32
    %8 = vector.broadcast %cst_5 : f32 to vector<1x512xf32>
    %9 = arith.addf %8, %7 : vector<1x512xf32>
    %10 = arith.divf %8, %9 : vector<1x512xf32>
    %c0_6 = arith.constant 0 : index
    %c0_7 = arith.constant 0 : index
    %11 = vector.load %arg4[%c0_6, %c0_7] : memref<1x512xf32, #tpu.memory_space<vmem>>, vector<1x512xf32>
    tpu.vector_store %arg4[%c0_6, %c0_7], %10 {strides = array<i32>} : memref<1x512xf32, #tpu.memory_space<vmem>>, vector<1x512xf32>,
    return
  }
  func.func @transform_0(%arg0: i32) -> (i32, i32) {
    %c0_i32 = arith.constant 0 : i32
    %c0_i32_0 = arith.constant 0 : i32
    return %c0_i32, %arg0 : i32, i32
  }
  func.func @transform_1(%arg0: i32) -> (i32, i32) {
    %c0_i32 = arith.constant 0 : i32
    %c0_i32_0 = arith.constant 0 : i32
    %c0_i32_1 = arith.constant 0 : i32
    return %c0_i32, %c0_i32_0 : i32, i32
  }
  func.func @transform_2(%arg0: i32) -> (i32, i32) {
    %c0_i32 = arith.constant 0 : i32
    %c0_i32_0 = arith.constant 0 : i32
    %c0_i32_1 = arith.constant 0 : i32
    return %c0_i32, %c0_i32_0 : i32, i32
  }
  func.func @transform_3(%arg0: i32) -> (i32, i32) {
    %c0_i32 = arith.constant 0 : i32
    %c0_i32_0 = arith.constant 0 : i32
    return %c0_i32, %arg0 : i32, i32
  }
}

</mosaic_0001>

<bundles_post_ra>
// kernel: c2vq_recon_forward.6
= control target key start
LH: loop header
LB: loop body
LE: loop exit
PB: predicated region body
PF: predicated region fallthrough
CT: control target
= control target key end

     0   :  { %vm46_vm0 = vcmask 1043456   ;;  %vm47_vm1 = vcmask 1044480   ;;  %v172_v1 = vmov 0   ;;  %v173_v2 = vmov 65535   ;;  %s224_s0 = inlined_call_operand.vmem [shape: bf16[9,392], index: 0, kind: input, shape index: {}]   ;;  %s225_s2 = inlined_call_operand.vmem [shape: f32[8,1], index: 2, kind: input, shape index: {}]   ;;  %s226_s1 = inlined_call_operand.vmem [shape: bf16[8,9], index: 1, kind: input, shape index: {}]   ;;  %s227_s3 = inlined_call_operand.vmem [shape: f32[8,392], index: 3, kind: output, shape index: {}]  }
   0x1   :  { %v166_v0 = vld [vmem:[%s224_s0 + $0x4] ss:$16 sps:$4 sm:$0x1f]   ;;  %94 = vmatprep.mubr.bf16.mxu0 %v172_v1  ;;  %135 = vmatprep.mubr.bf16.mxu1 %v172_v1  ;;  %v48_v3 = vsel %vm46_vm0, 4294967295, %v173_v2  ;;  %v15_v13 = vld [vmem:[%s226_s1] sm:$0xf] }
   0x2   :  { %165 = vset.pattern.permute.xlu0 %v172_v1  ;;  %v49_v4 = vsel %vm47_vm1, %v48_v3, 0  ;;  %v168_v5 = vld [vmem:[%s224_s0 + $0xc] ss:$16 sps:$4 sm:$0x1f]   ;;  %v20_v6 = vld [vmem:[%s225_s2] sm:$0xff]  ;;  %vm42_vm2 = vcmask 72704  }
   0x3   :  { %v54_v7 = vand.u32 %v166_v0, %v49_v4  ;;  %v170_v8 = vld [vmem:[%s224_s0] ss:$16 sps:$4 sm:$0x1f]   ;;  %v171_v9 = vld [vmem:[%s224_s0 + $0x8] ss:$16 sps:$4 sm:$0x1f]   ;;  %23 = vperm.xlu0 %165, %v20_v6   ;;  %v60_v10 = vand.u32 %v168_v5, %v49_v4 }
   0x4   :  { %v51_v11 = vand.u32 %v170_v8, %v49_v4  ;;  %v57_v12 = vand.u32 %v171_v9, %v49_v4  ;;  %vm151_vm3 = vcmask 64512  }
   0x5   :  { %62 = vmatprep.subr.bf16.mxu0 %v54_v7  ;;  %103 = vmatprep.subr.bf16.mxu1 %v60_v10 }
   0x6   :  { %63 = vmatpush1.bf16.msra.mxu0 %v51_v11  ;;  %104 = vmatpush1.bf16.msra.mxu1 %v57_v12 }
   0x9   :  { %161 = vmatmul.mubr.msk.bf16.vlgmr.msra.gmra.mrb[0].mxu0 %vm42_vm2, %v15_v13  ;;  %162 = vmatmul.mubr.msk.bf16.vlgmr.msra.gmra.mrb[0].mxu1 %vm42_vm2, %v15_v13 }
  0x82   :  { %v24_v14 = vpop.permute.xlu0 %23 }
  0xdc   :  { %v96_v15 = vpop.f32.mrb[0].mxu0  ;;  %v137_v16 = vpop.f32.mrb[0].mxu1 }
  0xdd   :  { %v97_v17 = vadd.f32 %v96_v15, %v24_v14  ;;  %v138_v18 = vadd.f32 %v137_v16, %v24_v14  ;;  %v98_v19 = vpop.f32.mrb[1].mxu0  ;;  %v139_v20 = vpop.f32.mrb[1].mxu1 }
  0xde   :  { %v99_v21 = vadd.f32 %v98_v19, %v24_v14  ;;  %v140_v22 = vadd.f32 %v139_v20, %v24_v14  ;;  %v100_v23 = vpop.f32.mrb[2].mxu0  ;;  %v141_v24 = vpop.f32.mrb[2].mxu1 }
  0xdf   :  { %v144_v25 = vmax.f32 %v97_v17, 0.0  ;;  %v146_v26 = vmax.f32 %v138_v18, 0.0  ;;  %v101_v27 = vpop.f32.mrb[3].mxu0  ;;  %v142_v28 = vpop.f32.mrb[3].mxu1 }
  0xe0   :  { %v145_v29 = vmax.f32 %v99_v21, 0.0  ;;  %v147_v30 = vmax.f32 %v140_v22, 0.0 }
  0xe1   :  { %148 = vst [vmem:[%s227_s3] sm:$0xff] %v144_v25  ;;  %150 = vst [vmem:[%s227_s3 + $0x10] sm:$0xff] %v146_v26 }
  0xe2   :  { %149 = vst [vmem:[%s227_s3 + $0x8] sm:$0xff] %v145_v29  ;;  %152 = vst.msk [vmem:[%s227_s3 + $0x18] sm:$0xff] %vm151_vm3, %v147_v30 }

// kernel: c2vq_recon_forward.7
= control target key start
LH: loop header
LB: loop body
LE: loop exit
PB: predicated region body
PF: predicated region fallthrough
CT: control target
= control target key end

     0   :  { %v147_v0 = vmov 0.0   ;;  %vm148_vm0 = vmmov 0   ;;  %v149_v2 = vmov 0   ;;  %vm62_vm1 = vcmask 1043456   ;;  %s194_s0 = inlined_call_operand.vmem [shape: bf16[72,98], index: 0, kind: input, shape index: {}]   ;;  %s195_s2 = inlined_call_operand.vmem [shape: f32[8,1], index: 2, kind: input, shape index: {}]   ;;  %s196_s1 = inlined_call_operand.vmem [shape: bf16[8,72], index: 1, kind: input, shape index: {}]   ;;  %s197_s3 = inlined_call_operand.vmem [shape: f32[8,98], index: 3, kind: output, shape index: {}]  }
   0x1   :  { %124 = vmatprep.subr.bf16.mxu0 %v147_v0  ;;  %v142_v1 = vld [vmem:[%s194_s0] sm:$0xff]   ;;  %134 = vmatprep.mubr.msk.bf16.mxu0 %vm148_vm0, %v147_v0  ;;  %v143_v3 = vld [vmem:[%s194_s0 + $0x8] sm:$0xff]   ;;  %v144_v5 = vld [vmem:[%s194_s0 + $0x10] sm:$0xff]   ;;  %vm58_vm2 = vcmask 588800   ;;  %vm106_vm3 = vcmask 801792  }
   0x2   :  { %141 = vset.pattern.permute.xlu0 %v149_v2  ;;  %125 = vmatpush3.bf16.msra.mxu0 %v142_v1  ;;  %v25_v4 = vld [vmem:[%s195_s2] sm:$0xff]  ;;  %v145_v6 = vld [vmem:[%s194_s0 + $0x18] sm:$0xff]  }
   0x3   :  { %126 = vmatprep.subr.bf16.mxu0 %v147_v0  ;;  %28 = vperm.xlu0 %141, %v25_v4   ;;  %v146_v7 = vld [vmem:[%s194_s0 + $0x20] ss:$0 sps:$4 sm:$0xff]  }
   0x4   :  { %v64_v8 = vsel %vm62_vm1, %v146_v7, 0  ;;  %v15_v9 = vld [vmem:[%s196_s1] sm:$0xf] }
   0x6   :  { %127 = vmatpush3.bf16.msra.mxu0 %v143_v3 }
   0x7   :  { %128 = vmatprep.subr.bf16.mxu0 %v147_v0 }
   0xa   :  { %129 = vmatpush3.bf16.msra.mxu0 %v144_v5 }
   0xb   :  { %130 = vmatprep.subr.bf16.mxu0 %v147_v0 }
   0xe   :  { %131 = vmatpush3.bf16.msra.mxu0 %v145_v6 }
   0xf   :  { %132 = vmatprep.subr.bf16.mxu0 %v147_v0 }
  0x12   :  { %133 = vmatpush3.bf16.msra.mxu0 %v64_v8 }
  0x15   :  { %135 = vmatmul.mubr.msk.bf16.vlgmr.msra.gmra.mrb[0].mxu0 %vm58_vm2, %v15_v9 }
  0x82   :  { %v29_v10 = vpop.permute.xlu0 %28 }
  0xe8   :  { %v100_v11 = vpop.f32.mrb[0].mxu0 }
  0xe9   :  { %v101_v12 = vadd.f32 %v100_v11, %v29_v10  ;;  %v136_v13 = vpop.f32.mrb[1].mxu0 }
  0xea   :  { %v103_v14 = vpop.f32.mrb[2].mxu0 }
  0xeb   :  { %107 = vst.msk [vmem:[%s197_s3] sm:$0xff] %vm106_vm3, %v101_v12  ;;  %v137_v15 = vpop.f32.mrb[3].mxu0 }

// kernel: c2vq_recon_forward.8
= control target key start
LH: loop header
LB: loop body
LE: loop exit
PB: predicated region body
PF: predicated region fallthrough
CT: control target
= control target key end

     0   :  { %s5239_s0 = inlined_call_operand.vmem [shape: s32[2], index: 0, kind: input, shape index: {}]   ;;  %s5240_s1 = inlined_call_operand.vmem [shape: f32[2,1,392], index: 1, kind: input, shape index: {}]   ;;  %s5241_s2 = inlined_call_operand.vmem [shape: f32[4,16,392], index: 2, kind: input, shape index: {}]   ;;  %s5242_s3 = inlined_call_operand.vmem [shape: f32[392,1568], index: 3, kind: input, shape index: {}]   ;;  %s5243_s4 = inlined_call_operand.vmem [shape: f32[2,1,392], index: 4, kind: output, shape index: {0}]   ;;  %s5244_s5 = inlined_call_operand.vmem [shape: f32[2,1,1568], index: 5, kind: output, shape index: {1}]  }
   0x1   :  { %s11_s20 = sshll.u32 %s5239_s0, 4  ;;  %s12_s20 = int_to_ptr.vmem [resolvable:$true] %s11_s20 }
   0x2   :  { %s3121_s21 = scalar_lea.vmem %s12_s20, 16  ;;  %p3126_p1 = scmp.lt.s32.totalorder %s12_s20, %s12_s20 }
   0x3   :  { %p3122_p0 = scmp.ne.s32.totalorder %s12_s20, %s3121_s21  ;;  %p3127_p2 = scmp.lt.s32.totalorder %s3121_s21, %s3121_s21 }
   0x5   :  { %p3128_p3 = por %p3127_p2, %p3126_p1 }
   0x7   :  { %p3129_p4 = pnand %p3128_p3, %p3122_p0 }
   0x9   :  { %3132 = shalt.err (!%p3129_p4)  }
   0xa   :  { %s3143_s22 = smov [#allocation3]  }
   0xb   :  { %14 = dma.vmem_to_smem %s12_s20, 16, %s3143_s22, [#allocation2] }
   0xc   :  { %3137 = dma.done.wait [#allocation2], 16 }
   0xd   :  { %3138 = vsyncadd [#allocation2], 4294967280 }
   0xe   :  { %16 = sfence }
   0xf   :  { %s3180_s23 = smov 0  }
  0x10 LB: > { %s2394_s0 = sadd.s32 4294967295, %s3141_s23   ;;  %p2398_p5 = scmp.ge.s32.totalorder %s3141_s23, 1  ;;  %s3141_s23 = sphi %s3180_s23, %s22_s23  }
  0x11   : > { %p185_p6 = scmp.lt.s32.totalorder %s3141_s23, 3 }
  0x13   : > { %p186_p7 = pnand %p2398_p5, %p185_p6 }
  0x14   : > { %p219_p8 = scmp.lt.s32.totalorder (!%p186_p7), %s2394_s0, 1  ;;  %s223_s24 = sld [smem:[#allocation3 + %s2394_s0]] (!%p186_p7)  ;;  %v269_v0 = vlaneseq (!%p186_p7)  ;;  %vm257_vm0 = vcmask (!%p186_p7), 64512   ;;  %v3144_v62 = vmov (!%p186_p7), 0.0   ;;  %vm380_vm9 = vcmask (!%p186_p7), 130048  }
  0x15   : > { %189 = sbr.rel (%p186_p7) target bundleno = 1158 (0x486), region = 32  ;;  %448 = vmatprep.mubr.f32.mxu0 (!%p186_p7), %v3144_v62  ;;  %519 = vmatprep.mubr.f32.mxu1 (!%p186_p7), %v3144_v62 }
  0x16   : > { %v3191_v1 = vshrl.u32 (!%p186_p7), %v269_v0, 7  ;;  %vm557_vm10 = vcmp.lt.s32.totalorder (!%p186_p7), %v269_v0, 392  ;;  %vm2295_vm11 = vcmp.lt.s32.totalorder (!%p186_p7), %v269_v0, 544 }
  0x18   : > { %v271_v2 = vsub.s32 (!%p186_p7), 0, %v3191_v1  ;;  %v275_v3 = vsub.s32 (!%p186_p7), 1, %v3191_v1  ;;  %v279_v4 = vsub.s32 (!%p186_p7), 2, %v3191_v1  ;;  %v283_v6 = vsub.s32 (!%p186_p7), 3, %v3191_v1 }
  0x1a   : > { %p224_p9 = scmp.lt.s32.totalorder (!%p186_p7), %s223_s24, 3 }
  0x1c   : > { %s5246_s0 = smov (!%p219_p8, %s2394_s0), 1  ;;  %s5248_s24 = smov (!%p224_p9, %s223_s24), 3 }
  0x1d   : > { %s2399_s25 = sshll.u32 %s5246_s0, 2  ;;  %s2416_s29 = sshll.u32 %s5248_s24, 6 }
  0x1e   : > { %s222_s28 = scalar_lea.vmem %s5240_s1, %s2399_s25  ;;  %s228_s7 = scalar_lea.vmem %s5241_s2, %s2416_s29 }
  0x1f   : > { %v238_v5 = vld [vmem:[%s222_s28] sm:$0xf]  ;;  %v3208_v12 = vld [vmem:[%s228_s7 + $0x8] sm:$0xff]  ;;  %v3210_v13 = vld [vmem:[%s228_s7 + $0x10] sm:$0xff]  ;;  %s233_s27 = scalar_lea.vmem %s5243_s4, %s2399_s25  ;;  %s3104_s30 = smul.u32 13, %s5246_s0 }
  0x20   : > { %v272_v7 = vrot.slane %v238_v5, %v271_v2  ;;  %v276_v8 = vrot.slane %v238_v5, %v275_v3  ;;  %v280_v9 = vrot.slane %v238_v5, %v279_v4  ;;  %v284_v10 = vrot.slane %v238_v5, %v283_v6  ;;  %v3206_v11 = vld [vmem:[%s228_s7] sm:$0xff]  ;;  %v3212_v14 = vld [vmem:[%s228_s7 + $0x18] sm:$0xff]  ;;  %v244_v20 = vld [vmem:[%s228_s7 + $0x28] sm:$0xff] }
  0x21   : > { %v247_v18 = vmul.f32 %v3206_v11, %v3206_v11  ;;  %v243_v19 = vld [vmem:[%s228_s7 + $0x20] sm:$0xff]  ;;  %v248_v22 = vmul.f32 %v3208_v12, %v3208_v12  ;;  %v249_v23 = vmul.f32 %v3210_v13, %v3210_v13  ;;  %v250_v24 = vmul.f32 %v3212_v14, %v3212_v14  ;;  %v245_v25 = vld [vmem:[%s228_s7 + $0x30] sm:$0xff]  ;;  %v246_v26 = vld [vmem:[%s228_s7 + $0x38] sm:$0xff]  ;;  %s237_s7 = scalar_lea.vmem %s5244_s5, %s3104_s30 }
  0x22   : > { %v289_v15 = vmul.f32 %v272_v7, %v3206_v11  ;;  %v290_v16 = vmul.f32 %v276_v8, %v3208_v12  ;;  %v291_v17 = vmul.f32 %v280_v9, %v3210_v13  ;;  %v292_v21 = vmul.f32 %v284_v10, %v3212_v14 }
  0x23   : > { %v293_v28 = vmul.f32 %v272_v7, %v243_v19  ;;  %v294_v29 = vmul.f32 %v276_v8, %v244_v20  ;;  %v295_v30 = vmul.f32 %v280_v9, %v245_v25  ;;  %v255_v32 = vadd.f32 %v248_v22, %v247_v18  ;;  %v561_v22 = vld [vmem:[%s5242_s3 + $0x8] sm:$0xff] }
  0x24   : > { %v297_v27 = vadd.f32 %v290_v16, %v289_v15  ;;  %v299_v31 = vsel %vm257_vm0, %v292_v21, 0.0  ;;  %v258_v33 = vsel %vm257_vm0, %v250_v24, 0.0  ;;  %v296_v34 = vmul.f32 %v284_v10, %v246_v26  ;;  %v563_v24 = vld [vmem:[%s5242_s3 + $0x18] sm:$0xff] }
  0x25   : > { %v303_v36 = vadd.f32 %v294_v29, %v293_v28  ;;  %v251_v37 = vmul.f32 %v243_v19, %v243_v19  ;;  %v252_v38 = vmul.f32 %v244_v20, %v244_v20  ;;  %v256_v39 = vadd.f32 %v255_v32, %v249_v23  ;;  %v574_v23 = vld [vmem:[%s5242_s3 + $0x70] sm:$0xff]  ;;  %v560_v29 = vld [vmem:[%s5242_s3] sm:$0xff]  ;;  %v575_v32 = vld [vmem:[%s5242_s3 + $0x78] sm:$0xff] }
  0x26   : > { %v298_v35 = vadd.f32 %v297_v27, %v291_v17  ;;  %v305_v40 = vsel %vm257_vm0, %v296_v34, 0.0  ;;  %v253_v41 = vmul.f32 %v245_v25, %v245_v25  ;;  %v254_v42 = vmul.f32 %v246_v26, %v246_v26  ;;  %v600_v34 = vld [vmem:[%s5242_s3 + $0x140] sm:$0xff] }
  0x27   : > { %v304_v44 = vadd.f32 %v303_v36, %v295_v30  ;;  %v262_v45 = vadd.f32 %v252_v38, %v251_v37  ;;  %v259_v46 = vadd.f32 %v258_v33, %v256_v39  ;;  %v2452_v4 = vpack.c.bf16 %v244_v20, %v3208_v12  ;;  %v573_v30 = vld [vmem:[%s5242_s3 + $0x68] sm:$0xff]  ;;  %v587_v33 = vld [vmem:[%s5242_s3 + $0xd8] sm:$0xff]  ;;  %v602_v36 = vld [vmem:[%s5242_s3 + $0x150] sm:$0xff] }
  0x28   : > { %v300_v43 = vadd.f32 %v299_v31, %v298_v35  ;;  %v264_v47 = vsel %vm257_vm0, %v254_v42, 0.0  ;;  %v2456_v5 = vpack.c.bf16 %v246_v26, %v3212_v14  ;;  %v2454_v6 = vpack.c.bf16 %v243_v19, %v3206_v11  ;;  %v576_v26 = vld [vmem:[%s5242_s3 + $0x80] sm:$0xff]  ;;  %v562_v31 = vld [vmem:[%s5242_s3 + $0x10] sm:$0xff]  ;;  %v589_v35 = vld [vmem:[%s5242_s3 + $0xe8] sm:$0xff] }
  0x29   : > { %v306_v48 = vadd.f32 %v305_v40, %v304_v44  ;;  %v263_v49 = vadd.f32 %v262_v45, %v253_v41  ;;  %260 = vadd.xlane.f32.xlu1 %v259_v46  ;;  %v2458_v7 = vpack.c.bf16 %v245_v25, %v3210_v13  ;;  %2453 = vmatprep.subr.bf16.mxu0 %v2452_v4  ;;  %v323_v9 = vadd.s32 8, %v3191_v1  ;;  %v586_v39 = vld [vmem:[%s5242_s3 + $0xd0] sm:$0xff]  ;;  %v599_v40 = vld [vmem:[%s5242_s3 + $0x138] sm:$0xff]  ;;  %v601_v44 = vld [vmem:[%s5242_s3 + $0x148] sm:$0xff] }
  0x2a   : > { %301 = vadd.xlane.f32.xlu0 %v300_v43  ;;  %2457 = vmatprep.subr.bf16.mxu1 %v2456_v5  ;;  %v2460_v25 = vpack.c.bf16 %v574_v23, %v561_v22  ;;  %v2556_v28 = vpack.c.bf16 %v576_v26, %v563_v24  ;;  %v2462_v37 = vpack.c.bf16 %v573_v30, %v560_v29  ;;  %v588_v43 = vld [vmem:[%s5242_s3 + $0xe0] sm:$0xff]  ;;  %v613_v45 = vld [vmem:[%s5242_s3 + $0x1a8] sm:$0xff]  ;;  %v651_v4 = vld [vmem:[%s5242_s3 + $0x2d8] sm:$0xff] }
  0x2b   : > { %v265_v50 = vadd.f32 %v264_v47, %v263_v49  ;;  %2455 = vmatpush1.bf16.msra.mxu0 %v2454_v6  ;;  %2459 = vmatpush1.bf16.msra.mxu1 %v2458_v7  ;;  %v2558_v38 = vpack.c.bf16 %v575_v32, %v562_v31  ;;  %v2464_v41 = vpack.c.bf16 %v600_v34, %v587_v33  ;;  %v626_v47 = vld [vmem:[%s5242_s3 + $0x210] sm:$0xff]  ;;  %v628_v49 = vld [vmem:[%s5242_s3 + $0x220] sm:$0xff]  ;;  %v693_v23 = vld [vmem:[%s5242_s3 + $0x428] sm:$0xff] }
  0x2c   : > { %2461 = vmatprep.subr.bf16.mxu0 %v2460_v25  ;;  %2557 = vmatprep.subr.bf16.mxu1 %v2556_v28  ;;  %v2560_v42 = vpack.c.bf16 %v602_v36, %v589_v35  ;;  %v640_v7 = vld [vmem:[%s5242_s3 + $0x280] sm:$0xff]  ;;  %v706_v24 = vld [vmem:[%s5242_s3 + $0x490] sm:$0xff]  ;;  %v703_v28 = vld [vmem:[%s5242_s3 + $0x478] sm:$0xff] }
  0x2d   : > { %266 = vadd.xlane.f32.xlu1 %v265_v50  ;;  %v2466_v50 = vpack.c.bf16 %v599_v40, %v586_v39  ;;  %v704_v22 = vld [vmem:[%s5242_s3 + $0x480] sm:$0xff]  ;;  %v2576_v30 = vpack.c.bf16 %v706_v24, %v693_v23  ;;  %v705_v32 = vld [vmem:[%s5242_s3 + $0x488] sm:$0xff]  ;;  %v730_v34 = vld [vmem:[%s5242_s3 + $0x550] sm:$0xff] }
  0x2e   : > { %307 = vadd.xlane.f32.xlu0 %v306_v48  ;;  %v615_v48 = vld [vmem:[%s5242_s3 + $0x1b8] sm:$0xff]  ;;  %v692_v31 = vld [vmem:[%s5242_s3 + $0x420] sm:$0xff]  ;;  %v717_v33 = vld [vmem:[%s5242_s3 + $0x4e8] sm:$0xff] }
  0x2f   : > { %v719_v35 = vld [vmem:[%s5242_s3 + $0x4f8] sm:$0xff]  ;;  %v732_v36 = vld [vmem:[%s5242_s3 + $0x560] sm:$0xff]  ;;  %v729_v40 = vld [vmem:[%s5242_s3 + $0x548] sm:$0xff] }
  0x30   : > { %v716_v39 = vld [vmem:[%s5242_s3 + $0x4e0] sm:$0xff] }
  0x31   : > { %v836_v23 = vld [vmem:[%s5242_s3 + $0x8a0] sm:$0xff] }
  0xb6   : > { %v261_v52 = vpop.xlane.xlu1 %260 }
  0xb7   : > { %v302_v51 = vpop.xlane.xlu0 %301 }
  0xb8   : > { %v309_v53 = vmul.f32 2.0, %v302_v51  ;;  %v2562_v51 = vpack.c.bf16 %v601_v44, %v588_v43  ;;  %v718_v43 = vld [vmem:[%s5242_s3 + $0x4f0] sm:$0xff]  ;;  %v731_v44 = vld [vmem:[%s5242_s3 + $0x558] sm:$0xff] }
  0xba   : > { %v267_v56 = vpop.xlane.xlu1 %266  ;;  %v311_v57 = vsub.f32 %v261_v52, %v309_v53  ;;  %v612_v52 = vld [vmem:[%s5242_s3 + $0x1a0] sm:$0xff]  ;;  %v625_v53 = vld [vmem:[%s5242_s3 + $0x208] sm:$0xff] }
  0xbb   : > { %v308_v54 = vpop.xlane.xlu0 %307 }
  0xbc   : > { %v310_v55 = vmul.f32 2.0, %v308_v54  ;;  %v2468_v54 = vpack.c.bf16 %v626_v47, %v613_v45  ;;  %v743_v45 = vld [vmem:[%s5242_s3 + $0x5b8] sm:$0xff]  ;;  %v745_v47 = vld [vmem:[%s5242_s3 + $0x5c8] sm:$0xff] }
  0xbe   : > { %v312_v58 = vsub.f32 %v267_v56, %v310_v55  ;;  %v2564_v55 = vpack.c.bf16 %v628_v49, %v615_v48  ;;  %v614_v56 = vld [vmem:[%s5242_s3 + $0x1b0] sm:$0xff]  ;;  %v2486_v49 = vpack.c.bf16 %v729_v40, %v716_v39  ;;  %v859_v39 = vld [vmem:[%s5242_s3 + $0x958] sm:$0xff] }
  0xbf   : > { %v758_v48 = vld [vmem:[%s5242_s3 + $0x630] sm:$0xff] }
  0xc0   : > { %v313_v59 = vmin.f32 %v311_v57, %v312_v58 }
  0xc2   : > { %v314_v60 = vrot.slane %v313_v59, 4 }
  0xc4   : > { %v315_v61 = vmin.f32 %v313_v59, %v314_v60  ;;  %v652_v59 = vld [vmem:[%s5242_s3 + $0x2e0] sm:$0xff]  ;;  %v641_v60 = vld [vmem:[%s5242_s3 + $0x288] sm:$0xff] }
  0xc6   : > { %v316_v63 = vrot.slane %v315_v61, 2 }
  0xc8   : > { %v317_v2 = vmin.f32 %v315_v61, %v316_v63  ;;  %v654_v61 = vld [vmem:[%s5242_s3 + $0x2f0] sm:$0xff]  ;;  %v2470_v63 = vpack.c.bf16 %v625_v53, %v612_v52  ;;  %v755_v52 = vld [vmem:[%s5242_s3 + $0x618] sm:$0xff] }
  0xc9   : > { %v2568_v6 = vpack.c.bf16 %v654_v61, %v641_v60  ;;  %v784_v60 = vld [vmem:[%s5242_s3 + $0x700] sm:$0xff] }
  0xca   : > { %v318_v3 = vrot.slane %v317_v2, 1 }
  0xcc   : > { %v319_v8 = vmin.f32 %v317_v2, %v318_v3  ;;  %v638_v3 = vld [vmem:[%s5242_s3 + $0x270] sm:$0xff] }
  0xce   : > { %3105 = vpush %v319_v8  ;;  %v653_v8 = vld [vmem:[%s5242_s3 + $0x2e8] sm:$0xff] }
  0xff   : > { %s3106_s8 = spop %3105 }
 0x100   : > { %v324_v10 = vstv %s3106_s8 }
 0x101   : > { %vm325_vm1 = vcmp.eq.f32.partialorder %v311_v57, %v324_v10  ;;  %vm326_vm2 = vcmp.eq.f32.partialorder %v312_v58, %v324_v10  ;;  %v627_v57 = vld [vmem:[%s5242_s3 + $0x218] sm:$0xff]  ;;  %v678_v10 = vld [vmem:[%s5242_s3 + $0x3b0] sm:$0xff] }
 0x102   : > { %v327_v12 = vsel %vm325_vm1, %v3191_v1, 16  ;;  %v328_v15 = vsel %vm326_vm2, %v323_v9, 16  ;;  %v639_v58 = vld [vmem:[%s5242_s3 + $0x278] sm:$0xff]  ;;  %v2566_v2 = vpack.c.bf16 %v627_v57, %v614_v56  ;;  %v757_v56 = vld [vmem:[%s5242_s3 + $0x628] sm:$0xff] }
 0x103   : > { %vm329_vm3 = vcmp.lt.s32.totalorder %v327_v12, %v328_v15  ;;  %v2472_v5 = vpack.c.bf16 %v652_v59, %v639_v58  ;;  %v769_v57 = vld [vmem:[%s5242_s3 + $0x688] sm:$0xff]  ;;  %v782_v58 = vld [vmem:[%s5242_s3 + $0x6f0] sm:$0xff]  ;;  %v771_v59 = vld [vmem:[%s5242_s3 + $0x698] sm:$0xff] }
 0x104   : > { %v330_v14 = vsel %vm329_vm3, %v327_v12, %v328_v15  ;;  %v667_v12 = vld [vmem:[%s5242_s3 + $0x358] sm:$0xff]  ;;  %v680_v15 = vld [vmem:[%s5242_s3 + $0x3c0] sm:$0xff] }
 0x105   : > { %v331_v11 = vrot.slane %v330_v14, 4 }
 0x107   : > { %vm332_vm4 = vcmp.lt.s32.totalorder %v330_v14, %v331_v11 }
 0x108   : > { %v333_v13 = vsel %vm332_vm4, %v330_v14, %v331_v11  ;;  %v2474_v14 = vpack.c.bf16 %v651_v4, %v638_v3  ;;  %v2570_v11 = vpack.c.bf16 %v653_v8, %v640_v7  ;;  %v781_v3 = vld [vmem:[%s5242_s3 + $0x6e8] sm:$0xff]  ;;  %v2492_v4 = vpack.c.bf16 %v782_v58, %v769_v57  ;;  %v783_v7 = vld [vmem:[%s5242_s3 + $0x6f8] sm:$0xff]  ;;  %v912_v57 = vld [vmem:[%s5242_s3 + $0xb00] sm:$0xff] }
 0x109   : > { %v334_v16 = vrot.slane %v333_v13, 2  ;;  %v795_v8 = vld [vmem:[%s5242_s3 + $0x758] sm:$0xff]  ;;  %v901_v58 = vld [vmem:[%s5242_s3 + $0xaa8] sm:$0xff] }
 0x10b   : > { %vm335_vm5 = vcmp.lt.s32.totalorder %v333_v13, %v334_v16 }
 0x10c   : > { %v336_v17 = vsel %vm335_vm5, %v333_v13, %v334_v16  ;;  %v664_v13 = vld [vmem:[%s5242_s3 + $0x340] sm:$0xff]  ;;  %v677_v16 = vld [vmem:[%s5242_s3 + $0x3a8] sm:$0xff] }
 0x10d   : > { %v337_v18 = vrot.slane %v336_v17, 1  ;;  %v2478_v25 = vpack.c.bf16 %v677_v16, %v664_v13  ;;  %v807_v13 = vld [vmem:[%s5242_s3 + $0x7b8] sm:$0xff] }
 0x10f   : > { %vm338_vm6 = vcmp.lt.s32.totalorder %v336_v17, %v337_v18 }
 0x110   : > { %v339_v19 = vsel %vm338_vm6, %v336_v17, %v337_v18  ;;  %v2572_v18 = vpack.c.bf16 %v680_v15, %v667_v12  ;;  %v810_v12 = vld [vmem:[%s5242_s3 + $0x7d0] sm:$0xff] }
 0x111   : > { %3107 = vpush %v339_v19  ;;  %v666_v19 = vld [vmem:[%s5242_s3 + $0x350] sm:$0xff] }
 0x142   : > { %s3108_s9 = spop %3107 }
 0x143   : > { %v341_v20 = vstv %s3108_s9 }
 0x144   : > { %vm342_vm7 = vcmp.eq.s32.totalorder %v3191_v1, %v341_v20  ;;  %vm343_vm8 = vcmp.eq.s32.totalorder %v323_v9, %v341_v20  ;;  %v665_v9 = vld [vmem:[%s5242_s3 + $0x348] sm:$0xff]  ;;  %v679_v20 = vld [vmem:[%s5242_s3 + $0x3b8] sm:$0xff] }
 0x145   : > { %v2403_v21 = vsel %vm342_vm7, 1.0, %v3144_v62  ;;  %v2404_v27 = vsel %vm343_vm8, 1.0, %v3144_v62  ;;  %v2476_v17 = vpack.c.bf16 %v678_v10, %v665_v9  ;;  %v2574_v26 = vpack.c.bf16 %v679_v20, %v666_v19  ;;  %v808_v9 = vld [vmem:[%s5242_s3 + $0x7c0] sm:$0xff]  ;;  %v797_v10 = vld [vmem:[%s5242_s3 + $0x768] sm:$0xff] }
 0x146   : > { %348 = vxpose.xlu0.b32.start [1/2] (short) (narrow) %v2403_v21, 8  ;;  %v691_v21 = vld [vmem:[%s5242_s3 + $0x418] sm:$0xff]  ;;  %v2496_v16 = vpack.c.bf16 %v808_v9, %v795_v8  ;;  %v809_v19 = vld [vmem:[%s5242_s3 + $0x7c8] sm:$0xff]  ;;  %v938_v8 = vld [vmem:[%s5242_s3 + $0xbd0] sm:$0xff] }
 0x147   : > { %v2480_v29 = vpack.c.bf16 %v704_v22, %v691_v21  ;;  %v821_v20 = vld [vmem:[%s5242_s3 + $0x828] sm:$0xff]  ;;  %v834_v21 = vld [vmem:[%s5242_s3 + $0x890] sm:$0xff]  ;;  %v823_v22 = vld [vmem:[%s5242_s3 + $0x838] sm:$0xff] }
 0x148   : > { %v927_v9 = vld [vmem:[%s5242_s3 + $0xb78] sm:$0xff] }
 0x14a   : > { %349 = vxpose.xlu0.b32.end [2/2] (short) (narrow) %v2404_v27, 8  ;;  %v690_v27 = vld [vmem:[%s5242_s3 + $0x410] sm:$0xff] }
 0x1c6   : > { %v364_v46 = vpop.trf.xlu0 }
 0x1c7   : > { %2405 = vmatmul.mubr.msk.f32.vlgmr.msra.gmra.mrb[0].mxu0 %vm380_vm9, %v364_v46  ;;  %2406 = vmatmul.mubr.msk.f32.vlgmr.msra.gmra.mrb[0].mxu1 %vm380_vm9, %v364_v46  ;;  %v756_v46 = vld [vmem:[%s5242_s3 + $0x620] sm:$0xff] }
 0x1c8   : > { %2463 = vmatpush1.bf16.msra.mxu0 %v2462_v37  ;;  %2559 = vmatpush1.bf16.msra.mxu1 %v2558_v38  ;;  %v2482_v37 = vpack.c.bf16 %v703_v28, %v690_v27  ;;  %v2578_v38 = vpack.c.bf16 %v705_v32, %v692_v31  ;;  %v2488_v53 = vpack.c.bf16 %v756_v46, %v743_v45  ;;  %v833_v27 = vld [vmem:[%s5242_s3 + $0x888] sm:$0xff]  ;;  %v835_v31 = vld [vmem:[%s5242_s3 + $0x898] sm:$0xff]  ;;  %v886_v45 = vld [vmem:[%s5242_s3 + $0xa30] sm:$0xff] }
 0x1c9   : > { %2465 = vmatprep.subr.bf16.mxu0 %v2464_v41  ;;  %2561 = vmatprep.subr.bf16.mxu1 %v2560_v42  ;;  %v2484_v41 = vpack.c.bf16 %v730_v34, %v717_v33  ;;  %v2580_v42 = vpack.c.bf16 %v732_v36, %v719_v35  ;;  %v2500_v28 = vpack.c.bf16 %v834_v21, %v821_v20  ;;  %v847_v32 = vld [vmem:[%s5242_s3 + $0x8f8] sm:$0xff]  ;;  %v860_v33 = vld [vmem:[%s5242_s3 + $0x960] sm:$0xff]  ;;  %v849_v34 = vld [vmem:[%s5242_s3 + $0x908] sm:$0xff] }
 0x1ca   : > { %v862_v35 = vld [vmem:[%s5242_s3 + $0x970] sm:$0xff]  ;;  %v2504_v40 = vpack.c.bf16 %v860_v33, %v847_v32  ;;  %v875_v46 = vld [vmem:[%s5242_s3 + $0x9d8] sm:$0xff]  ;;  %v964_v20 = vld [vmem:[%s5242_s3 + $0xca0] sm:$0xff] }
 0x1cb   : > { %v953_v21 = vld [vmem:[%s5242_s3 + $0xc48] sm:$0xff] }
 0x1cc   : > { %2467 = vmatpush1.bf16.msra.mxu0 %v2466_v50  ;;  %2563 = vmatpush1.bf16.msra.mxu1 %v2562_v51  ;;  %v2582_v50 = vpack.c.bf16 %v731_v44, %v718_v43  ;;  %v742_v51 = vld [vmem:[%s5242_s3 + $0x5b0] sm:$0xff]  ;;  %v861_v43 = vld [vmem:[%s5242_s3 + $0x968] sm:$0xff] }
 0x1cd   : > { %2469 = vmatprep.subr.bf16.mxu0 %v2468_v54  ;;  %2565 = vmatprep.subr.bf16.mxu1 %v2564_v55  ;;  %v2584_v54 = vpack.c.bf16 %v758_v48, %v745_v47  ;;  %v744_v55 = vld [vmem:[%s5242_s3 + $0x5c0] sm:$0xff]  ;;  %v2490_v61 = vpack.c.bf16 %v755_v52, %v742_v51  ;;  %v873_v44 = vld [vmem:[%s5242_s3 + $0x9c8] sm:$0xff] }
 0x1ce   : > { %v888_v47 = vld [vmem:[%s5242_s3 + $0xa40] sm:$0xff]  ;;  %v885_v51 = vld [vmem:[%s5242_s3 + $0xa28] sm:$0xff]  ;;  %v2508_v52 = vpack.c.bf16 %v886_v45, %v873_v44  ;;  %v978_v44 = vld [vmem:[%s5242_s3 + $0xd10] sm:$0xff] }
 0x1cf   : > { %v977_v33 = vld [vmem:[%s5242_s3 + $0xd08] sm:$0xff]  ;;  %v991_v45 = vld [vmem:[%s5242_s3 + $0xd78] sm:$0xff] }
 0x1d0   : > { %2471 = vmatpush1.bf16.msra.mxu0 %v2470_v63  ;;  %2567 = vmatpush1.bf16.msra.mxu1 %v2566_v2  ;;  %v2586_v63 = vpack.c.bf16 %v757_v56, %v744_v55  ;;  %v768_v2 = vld [vmem:[%s5242_s3 + $0x680] sm:$0xff]  ;;  %v887_v55 = vld [vmem:[%s5242_s3 + $0xa38] sm:$0xff] }
 0x1d1   : > { %2473 = vmatprep.subr.bf16.mxu0 %v2472_v5  ;;  %2569 = vmatprep.subr.bf16.mxu1 %v2568_v6  ;;  %v2588_v5 = vpack.c.bf16 %v784_v60, %v771_v59  ;;  %v770_v6 = vld [vmem:[%s5242_s3 + $0x690] sm:$0xff]  ;;  %v2494_v15 = vpack.c.bf16 %v781_v3, %v768_v2  ;;  %v899_v56 = vld [vmem:[%s5242_s3 + $0xa98] sm:$0xff] }
 0x1d2   : > { %v914_v59 = vld [vmem:[%s5242_s3 + $0xb10] sm:$0xff]  ;;  %v911_v2 = vld [vmem:[%s5242_s3 + $0xaf8] sm:$0xff]  ;;  %v2512_v3 = vpack.c.bf16 %v912_v57, %v899_v56 }
 0x1d3   : > { %v1015_v56 = vld [vmem:[%s5242_s3 + $0xe38] sm:$0xff] }
 0x1d4   : > { %2475 = vmatpush1.bf16.msra.mxu0 %v2474_v14  ;;  %2571 = vmatpush1.bf16.msra.mxu1 %v2570_v11  ;;  %v2590_v14 = vpack.c.bf16 %v783_v7, %v770_v6  ;;  %v794_v11 = vld [vmem:[%s5242_s3 + $0x750] sm:$0xff]  ;;  %v913_v6 = vld [vmem:[%s5242_s3 + $0xb08] sm:$0xff] }
 0x1d5   : > { %2477 = vmatprep.subr.bf16.mxu0 %v2476_v17  ;;  %2573 = vmatprep.subr.bf16.mxu1 %v2572_v18  ;;  %v2592_v17 = vpack.c.bf16 %v810_v12, %v797_v10  ;;  %v796_v18 = vld [vmem:[%s5242_s3 + $0x760] sm:$0xff]  ;;  %v2498_v24 = vpack.c.bf16 %v807_v13, %v794_v11  ;;  %v925_v7 = vld [vmem:[%s5242_s3 + $0xb68] sm:$0xff] }
 0x1d6   : > { %v940_v10 = vld [vmem:[%s5242_s3 + $0xbe0] sm:$0xff]  ;;  %v937_v11 = vld [vmem:[%s5242_s3 + $0xbc8] sm:$0xff]  ;;  %v2516_v13 = vpack.c.bf16 %v938_v8, %v925_v7 }
 0x1d8   : > { %2479 = vmatpush1.bf16.msra.mxu0 %v2478_v25  ;;  %2575 = vmatpush1.bf16.msra.mxu1 %v2574_v26  ;;  %v2594_v25 = vpack.c.bf16 %v809_v19, %v796_v18  ;;  %v820_v26 = vld [vmem:[%s5242_s3 + $0x820] sm:$0xff]  ;;  %v939_v18 = vld [vmem:[%s5242_s3 + $0xbd8] sm:$0xff] }
 0x1d9   : > { %2481 = vmatprep.subr.bf16.mxu0 %v2480_v29  ;;  %2577 = vmatprep.subr.bf16.mxu1 %v2576_v30  ;;  %v2596_v29 = vpack.c.bf16 %v836_v23, %v823_v22  ;;  %v822_v30 = vld [vmem:[%s5242_s3 + $0x830] sm:$0xff]  ;;  %v2502_v36 = vpack.c.bf16 %v833_v27, %v820_v26  ;;  %v951_v19 = vld [vmem:[%s5242_s3 + $0xc38] sm:$0xff] }
 0x1da   : > { %v966_v22 = vld [vmem:[%s5242_s3 + $0xcb0] sm:$0xff]  ;;  %v2520_v26 = vpack.c.bf16 %v964_v20, %v951_v19  ;;  %v1068_v19 = vld [vmem:[%s5242_s3 + $0xfe0] sm:$0xff]  ;;  %v1057_v20 = vld [vmem:[%s5242_s3 + $0xf88] sm:$0xff] }
 0x1db   : > { %v2616_v27 = vpack.c.bf16 %v966_v22, %v953_v21  ;;  %v1070_v21 = vld [vmem:[%s5242_s3 + $0xff0] sm:$0xff] }
 0x1dc   : > { %2483 = vmatpush1.bf16.msra.mxu0 %v2482_v37  ;;  %2579 = vmatpush1.bf16.msra.mxu1 %v2578_v38  ;;  %v2598_v37 = vpack.c.bf16 %v835_v31, %v822_v30  ;;  %v846_v38 = vld [vmem:[%s5242_s3 + $0x8f0] sm:$0xff]  ;;  %v965_v30 = vld [vmem:[%s5242_s3 + $0xca8] sm:$0xff] }
 0x1dd   : > { %2485 = vmatprep.subr.bf16.mxu0 %v2484_v41  ;;  %2581 = vmatprep.subr.bf16.mxu1 %v2580_v42  ;;  %v2600_v41 = vpack.c.bf16 %v862_v35, %v849_v34  ;;  %v848_v42 = vld [vmem:[%s5242_s3 + $0x900] sm:$0xff]  ;;  %v2506_v48 = vpack.c.bf16 %v859_v39, %v846_v38  ;;  %v990_v34 = vld [vmem:[%s5242_s3 + $0xd70] sm:$0xff]  ;;  %v979_v35 = vld [vmem:[%s5242_s3 + $0xd18] sm:$0xff]  ;;  %v3145_v39 = vmov 1966171168  }
 0x1e0   : > { %2487 = vmatpush1.bf16.msra.mxu0 %v2486_v49  ;;  %2583 = vmatpush1.bf16.msra.mxu1 %v2582_v50  ;;  %v2602_v49 = vpack.c.bf16 %v861_v43, %v848_v42  ;;  %v872_v50 = vld [vmem:[%s5242_s3 + $0x9c0] sm:$0xff]  ;;  %v989_v43 = vld [vmem:[%s5242_s3 + $0xd68] sm:$0xff] }
 0x1e1   : > { %2489 = vmatprep.subr.bf16.mxu0 %v2488_v53  ;;  %2585 = vmatprep.subr.bf16.mxu1 %v2584_v54  ;;  %v2604_v53 = vpack.c.bf16 %v888_v47, %v875_v46  ;;  %v874_v54 = vld [vmem:[%s5242_s3 + $0x9d0] sm:$0xff]  ;;  %v2510_v60 = vpack.c.bf16 %v885_v51, %v872_v50  ;;  %v976_v42 = vld [vmem:[%s5242_s3 + $0xd00] sm:$0xff]  ;;  %v1003_v46 = vld [vmem:[%s5242_s3 + $0xdd8] sm:$0xff] }
 0x1e2   : > { %v1016_v47 = vld [vmem:[%s5242_s3 + $0xe40] sm:$0xff] }
 0x1e4   : > { %2491 = vmatpush1.bf16.msra.mxu0 %v2490_v61  ;;  %2587 = vmatpush1.bf16.msra.mxu1 %v2586_v63  ;;  %v2606_v61 = vpack.c.bf16 %v887_v55, %v874_v54  ;;  %v898_v63 = vld [vmem:[%s5242_s3 + $0xa90] sm:$0xff]  ;;  %v2622_v54 = vpack.c.bf16 %v991_v45, %v978_v44  ;;  %v1120_v44 = vld [vmem:[%s5242_s3 + $0x1180] sm:$0xff]  ;;  %v1109_v45 = vld [vmem:[%s5242_s3 + $0x1128] sm:$0xff] }
 0x1e5   : > { %2493 = vmatprep.subr.bf16.mxu0 %v2492_v4  ;;  %2589 = vmatprep.subr.bf16.mxu1 %v2588_v5  ;;  %v2608_v4 = vpack.c.bf16 %v914_v59, %v901_v58  ;;  %v900_v5 = vld [vmem:[%s5242_s3 + $0xaa0] sm:$0xff]  ;;  %v2514_v12 = vpack.c.bf16 %v911_v2, %v898_v63  ;;  %v1002_v55 = vld [vmem:[%s5242_s3 + $0xdd0] sm:$0xff] }
 0x1e6   : > { %v1004_v59 = vld [vmem:[%s5242_s3 + $0xde0] sm:$0xff]  ;;  %v2530_v7 = vpack.c.bf16 %v1015_v56, %v1002_v55 }
 0x1e7   : > { %v1108_v56 = vld [vmem:[%s5242_s3 + $0x1120] sm:$0xff] }
 0x1e8   : > { %2495 = vmatpush1.bf16.msra.mxu0 %v2494_v15  ;;  %2591 = vmatpush1.bf16.msra.mxu1 %v2590_v14  ;;  %v2610_v15 = vpack.c.bf16 %v913_v6, %v900_v5  ;;  %v924_v14 = vld [vmem:[%s5242_s3 + $0xb60] sm:$0xff]  ;;  %v1031_v5 = vld [vmem:[%s5242_s3 + $0xeb8] sm:$0xff] }
 0x1e9   : > { %2497 = vmatprep.subr.bf16.mxu0 %v2496_v16  ;;  %2593 = vmatprep.subr.bf16.mxu1 %v2592_v17  ;;  %v2612_v16 = vpack.c.bf16 %v940_v10, %v927_v9  ;;  %v926_v17 = vld [vmem:[%s5242_s3 + $0xb70] sm:$0xff]  ;;  %v2518_v23 = vpack.c.bf16 %v937_v11, %v924_v14  ;;  %v1044_v6 = vld [vmem:[%s5242_s3 + $0xf20] sm:$0xff] }
 0x1ea   : > { %v2628_v11 = vpack.c.bf16 %v1044_v6, %v1031_v5  ;;  %v1145_v5 = vld [vmem:[%s5242_s3 + $0x1248] sm:$0xff] }
 0x1ec   : > { %2499 = vmatpush1.bf16.msra.mxu0 %v2498_v24  ;;  %2595 = vmatpush1.bf16.msra.mxu1 %v2594_v25  ;;  %v2614_v24 = vpack.c.bf16 %v939_v18, %v926_v17  ;;  %v950_v25 = vld [vmem:[%s5242_s3 + $0xc30] sm:$0xff]  ;;  %v1055_v17 = vld [vmem:[%s5242_s3 + $0xf78] sm:$0xff] }
 0x1ed   : > { %2501 = vmatprep.subr.bf16.mxu0 %v2500_v28  ;;  %2597 = vmatprep.subr.bf16.mxu1 %v2596_v29  ;;  %v963_v28 = vld [vmem:[%s5242_s3 + $0xc98] sm:$0xff]  ;;  %v952_v29 = vld [vmem:[%s5242_s3 + $0xc40] sm:$0xff] }
 0x1ee   : > { %v2522_v31 = vpack.c.bf16 %v963_v28, %v950_v25  ;;  %v2618_v32 = vpack.c.bf16 %v965_v30, %v952_v29  ;;  %v1054_v25 = vld [vmem:[%s5242_s3 + $0xf70] sm:$0xff]  ;;  %v2632_v28 = vpack.c.bf16 %v1070_v21, %v1057_v20  ;;  %v1056_v29 = vld [vmem:[%s5242_s3 + $0xf80] sm:$0xff]  ;;  %v1069_v30 = vld [vmem:[%s5242_s3 + $0xfe8] sm:$0xff] }
 0x1ef   : > { %v1160_v20 = vld [vmem:[%s5242_s3 + $0x12c0] sm:$0xff]  ;;  %v1173_v21 = vld [vmem:[%s5242_s3 + $0x1328] sm:$0xff] }
 0x1f0   : > { %2503 = vmatpush1.bf16.msra.mxu0 %v2502_v36  ;;  %2599 = vmatpush1.bf16.msra.mxu1 %v2598_v37  ;;  %v2524_v36 = vpack.c.bf16 %v990_v34, %v977_v33  ;;  %v992_v37 = vld [vmem:[%s5242_s3 + $0xd80] sm:$0xff]  ;;  %v1083_v33 = vld [vmem:[%s5242_s3 + $0x1058] sm:$0xff] }
 0x1f1   : > { %2505 = vmatprep.subr.bf16.mxu0 %v2504_v40  ;;  %2601 = vmatprep.subr.bf16.mxu1 %v2600_v41  ;;  %v2620_v38 = vpack.c.bf16 %v992_v37, %v979_v35  ;;  %v533_v40 = vunpack.c.l.s4 %v3145_v39  ;;  %v1096_v34 = vld [vmem:[%s5242_s3 + $0x10c0] sm:$0xff] }
 0x1f2   : > { %v1080_v37 = vld [vmem:[%s5242_s3 + $0x1040] sm:$0xff] }
 0x1f3   : > { %v534_v41 = vunpack.c.0.s8 %v533_v40  ;;  %v2636_v40 = vpack.c.bf16 %v1096_v34, %v1083_v33  ;;  %v577_v33 = vld [vmem:[%s5242_s3 + $0x88] sm:$0xff]  ;;  %v566_v34 = vld [vmem:[%s5242_s3 + $0x30] sm:$0xff] }
 0x1f4   : > { %2507 = vmatpush1.bf16.msra.mxu0 %v2506_v48  ;;  %2603 = vmatpush1.bf16.msra.mxu1 %v2602_v49  ;;  %v1005_v48 = vld [vmem:[%s5242_s3 + $0xde8] sm:$0xff]  ;;  %v1018_v49 = vld [vmem:[%s5242_s3 + $0xe50] sm:$0xff] }
 0x1f5   : > { %2509 = vmatprep.subr.bf16.mxu0 %v2508_v52  ;;  %2605 = vmatprep.subr.bf16.mxu1 %v2604_v53  ;;  %v3662_v50 = vsub.s32 %v534_v41, %v3191_v1  ;;  %v2526_v53 = vpack.c.bf16 %v989_v43, %v976_v42  ;;  %v2528_v1 = vpack.c.bf16 %v1016_v47, %v1003_v46  ;;  %v1082_v41 = vld [vmem:[%s5242_s3 + $0x1050] sm:$0xff]  ;;  %v1095_v42 = vld [vmem:[%s5242_s3 + $0x10b8] sm:$0xff] }
 0x1f6   : > { %v1107_v43 = vld [vmem:[%s5242_s3 + $0x1118] sm:$0xff]  ;;  %v1122_v46 = vld [vmem:[%s5242_s3 + $0x1190] sm:$0xff] }
 0x1f7   : > { %v2640_v55 = vpack.c.bf16 %v1122_v46, %v1109_v45  ;;  %v603_v45 = vld [vmem:[%s5242_s3 + $0x158] sm:$0xff]  ;;  %v592_v46 = vld [vmem:[%s5242_s3 + $0x100] sm:$0xff] }
 0x1f8   : > { %2511 = vmatpush1.bf16.msra.mxu0 %v2510_v60  ;;  %2607 = vmatpush1.bf16.msra.mxu1 %v2606_v61  ;;  %v1017_v60 = vld [vmem:[%s5242_s3 + $0xe48] sm:$0xff] }
 0x1f9   : > { %2513 = vmatprep.subr.bf16.mxu0 %v2512_v3  ;;  %2609 = vmatprep.subr.bf16.mxu1 %v2608_v4  ;;  %v1029_v61 = vld [vmem:[%s5242_s3 + $0xea8] sm:$0xff]  ;;  %v2624_v3 = vpack.c.bf16 %v1018_v49, %v1005_v48  ;;  %v1042_v4 = vld [vmem:[%s5242_s3 + $0xf10] sm:$0xff]  ;;  %v2626_v10 = vpack.c.bf16 %v1017_v60, %v1004_v59  ;;  %v2638_v48 = vpack.c.bf16 %v1095_v42, %v1082_v41 }
 0x1fa   : > { %v2532_v14 = vpack.c.bf16 %v1042_v4, %v1029_v61  ;;  %v1106_v49 = vld [vmem:[%s5242_s3 + $0x1110] sm:$0xff]  ;;  %v1133_v59 = vld [vmem:[%s5242_s3 + $0x11e8] sm:$0xff]  ;;  %v1135_v61 = vld [vmem:[%s5242_s3 + $0x11f8] sm:$0xff] }
 0x1fb   : > { %v1146_v60 = vld [vmem:[%s5242_s3 + $0x1250] sm:$0xff]  ;;  %v1132_v4 = vld [vmem:[%s5242_s3 + $0x11e0] sm:$0xff] }
 0x1fc   : > { %2515 = vmatpush1.bf16.msra.mxu0 %v2514_v12  ;;  %2611 = vmatpush1.bf16.msra.mxu1 %v2610_v15  ;;  %v1028_v12 = vld [vmem:[%s5242_s3 + $0xea0] sm:$0xff]  ;;  %v1041_v15 = vld [vmem:[%s5242_s3 + $0xf08] sm:$0xff]  ;;  %v2548_v6 = vpack.c.bf16 %v1146_v60, %v1133_v59  ;;  %v606_v41 = vld [vmem:[%s5242_s3 + $0x170] sm:$0xff] }
 0x1fd   : > { %2517 = vmatprep.subr.bf16.mxu0 %v2516_v13  ;;  %2613 = vmatprep.subr.bf16.mxu1 %v2612_v16  ;;  %v1030_v13 = vld [vmem:[%s5242_s3 + $0xeb0] sm:$0xff]  ;;  %v1043_v16 = vld [vmem:[%s5242_s3 + $0xf18] sm:$0xff] }
 0x200   : > { %2519 = vmatpush1.bf16.msra.mxu0 %v2518_v23  ;;  %2615 = vmatpush1.bf16.msra.mxu1 %v2614_v24  ;;  %v2534_v23 = vpack.c.bf16 %v1041_v15, %v1028_v12  ;;  %v2630_v24 = vpack.c.bf16 %v1043_v16, %v1030_v13  ;;  %v1172_v12 = vld [vmem:[%s5242_s3 + $0x1320] sm:$0xff]  ;;  %v1161_v15 = vld [vmem:[%s5242_s3 + $0x12c8] sm:$0xff]  ;;  %v1158_v16 = vld [vmem:[%s5242_s3 + $0x12b0] sm:$0xff] }
 0x201   : > { %2521 = vmatprep.subr.bf16.mxu0 %v2520_v26  ;;  %2617 = vmatprep.subr.bf16.mxu1 %v2616_v27  ;;  %v1067_v26 = vld [vmem:[%s5242_s3 + $0xfd8] sm:$0xff]  ;;  %v2536_v27 = vpack.c.bf16 %v1068_v19, %v1055_v17 }
 0x202   : > { %v2538_v35 = vpack.c.bf16 %v1067_v26, %v1054_v25  ;;  %v1171_v19 = vld [vmem:[%s5242_s3 + $0x1318] sm:$0xff]  ;;  %v565_v26 = vld [vmem:[%s5242_s3 + $0x28] sm:$0xff] }
 0x203   : > { %v1187_v25 = vld [vmem:[%s5242_s3 + $0x1398] sm:$0xff] }
 0x204   : > { %2523 = vmatpush1.bf16.msra.mxu0 %v2522_v31  ;;  %2619 = vmatpush1.bf16.msra.mxu1 %v2618_v32  ;;  %v1081_v31 = vld [vmem:[%s5242_s3 + $0x1048] sm:$0xff]  ;;  %v1094_v32 = vld [vmem:[%s5242_s3 + $0x10b0] sm:$0xff] }
 0x205   : > { %2525 = vmatprep.subr.bf16.mxu0 %v2524_v36  ;;  %2621 = vmatprep.subr.bf16.mxu1 %v2620_v38  ;;  %v2634_v36 = vpack.c.bf16 %v1069_v30, %v1056_v29  ;;  %v1093_v38 = vld [vmem:[%s5242_s3 + $0x10a8] sm:$0xff]  ;;  %v2540_v39 = vpack.c.bf16 %v1094_v32, %v1081_v31  ;;  %v567_v29 = vld [vmem:[%s5242_s3 + $0x38] sm:$0xff]  ;;  %v580_v30 = vld [vmem:[%s5242_s3 + $0xa0] sm:$0xff] }
 0x206   : > { %v2542_v47 = vpack.c.bf16 %v1093_v38, %v1080_v37  ;;  %v1186_v31 = vld [vmem:[%s5242_s3 + $0x1390] sm:$0xff]  ;;  %v564_v32 = vld [vmem:[%s5242_s3 + $0x20] sm:$0xff]  ;;  %v2748_v38 = vpack.c.bf16 %v580_v30, %v567_v29  ;;  %v695_v29 = vld [vmem:[%s5242_s3 + $0x438] sm:$0xff] }
 0x207   : > { %v2654_v42 = vpack.c.bf16 %v577_v33, %v564_v32  ;;  %v708_v30 = vld [vmem:[%s5242_s3 + $0x4a0] sm:$0xff]  ;;  %v710_v32 = vld [vmem:[%s5242_s3 + $0x4b0] sm:$0xff] }
 0x29a   : > { %v3664_v51 = vpop.f32.mrb[0].mxu0  ;;  %v3666_v52 = vpop.f32.mrb[0].mxu1 }
 0x29b   : > { %v3674_v57 = vpop.f32.mrb[1].mxu0  ;;  %v3676_v58 = vpop.f32.mrb[1].mxu1 }
 0x29c   : > { %v530_v63 = vcombine.low %v3664_v51, %v3674_v57  ;;  %v531_v2 = vcombine.low %v3666_v52, %v3676_v58  ;;  %1263 = vmatprep.mubr.f32.mxu0 %v3674_v57  ;;  %1405 = vmatprep.mubr.f32.mxu1 %v3674_v57 }
 0x29d   : > { %1264 = vmatmul.mubr.f32.vlgmr.msra.gmra.mrb[2].mxu0 %v3664_v51  ;;  %1406 = vmatmul.mubr.f32.vlgmr.msra.gmra.mrb[2].mxu1 %v3664_v51 }
 0x29e   : > { %v538_v8 = vrot.slane %v530_v63, %v3662_v50  ;;  %v545_v9 = vrot.slane %v531_v2, %v3662_v50  ;;  %2527 = vmatpush1.bf16.msra.mxu0 %v2526_v53  ;;  %2623 = vmatpush1.bf16.msra.mxu1 %v2622_v54  ;;  %v1119_v53 = vld [vmem:[%s5242_s3 + $0x1178] sm:$0xff]  ;;  %v2544_v54 = vpack.c.bf16 %v1120_v44, %v1107_v43  ;;  %v1148_v63 = vld [vmem:[%s5242_s3 + $0x1260] sm:$0xff]  ;;  %v590_v44 = vld [vmem:[%s5242_s3 + $0xf0] sm:$0xff] }
 0x29f   : > { %2407 = vmatprep.mubr.msk.f32.mxu0 %vm257_vm0, %v3676_v58  ;;  %2408 = vmatprep.mubr.msk.f32.mxu1 %vm257_vm0, %v3676_v58  ;;  %v2546_v2 = vpack.c.bf16 %v1119_v53, %v1106_v49  ;;  %v605_v49 = vld [vmem:[%s5242_s3 + $0x168] sm:$0xff] }
 0x2a0   : > { %v546_v18 = vcombine.low %v538_v8, %v545_v9  ;;  %2529 = vmatprep.subr.bf16.mxu0 %v2528_v1  ;;  %2625 = vmatprep.subr.bf16.mxu1 %v2624_v3  ;;  %v1121_v1 = vld [vmem:[%s5242_s3 + $0x1188] sm:$0xff]  ;;  %v1134_v8 = vld [vmem:[%s5242_s3 + $0x11f0] sm:$0xff]  ;;  %v1147_v9 = vld [vmem:[%s5242_s3 + $0x1258] sm:$0xff]  ;;  %v2754_v59 = vpack.c.bf16 %v605_v49, %v592_v46 }
 0x2a1   : > { %v2642_v3 = vpack.c.bf16 %v1121_v1, %v1108_v56  ;;  %v2646_v13 = vpack.c.bf16 %v1147_v9, %v1134_v8  ;;  %v617_v53 = vld [vmem:[%s5242_s3 + $0x1c8] sm:$0xff]  ;;  %v632_v56 = vld [vmem:[%s5242_s3 + $0x240] sm:$0xff]  ;;  %v2658_v1 = vpack.c.bf16 %v603_v45, %v590_v44  ;;  %v658_v8 = vld [vmem:[%s5242_s3 + $0x310] sm:$0xff] }
 0x2a2   : > { %v553_v22 = vrot.slane %v546_v18, %v3662_v50  ;;  %2531 = vmatpush1.bf16.msra.mxu0 %v2530_v7  ;;  %2627 = vmatpush1.bf16.msra.mxu1 %v2626_v10  ;;  %v2644_v7 = vpack.c.bf16 %v1148_v63, %v1135_v61  ;;  %v1159_v10 = vld [vmem:[%s5242_s3 + $0x12b8] sm:$0xff]  ;;  %v616_v61 = vld [vmem:[%s5242_s3 + $0x1c0] sm:$0xff]  ;;  %v629_v63 = vld [vmem:[%s5242_s3 + $0x228] sm:$0xff] }
 0x2a3   : > { %2533 = vmatprep.subr.bf16.mxu0 %v2532_v14  ;;  %2629 = vmatprep.subr.bf16.mxu1 %v2628_v11  ;;  %v1174_v14 = vld [vmem:[%s5242_s3 + $0x1330] sm:$0xff]  ;;  %v2550_v11 = vpack.c.bf16 %v1145_v5, %v1132_v4  ;;  %v2552_v17 = vpack.c.bf16 %v1172_v12, %v1159_v10  ;;  %v631_v4 = vld [vmem:[%s5242_s3 + $0x238] sm:$0xff]  ;;  %v2662_v9 = vpack.c.bf16 %v629_v63, %v616_v61  ;;  %v736_v44 = vld [vmem:[%s5242_s3 + $0x580] sm:$0xff] }
 0x2a4   : > { %559 = vst.msk [vmem:[%s233_s27] sm:$0xf] %vm557_vm10, %v553_v22  ;;  %v2648_v18 = vpack.c.bf16 %v1174_v14, %v1161_v15  ;;  %v2554_v22 = vpack.c.bf16 %v1171_v19, %v1158_v16  ;;  %v643_v5 = vld [vmem:[%s5242_s3 + $0x298] sm:$0xff]  ;;  %v642_v15 = vld [vmem:[%s5242_s3 + $0x290] sm:$0xff]  ;;  %v657_v16 = vld [vmem:[%s5242_s3 + $0x308] sm:$0xff] }
 0x2a5   : > { %v655_v14 = vld [vmem:[%s5242_s3 + $0x2f8] sm:$0xff]  ;;  %v733_v49 = vld [vmem:[%s5242_s3 + $0x568] sm:$0xff] }
 0x2a6   : > { %2535 = vmatpush1.bf16.msra.mxu0 %v2534_v23  ;;  %2631 = vmatpush1.bf16.msra.mxu1 %v2630_v24  ;;  %v2650_v23 = vpack.c.bf16 %v1173_v21, %v1160_v20  ;;  %v1185_v24 = vld [vmem:[%s5242_s3 + $0x1388] sm:$0xff]  ;;  %v671_v19 = vld [vmem:[%s5242_s3 + $0x378] sm:$0xff]  ;;  %v684_v20 = vld [vmem:[%s5242_s3 + $0x3e0] sm:$0xff]  ;;  %v2666_v21 = vpack.c.bf16 %v655_v14, %v642_v15 }
 0x2a7   : > { %2537 = vmatprep.subr.bf16.mxu0 %v2536_v27  ;;  %2633 = vmatprep.subr.bf16.mxu1 %v2632_v28  ;;  %v1184_v27 = vld [vmem:[%s5242_s3 + $0x1380] sm:$0xff]  ;;  %v578_v28 = vld [vmem:[%s5242_s3 + $0x90] sm:$0xff] }
 0x2a8   : > { %v2652_v37 = vpack.c.bf16 %v578_v28, %v565_v26  ;;  %v670_v26 = vld [vmem:[%s5242_s3 + $0x370] sm:$0xff]  ;;  %v683_v28 = vld [vmem:[%s5242_s3 + $0x3d8] sm:$0xff] }
 0x2aa   : > { %2539 = vmatpush1.bf16.msra.mxu0 %v2538_v35  ;;  %2635 = vmatpush1.bf16.msra.mxu1 %v2634_v36  ;;  %v579_v35 = vld [vmem:[%s5242_s3 + $0x98] sm:$0xff] }
 0x2ab   : > { %2541 = vmatprep.subr.bf16.mxu0 %v2540_v39  ;;  %2637 = vmatprep.subr.bf16.mxu1 %v2636_v40  ;;  %v591_v36 = vld [vmem:[%s5242_s3 + $0xf8] sm:$0xff]  ;;  %v604_v39 = vld [vmem:[%s5242_s3 + $0x160] sm:$0xff]  ;;  %v593_v40 = vld [vmem:[%s5242_s3 + $0x108] sm:$0xff]  ;;  %v2750_v43 = vpack.c.bf16 %v579_v35, %v566_v34  ;;  %v2766_v34 = vpack.c.bf16 %v683_v28, %v670_v26  ;;  %v2672_v35 = vpack.c.bf16 %v708_v30, %v695_v29 }
 0x2ac   : > { %v811_v28 = vld [vmem:[%s5242_s3 + $0x7d8] sm:$0xff]  ;;  %v800_v29 = vld [vmem:[%s5242_s3 + $0x780] sm:$0xff] }
 0x2ae   : > { %2543 = vmatpush1.bf16.msra.mxu0 %v2542_v47  ;;  %2639 = vmatpush1.bf16.msra.mxu1 %v2638_v48  ;;  %v2656_v47 = vpack.c.bf16 %v604_v39, %v591_v36  ;;  %v2752_v48 = vpack.c.bf16 %v606_v41, %v593_v40  ;;  %v694_v36 = vld [vmem:[%s5242_s3 + $0x430] sm:$0xff]  ;;  %v709_v40 = vld [vmem:[%s5242_s3 + $0x4a8] sm:$0xff] }
 0x2af   : > { %2545 = vmatprep.subr.bf16.mxu0 %v2544_v54  ;;  %2641 = vmatprep.subr.bf16.mxu1 %v2640_v55  ;;  %v630_v54 = vld [vmem:[%s5242_s3 + $0x230] sm:$0xff]  ;;  %v619_v55 = vld [vmem:[%s5242_s3 + $0x1d8] sm:$0xff]  ;;  %v721_v41 = vld [vmem:[%s5242_s3 + $0x508] sm:$0xff] }
 0x2b0   : > { %v2660_v60 = vpack.c.bf16 %v630_v54, %v617_v53  ;;  %v722_v53 = vld [vmem:[%s5242_s3 + $0x510] sm:$0xff] }
 0x2b2   : > { %2547 = vmatpush1.bf16.msra.mxu0 %v2546_v2  ;;  %2643 = vmatpush1.bf16.msra.mxu1 %v2642_v3  ;;  %v618_v2 = vld [vmem:[%s5242_s3 + $0x1d0] sm:$0xff]  ;;  %v2756_v3 = vpack.c.bf16 %v632_v56, %v619_v55  ;;  %v735_v55 = vld [vmem:[%s5242_s3 + $0x578] sm:$0xff] }
 0x2b3   : > { %2549 = vmatprep.subr.bf16.mxu0 %v2548_v6  ;;  %2645 = vmatprep.subr.bf16.mxu1 %v2644_v7  ;;  %v656_v6 = vld [vmem:[%s5242_s3 + $0x300] sm:$0xff]  ;;  %v645_v7 = vld [vmem:[%s5242_s3 + $0x2a8] sm:$0xff]  ;;  %v2758_v10 = vpack.c.bf16 %v631_v4, %v618_v2  ;;  %v747_v56 = vld [vmem:[%s5242_s3 + $0x5d8] sm:$0xff]  ;;  %v2774_v63 = vpack.c.bf16 %v735_v55, %v722_v53 }
 0x2b4   : > { %v2664_v12 = vpack.c.bf16 %v656_v6, %v643_v5  ;;  %v759_v4 = vld [vmem:[%s5242_s3 + $0x638] sm:$0xff]  ;;  %v748_v5 = vld [vmem:[%s5242_s3 + $0x5e0] sm:$0xff] }
 0x2b5   : > { %v863_v55 = vld [vmem:[%s5242_s3 + $0x978] sm:$0xff] }
 0x2b6   : > { %2551 = vmatpush1.bf16.msra.mxu0 %v2550_v11  ;;  %2647 = vmatpush1.bf16.msra.mxu1 %v2646_v13  ;;  %v644_v11 = vld [vmem:[%s5242_s3 + $0x2a0] sm:$0xff]  ;;  %v2760_v13 = vpack.c.bf16 %v658_v8, %v645_v7  ;;  %v761_v7 = vld [vmem:[%s5242_s3 + $0x648] sm:$0xff] }
 0x2b7   : > { %2553 = vmatprep.subr.bf16.mxu0 %v2552_v17  ;;  %2649 = vmatprep.subr.bf16.mxu1 %v2648_v18  ;;  %v669_v17 = vld [vmem:[%s5242_s3 + $0x368] sm:$0xff]  ;;  %v682_v18 = vld [vmem:[%s5242_s3 + $0x3d0] sm:$0xff]  ;;  %v2778_v14 = vpack.c.bf16 %v761_v7, %v748_v5 }
 0x2b8   : > { %v773_v8 = vld [vmem:[%s5242_s3 + $0x6a8] sm:$0xff] }
 0x2b9   : > { %v889_v7 = vld [vmem:[%s5242_s3 + $0xa48] sm:$0xff] }
 0x2ba   : > { %2555 = vmatpush1.bf16.msra.mxu0 %v2554_v22  ;;  %2651 = vmatpush1.bf16.msra.mxu1 %v2650_v23  ;;  %v2762_v22 = vpack.c.bf16 %v657_v16, %v644_v11  ;;  %v2668_v23 = vpack.c.bf16 %v682_v18, %v669_v17  ;;  %v785_v16 = vld [vmem:[%s5242_s3 + $0x708] sm:$0xff]  ;;  %v774_v17 = vld [vmem:[%s5242_s3 + $0x6b0] sm:$0xff] }
 0x2bb   : > { %1302 = vmatprep.subr.mxu0 %v1185_v24  ;;  %1444 = vmatprep.subr.mxu1 %v1187_v25  ;;  %v668_v24 = vld [vmem:[%s5242_s3 + $0x360] sm:$0xff]  ;;  %v681_v25 = vld [vmem:[%s5242_s3 + $0x3c8] sm:$0xff] }
 0x2bc   : > { %v2670_v33 = vpack.c.bf16 %v681_v25, %v668_v24 }
 0x2be   : > { %1303 = vmatpush1.msra.mxu0 %v1184_v27  ;;  %1445 = vmatpush1.msra.mxu1 %v1186_v31  ;;  %v2764_v27 = vpack.c.bf16 %v684_v20, %v671_v19  ;;  %v697_v31 = vld [vmem:[%s5242_s3 + $0x448] sm:$0xff]  ;;  %v787_v19 = vld [vmem:[%s5242_s3 + $0x718] sm:$0xff] }
 0x2bf   : > { %1335 = vmatmul.mubr.f32.vlgmr.msra.gmra.mrb[2].mxu0 %v3666_v52  ;;  %1477 = vmatmul.mubr.f32.vlgmr.msra.gmra.mrb[2].mxu1 %v3666_v52  ;;  %v2768_v39 = vpack.c.bf16 %v710_v32, %v697_v31  ;;  %v799_v20 = vld [vmem:[%s5242_s3 + $0x778] sm:$0xff]  ;;  %v2782_v25 = vpack.c.bf16 %v787_v19, %v774_v17  ;;  %v813_v31 = vld [vmem:[%s5242_s3 + $0x7e8] sm:$0xff] }
 0x2c0   : > { %2653 = vmatprep.subr.bf16.mxu0 %v2652_v37  ;;  %2749 = vmatprep.subr.bf16.mxu1 %v2748_v38  ;;  %v707_v37 = vld [vmem:[%s5242_s3 + $0x498] sm:$0xff]  ;;  %v696_v38 = vld [vmem:[%s5242_s3 + $0x440] sm:$0xff]  ;;  %v825_v32 = vld [vmem:[%s5242_s3 + $0x848] sm:$0xff] }
 0x2c1   : > { %2655 = vmatpush1.bf16.msra.mxu0 %v2654_v42  ;;  %1547 = vmatprep.mubr.f32.mxu0 %v3674_v57  ;;  %v734_v42 = vld [vmem:[%s5242_s3 + $0x570] sm:$0xff]  ;;  %v2674_v45 = vpack.c.bf16 %v707_v37, %v694_v36  ;;  %v2770_v46 = vpack.c.bf16 %v709_v40, %v696_v38  ;;  %v2786_v37 = vpack.c.bf16 %v813_v31, %v800_v29  ;;  %v837_v40 = vld [vmem:[%s5242_s3 + $0x8a8] sm:$0xff]  ;;  %v915_v19 = vld [vmem:[%s5242_s3 + $0xb18] sm:$0xff] }
 0x2c2   : > { %2751 = vmatpush1.bf16.msra.mxu1 %v2750_v43  ;;  %1689 = vmatprep.mubr.f32.mxu1 %v3674_v57  ;;  %v723_v43 = vld [vmem:[%s5242_s3 + $0x518] sm:$0xff]  ;;  %v941_v31 = vld [vmem:[%s5242_s3 + $0xbe8] sm:$0xff] }
 0x2c3   : > { %2657 = vmatprep.subr.bf16.mxu0 %v2656_v47  ;;  %2753 = vmatprep.subr.bf16.mxu1 %v2752_v48  ;;  %v2676_v47 = vpack.c.bf16 %v734_v42, %v721_v41  ;;  %v720_v48 = vld [vmem:[%s5242_s3 + $0x500] sm:$0xff]  ;;  %v2772_v54 = vpack.c.bf16 %v736_v44, %v723_v43  ;;  %v826_v41 = vld [vmem:[%s5242_s3 + $0x850] sm:$0xff]  ;;  %v839_v43 = vld [vmem:[%s5242_s3 + $0x8b8] sm:$0xff] }
 0x2c4   : > { %v2678_v61 = vpack.c.bf16 %v733_v49, %v720_v48  ;;  %v851_v44 = vld [vmem:[%s5242_s3 + $0x918] sm:$0xff]  ;;  %v2790_v49 = vpack.c.bf16 %v839_v43, %v826_v41 }
 0x2c5   : > { %2659 = vmatpush1.bf16.msra.mxu0 %v2658_v1  ;;  %v760_v1 = vld [vmem:[%s5242_s3 + $0x640] sm:$0xff]  ;;  %v967_v43 = vld [vmem:[%s5242_s3 + $0xcb8] sm:$0xff] }
 0x2c6   : > { %2755 = vmatpush1.bf16.msra.mxu1 %v2754_v59  ;;  %2661 = vmatprep.subr.bf16.mxu0 %v2660_v60  ;;  %v749_v59 = vld [vmem:[%s5242_s3 + $0x5e8] sm:$0xff]  ;;  %v762_v60 = vld [vmem:[%s5242_s3 + $0x650] sm:$0xff]  ;;  %v2680_v2 = vpack.c.bf16 %v760_v1, %v747_v56  ;;  %v852_v56 = vld [vmem:[%s5242_s3 + $0x920] sm:$0xff] }
 0x2c7   : > { %2757 = vmatprep.subr.bf16.mxu1 %v2756_v3  ;;  %v746_v3 = vld [vmem:[%s5242_s3 + $0x5d0] sm:$0xff]  ;;  %v2776_v6 = vpack.c.bf16 %v762_v60, %v749_v59  ;;  %v865_v59 = vld [vmem:[%s5242_s3 + $0x988] sm:$0xff] }
 0x2c8   : > { %v2682_v15 = vpack.c.bf16 %v759_v4, %v746_v3  ;;  %v877_v60 = vld [vmem:[%s5242_s3 + $0x9e8] sm:$0xff]  ;;  %v2794_v4 = vpack.c.bf16 %v865_v59, %v852_v56 }
 0x2c9   : > { %2663 = vmatpush1.bf16.msra.mxu0 %v2662_v9  ;;  %v786_v9 = vld [vmem:[%s5242_s3 + $0x710] sm:$0xff]  ;;  %v993_v59 = vld [vmem:[%s5242_s3 + $0xd88] sm:$0xff] }
 0x2ca   : > { %2759 = vmatpush1.bf16.msra.mxu1 %v2758_v10  ;;  %2665 = vmatprep.subr.bf16.mxu0 %v2664_v12  ;;  %v775_v10 = vld [vmem:[%s5242_s3 + $0x6b8] sm:$0xff]  ;;  %v788_v12 = vld [vmem:[%s5242_s3 + $0x720] sm:$0xff]  ;;  %v2684_v11 = vpack.c.bf16 %v786_v9, %v773_v8  ;;  %v878_v8 = vld [vmem:[%s5242_s3 + $0x9f0] sm:$0xff] }
 0x2cb   : > { %2761 = vmatprep.subr.bf16.mxu1 %v2760_v13  ;;  %v772_v13 = vld [vmem:[%s5242_s3 + $0x6a0] sm:$0xff]  ;;  %v2780_v18 = vpack.c.bf16 %v788_v12, %v775_v10  ;;  %v891_v10 = vld [vmem:[%s5242_s3 + $0xa58] sm:$0xff] }
 0x2cc   : > { %v2686_v24 = vpack.c.bf16 %v785_v16, %v772_v13  ;;  %v903_v12 = vld [vmem:[%s5242_s3 + $0xab8] sm:$0xff]  ;;  %v2798_v16 = vpack.c.bf16 %v891_v10, %v878_v8  ;;  %v1006_v8 = vld [vmem:[%s5242_s3 + $0xdf0] sm:$0xff]  ;;  %v1008_v10 = vld [vmem:[%s5242_s3 + $0xe00] sm:$0xff] }
 0x2cd   : > { %2667 = vmatpush1.bf16.msra.mxu0 %v2666_v21  ;;  %v812_v21 = vld [vmem:[%s5242_s3 + $0x7e0] sm:$0xff] }
 0x2ce   : > { %2763 = vmatpush1.bf16.msra.mxu1 %v2762_v22  ;;  %2669 = vmatprep.subr.bf16.mxu0 %v2668_v23  ;;  %v801_v22 = vld [vmem:[%s5242_s3 + $0x788] sm:$0xff]  ;;  %v814_v23 = vld [vmem:[%s5242_s3 + $0x7f0] sm:$0xff]  ;;  %v2688_v26 = vpack.c.bf16 %v812_v21, %v799_v20  ;;  %v904_v20 = vld [vmem:[%s5242_s3 + $0xac0] sm:$0xff] }
 0x2cf   : > { %2765 = vmatprep.subr.bf16.mxu1 %v2764_v27  ;;  %v798_v27 = vld [vmem:[%s5242_s3 + $0x770] sm:$0xff]  ;;  %v2784_v30 = vpack.c.bf16 %v814_v23, %v801_v22  ;;  %v917_v22 = vld [vmem:[%s5242_s3 + $0xb28] sm:$0xff] }
 0x2d0   : > { %v2690_v36 = vpack.c.bf16 %v811_v28, %v798_v27  ;;  %v929_v23 = vld [vmem:[%s5242_s3 + $0xb88] sm:$0xff]  ;;  %v2802_v28 = vpack.c.bf16 %v917_v22, %v904_v20 }
 0x2d1   : > { %2671 = vmatpush1.bf16.msra.mxu0 %v2670_v33  ;;  %v838_v33 = vld [vmem:[%s5242_s3 + $0x8b0] sm:$0xff]  ;;  %v1045_v22 = vld [vmem:[%s5242_s3 + $0xf28] sm:$0xff] }
 0x2d2   : > { %2767 = vmatpush1.bf16.msra.mxu1 %v2766_v34  ;;  %2673 = vmatprep.subr.bf16.mxu0 %v2672_v35  ;;  %v827_v34 = vld [vmem:[%s5242_s3 + $0x858] sm:$0xff]  ;;  %v840_v35 = vld [vmem:[%s5242_s3 + $0x8c0] sm:$0xff]  ;;  %v2692_v38 = vpack.c.bf16 %v838_v33, %v825_v32  ;;  %v930_v32 = vld [vmem:[%s5242_s3 + $0xb90] sm:$0xff] }
 0x2d3   : > { %2769 = vmatprep.subr.bf16.mxu1 %v2768_v39  ;;  %v824_v39 = vld [vmem:[%s5242_s3 + $0x840] sm:$0xff]  ;;  %v2788_v42 = vpack.c.bf16 %v840_v35, %v827_v34  ;;  %v943_v34 = vld [vmem:[%s5242_s3 + $0xbf8] sm:$0xff] }
 0x2d4   : > { %v2694_v48 = vpack.c.bf16 %v837_v40, %v824_v39  ;;  %v955_v35 = vld [vmem:[%s5242_s3 + $0xc58] sm:$0xff]  ;;  %v2806_v40 = vpack.c.bf16 %v943_v34, %v930_v32 }
 0x2d5   : > { %2675 = vmatpush1.bf16.msra.mxu0 %v2674_v45  ;;  %v864_v45 = vld [vmem:[%s5242_s3 + $0x980] sm:$0xff]  ;;  %v1071_v34 = vld [vmem:[%s5242_s3 + $0xff8] sm:$0xff] }
 0x2d6   : > { %2771 = vmatpush1.bf16.msra.mxu1 %v2770_v46  ;;  %2677 = vmatprep.subr.bf16.mxu0 %v2676_v47  ;;  %v853_v46 = vld [vmem:[%s5242_s3 + $0x928] sm:$0xff]  ;;  %v866_v47 = vld [vmem:[%s5242_s3 + $0x990] sm:$0xff]  ;;  %v2696_v53 = vpack.c.bf16 %v864_v45, %v851_v44  ;;  %v956_v44 = vld [vmem:[%s5242_s3 + $0xc60] sm:$0xff] }
 0x2d7   : > { %2773 = vmatprep.subr.bf16.mxu1 %v2772_v54  ;;  %v850_v54 = vld [vmem:[%s5242_s3 + $0x910] sm:$0xff]  ;;  %v2792_v1 = vpack.c.bf16 %v866_v47, %v853_v46  ;;  %v969_v46 = vld [vmem:[%s5242_s3 + $0xcc8] sm:$0xff] }
 0x2d8   : > { %v2698_v3 = vpack.c.bf16 %v863_v55, %v850_v54  ;;  %v981_v47 = vld [vmem:[%s5242_s3 + $0xd28] sm:$0xff]  ;;  %v2810_v55 = vpack.c.bf16 %v969_v46, %v956_v44 }
 0x2d9   : > { %2679 = vmatpush1.bf16.msra.mxu0 %v2678_v61  ;;  %v890_v61 = vld [vmem:[%s5242_s3 + $0xa50] sm:$0xff]  ;;  %v1097_v46 = vld [vmem:[%s5242_s3 + $0x10c8] sm:$0xff] }
 0x2da   : > { %2775 = vmatpush1.bf16.msra.mxu1 %v2774_v63  ;;  %2681 = vmatprep.subr.bf16.mxu0 %v2680_v2  ;;  %v879_v63 = vld [vmem:[%s5242_s3 + $0x9f8] sm:$0xff]  ;;  %v892_v2 = vld [vmem:[%s5242_s3 + $0xa60] sm:$0xff]  ;;  %v2700_v5 = vpack.c.bf16 %v890_v61, %v877_v60  ;;  %v982_v61 = vld [vmem:[%s5242_s3 + $0xd30] sm:$0xff] }
 0x2db   : > { %2777 = vmatprep.subr.bf16.mxu1 %v2776_v6  ;;  %v876_v6 = vld [vmem:[%s5242_s3 + $0x9e0] sm:$0xff]  ;;  %v2796_v9 = vpack.c.bf16 %v892_v2, %v879_v63  ;;  %v995_v63 = vld [vmem:[%s5242_s3 + $0xd98] sm:$0xff] }
 0x2dc   : > { %v2702_v13 = vpack.c.bf16 %v889_v7, %v876_v6  ;;  %v1007_v2 = vld [vmem:[%s5242_s3 + $0xdf8] sm:$0xff]  ;;  %v1022_v6 = vld [vmem:[%s5242_s3 + $0xe70] sm:$0xff]  ;;  %v2814_v7 = vpack.c.bf16 %v995_v63, %v982_v61 }
 0x2dd   : > { %2683 = vmatpush1.bf16.msra.mxu0 %v2682_v15  ;;  %v916_v15 = vld [vmem:[%s5242_s3 + $0xb20] sm:$0xff]  ;;  %v1110_v61 = vld [vmem:[%s5242_s3 + $0x1130] sm:$0xff]  ;;  %v1123_v63 = vld [vmem:[%s5242_s3 + $0x1198] sm:$0xff] }
 0x2de   : > { %2779 = vmatpush1.bf16.msra.mxu1 %v2778_v14  ;;  %2685 = vmatprep.subr.bf16.mxu0 %v2684_v11  ;;  %v905_v14 = vld [vmem:[%s5242_s3 + $0xac8] sm:$0xff]  ;;  %v918_v11 = vld [vmem:[%s5242_s3 + $0xb30] sm:$0xff]  ;;  %v2704_v17 = vpack.c.bf16 %v916_v15, %v903_v12 }
 0x2df   : > { %2781 = vmatprep.subr.bf16.mxu1 %v2780_v18  ;;  %v902_v18 = vld [vmem:[%s5242_s3 + $0xab0] sm:$0xff]  ;;  %v2800_v21 = vpack.c.bf16 %v918_v11, %v905_v14  ;;  %v1021_v15 = vld [vmem:[%s5242_s3 + $0xe68] sm:$0xff] }
 0x2e0   : > { %v2706_v27 = vpack.c.bf16 %v915_v19, %v902_v18  ;;  %v1033_v14 = vld [vmem:[%s5242_s3 + $0xec8] sm:$0xff]  ;;  %v1046_v11 = vld [vmem:[%s5242_s3 + $0xf30] sm:$0xff]  ;;  %v2818_v19 = vpack.c.bf16 %v1021_v15, %v1008_v10  ;;  %v1136_v15 = vld [vmem:[%s5242_s3 + $0x1200] sm:$0xff] }
 0x2e1   : > { %2687 = vmatpush1.bf16.msra.mxu0 %v2686_v24  ;;  %v942_v24 = vld [vmem:[%s5242_s3 + $0xbf0] sm:$0xff]  ;;  %v2724_v20 = vpack.c.bf16 %v1046_v11, %v1033_v14  ;;  %v1149_v14 = vld [vmem:[%s5242_s3 + $0x1268] sm:$0xff] }
 0x2e2   : > { %2783 = vmatpush1.bf16.msra.mxu1 %v2782_v25  ;;  %2689 = vmatprep.subr.bf16.mxu0 %v2688_v26  ;;  %v931_v25 = vld [vmem:[%s5242_s3 + $0xb98] sm:$0xff]  ;;  %v944_v26 = vld [vmem:[%s5242_s3 + $0xc00] sm:$0xff]  ;;  %v2708_v29 = vpack.c.bf16 %v942_v24, %v929_v23  ;;  %v1034_v23 = vld [vmem:[%s5242_s3 + $0xed0] sm:$0xff] }
 0x2e3   : > { %2785 = vmatprep.subr.bf16.mxu1 %v2784_v30  ;;  %v928_v30 = vld [vmem:[%s5242_s3 + $0xb80] sm:$0xff]  ;;  %v2804_v33 = vpack.c.bf16 %v944_v26, %v931_v25  ;;  %v1047_v25 = vld [vmem:[%s5242_s3 + $0xf38] sm:$0xff]  ;;  %v1138_v11 = vld [vmem:[%s5242_s3 + $0x1210] sm:$0xff] }
 0x2e4   : > { %v2710_v39 = vpack.c.bf16 %v941_v31, %v928_v30  ;;  %v1059_v26 = vld [vmem:[%s5242_s3 + $0xf98] sm:$0xff]  ;;  %v2822_v31 = vpack.c.bf16 %v1047_v25, %v1034_v23 }
 0x2e5   : > { %2691 = vmatpush1.bf16.msra.mxu0 %v2690_v36  ;;  %v968_v36 = vld [vmem:[%s5242_s3 + $0xcc0] sm:$0xff]  ;;  %v1175_v25 = vld [vmem:[%s5242_s3 + $0x1338] sm:$0xff] }
 0x2e6   : > { %2787 = vmatpush1.bf16.msra.mxu1 %v2786_v37  ;;  %2693 = vmatprep.subr.bf16.mxu0 %v2692_v38  ;;  %v957_v37 = vld [vmem:[%s5242_s3 + $0xc68] sm:$0xff]  ;;  %v970_v38 = vld [vmem:[%s5242_s3 + $0xcd0] sm:$0xff]  ;;  %v2712_v41 = vpack.c.bf16 %v968_v36, %v955_v35  ;;  %v1060_v35 = vld [vmem:[%s5242_s3 + $0xfa0] sm:$0xff] }
 0x2e7   : > { %2789 = vmatprep.subr.bf16.mxu1 %v2788_v42  ;;  %v954_v42 = vld [vmem:[%s5242_s3 + $0xc50] sm:$0xff]  ;;  %v2808_v45 = vpack.c.bf16 %v970_v38, %v957_v37  ;;  %v1073_v37 = vld [vmem:[%s5242_s3 + $0x1008] sm:$0xff] }
 0x2e8   : > { %v2714_v54 = vpack.c.bf16 %v967_v43, %v954_v42  ;;  %v1085_v38 = vld [vmem:[%s5242_s3 + $0x1068] sm:$0xff]  ;;  %v2826_v43 = vpack.c.bf16 %v1073_v37, %v1060_v35  ;;  %v571_v35 = vld [vmem:[%s5242_s3 + $0x58] sm:$0xff]  ;;  %v568_v37 = vld [vmem:[%s5242_s3 + $0x40] sm:$0xff] }
 0x2e9   : > { %2695 = vmatpush1.bf16.msra.mxu0 %v2694_v48  ;;  %v994_v48 = vld [vmem:[%s5242_s3 + $0xd90] sm:$0xff] }
 0x2ea   : > { %2791 = vmatpush1.bf16.msra.mxu1 %v2790_v49  ;;  %2697 = vmatprep.subr.bf16.mxu0 %v2696_v53  ;;  %v983_v49 = vld [vmem:[%s5242_s3 + $0xd38] sm:$0xff]  ;;  %v996_v53 = vld [vmem:[%s5242_s3 + $0xda0] sm:$0xff]  ;;  %v2716_v56 = vpack.c.bf16 %v994_v48, %v981_v47  ;;  %v1086_v47 = vld [vmem:[%s5242_s3 + $0x1070] sm:$0xff] }
 0x2eb   : > { %2793 = vmatprep.subr.bf16.mxu1 %v2792_v1  ;;  %v980_v1 = vld [vmem:[%s5242_s3 + $0xd20] sm:$0xff]  ;;  %v2812_v60 = vpack.c.bf16 %v996_v53, %v983_v49  ;;  %v1099_v49 = vld [vmem:[%s5242_s3 + $0x10d8] sm:$0xff] }
 0x2ec   : > { %v1111_v53 = vld [vmem:[%s5242_s3 + $0x1138] sm:$0xff] }
 0x2ed   : > { %2699 = vmatpush1.bf16.msra.mxu0 %v2698_v3  ;;  %v1020_v3 = vld [vmem:[%s5242_s3 + $0xe60] sm:$0xff] }
 0x2ee   : > { %2795 = vmatpush1.bf16.msra.mxu1 %v2794_v4  ;;  %2701 = vmatprep.subr.bf16.mxu0 %v2700_v5  ;;  %v2718_v4 = vpack.c.bf16 %v993_v59, %v980_v1  ;;  %v1009_v5 = vld [vmem:[%s5242_s3 + $0xe08] sm:$0xff]  ;;  %v2720_v12 = vpack.c.bf16 %v1020_v3, %v1007_v2  ;;  %v2830_v59 = vpack.c.bf16 %v1099_v49, %v1086_v47  ;;  %v1112_v2 = vld [vmem:[%s5242_s3 + $0x1140] sm:$0xff]  ;;  %v610_v49 = vld [vmem:[%s5242_s3 + $0x190] sm:$0xff] }
 0x2ef   : > { %2797 = vmatprep.subr.bf16.mxu1 %v2796_v9  ;;  %v1019_v9 = vld [vmem:[%s5242_s3 + $0xe58] sm:$0xff] }
 0x2f0   : > { %v2722_v18 = vpack.c.bf16 %v1019_v9, %v1006_v8  ;;  %v1152_v8 = vld [vmem:[%s5242_s3 + $0x1280] sm:$0xff]  ;;  %v2738_v9 = vpack.c.bf16 %v1123_v63, %v1110_v61  ;;  %v634_v61 = vld [vmem:[%s5242_s3 + $0x250] sm:$0xff] }
 0x2f1   : > { %2703 = vmatpush1.bf16.msra.mxu0 %v2702_v13  ;;  %v2816_v13 = vpack.c.bf16 %v1022_v6, %v1009_v5  ;;  %v1137_v5 = vld [vmem:[%s5242_s3 + $0x1208] sm:$0xff]  ;;  %v1150_v6 = vld [vmem:[%s5242_s3 + $0x1270] sm:$0xff] }
 0x2f2   : > { %2799 = vmatpush1.bf16.msra.mxu1 %v2798_v16  ;;  %2705 = vmatprep.subr.bf16.mxu0 %v2704_v17  ;;  %v1035_v16 = vld [vmem:[%s5242_s3 + $0xed8] sm:$0xff]  ;;  %v1048_v17 = vld [vmem:[%s5242_s3 + $0xf40] sm:$0xff] }
 0x2f3   : > { %2801 = vmatprep.subr.bf16.mxu1 %v2800_v21  ;;  %v1032_v21 = vld [vmem:[%s5242_s3 + $0xec0] sm:$0xff]  ;;  %v2820_v24 = vpack.c.bf16 %v1048_v17, %v1035_v16  ;;  %v1151_v16 = vld [vmem:[%s5242_s3 + $0x1278] sm:$0xff] }
 0x2f4   : > { %v2726_v30 = vpack.c.bf16 %v1045_v22, %v1032_v21  ;;  %v1163_v17 = vld [vmem:[%s5242_s3 + $0x12d8] sm:$0xff]  ;;  %v2742_v21 = vpack.c.bf16 %v1149_v14, %v1136_v15  ;;  %v2838_v22 = vpack.c.bf16 %v1151_v16, %v1138_v11  ;;  %v660_v14 = vld [vmem:[%s5242_s3 + $0x320] sm:$0xff]  ;;  %v649_v11 = vld [vmem:[%s5242_s3 + $0x2c8] sm:$0xff] }
 0x2f5   : > { %2707 = vmatpush1.bf16.msra.mxu0 %v2706_v27  ;;  %v1072_v27 = vld [vmem:[%s5242_s3 + $0x1000] sm:$0xff]  ;;  %v647_v15 = vld [vmem:[%s5242_s3 + $0x2b8] sm:$0xff] }
 0x2f6   : > { %2803 = vmatpush1.bf16.msra.mxu1 %v2802_v28  ;;  %2709 = vmatprep.subr.bf16.mxu0 %v2708_v29  ;;  %v1061_v28 = vld [vmem:[%s5242_s3 + $0xfa8] sm:$0xff]  ;;  %v1074_v29 = vld [vmem:[%s5242_s3 + $0x1010] sm:$0xff]  ;;  %v2728_v32 = vpack.c.bf16 %v1072_v27, %v1059_v26  ;;  %v1164_v27 = vld [vmem:[%s5242_s3 + $0x12e0] sm:$0xff] }
 0x2f7   : > { %2805 = vmatprep.subr.bf16.mxu1 %v2804_v33  ;;  %v1058_v33 = vld [vmem:[%s5242_s3 + $0xf90] sm:$0xff]  ;;  %v2824_v36 = vpack.c.bf16 %v1074_v29, %v1061_v28  ;;  %v1177_v28 = vld [vmem:[%s5242_s3 + $0x1348] sm:$0xff] }
 0x2f8   : > { %v2730_v42 = vpack.c.bf16 %v1071_v34, %v1058_v33  ;;  %v569_v33 = vld [vmem:[%s5242_s3 + $0x48] sm:$0xff]  ;;  %v582_v34 = vld [vmem:[%s5242_s3 + $0xb0] sm:$0xff] }
 0x2f9   : > { %2711 = vmatpush1.bf16.msra.mxu0 %v2710_v39  ;;  %v1098_v39 = vld [vmem:[%s5242_s3 + $0x10d0] sm:$0xff] }
 0x2fa   : > { %2807 = vmatpush1.bf16.msra.mxu1 %v2806_v40  ;;  %2713 = vmatprep.subr.bf16.mxu0 %v2712_v41  ;;  %v1087_v40 = vld [vmem:[%s5242_s3 + $0x1078] sm:$0xff]  ;;  %v1100_v41 = vld [vmem:[%s5242_s3 + $0x10e0] sm:$0xff]  ;;  %v2732_v44 = vpack.c.bf16 %v1098_v39, %v1085_v38  ;;  %v581_v38 = vld [vmem:[%s5242_s3 + $0xa8] sm:$0xff] }
 0x2fb   : > { %2809 = vmatprep.subr.bf16.mxu1 %v2808_v45  ;;  %v1084_v45 = vld [vmem:[%s5242_s3 + $0x1060] sm:$0xff]  ;;  %v2828_v48 = vpack.c.bf16 %v1100_v41, %v1087_v40  ;;  %v570_v40 = vld [vmem:[%s5242_s3 + $0x50] sm:$0xff]  ;;  %v583_v41 = vld [vmem:[%s5242_s3 + $0xb8] sm:$0xff]  ;;  %v2846_v47 = vpack.c.bf16 %v581_v38, %v568_v37 }
 0x2fc   : > { %v2734_v1 = vpack.c.bf16 %v1097_v46, %v1084_v45  ;;  %v1188_v39 = vld [vmem:[%s5242_s3 + $0x13a0] sm:$0xff]  ;;  %v701_v38 = vld [vmem:[%s5242_s3 + $0x468] sm:$0xff] }
 0x2fd   : > { %2715 = vmatpush1.bf16.msra.mxu0 %v2714_v54  ;;  %v1124_v54 = vld [vmem:[%s5242_s3 + $0x11a0] sm:$0xff] }
 0x2fe   : > { %2811 = vmatpush1.bf16.msra.mxu1 %v2810_v55  ;;  %2717 = vmatprep.subr.bf16.mxu0 %v2716_v56  ;;  %v1113_v55 = vld [vmem:[%s5242_s3 + $0x1148] sm:$0xff]  ;;  %v1126_v56 = vld [vmem:[%s5242_s3 + $0x11b0] sm:$0xff]  ;;  %v608_v45 = vld [vmem:[%s5242_s3 + $0x180] sm:$0xff] }
 0x2ff   : > { %2813 = vmatprep.subr.bf16.mxu1 %v2812_v60  ;;  %v2736_v60 = vpack.c.bf16 %v1124_v54, %v1111_v53  ;;  %v2832_v3 = vpack.c.bf16 %v1126_v56, %v1113_v55  ;;  %v2942_v53 = vpack.c.bf16 %v583_v41, %v570_v40  ;;  %v594_v54 = vld [vmem:[%s5242_s3 + $0x110] sm:$0xff]  ;;  %v607_v55 = vld [vmem:[%s5242_s3 + $0x178] sm:$0xff]  ;;  %v596_v56 = vld [vmem:[%s5242_s3 + $0x120] sm:$0xff] }
 0x300   : > { %1548 = vmatmul.mubr.f32.vlgmr.msra.gmra.mrb[4].mxu0 %v3664_v51  ;;  %v712_v37 = vld [vmem:[%s5242_s3 + $0x4c0] sm:$0xff] }
 0x301   : > { %1690 = vmatmul.mubr.f32.vlgmr.msra.gmra.mrb[4].mxu1 %v3664_v51  ;;  %2719 = vmatpush1.bf16.msra.mxu0 %v2718_v4  ;;  %v1125_v4 = vld [vmem:[%s5242_s3 + $0x11a8] sm:$0xff] }
 0x302   : > { %2409 = vmatprep.mubr.msk.f32.mxu0 %vm257_vm0, %v3676_v58  ;;  %2815 = vmatpush1.bf16.msra.mxu1 %v2814_v7  ;;  %v1139_v7 = vld [vmem:[%s5242_s3 + $0x1218] sm:$0xff]  ;;  %v2834_v10 = vpack.c.bf16 %v1125_v4, %v1112_v2  ;;  %v2850_v4 = vpack.c.bf16 %v607_v55, %v594_v54  ;;  %v740_v54 = vld [vmem:[%s5242_s3 + $0x5a0] sm:$0xff] }
 0x303   : > { %2410 = vmatprep.mubr.msk.f32.mxu1 %vm257_vm0, %v3676_v58  ;;  %2721 = vmatprep.subr.bf16.mxu0 %v2720_v12  ;;  %v2740_v12 = vpack.c.bf16 %v1150_v6, %v1137_v5  ;;  %v623_v2 = vld [vmem:[%s5242_s3 + $0x1f8] sm:$0xff] }
 0x304   : > { %2817 = vmatprep.subr.bf16.mxu1 %v2816_v13  ;;  %v2836_v13 = vpack.c.bf16 %v1152_v8, %v1139_v7  ;;  %v620_v7 = vld [vmem:[%s5242_s3 + $0x1e0] sm:$0xff]  ;;  %v633_v8 = vld [vmem:[%s5242_s3 + $0x248] sm:$0xff] }
 0x305   : > { %2723 = vmatpush1.bf16.msra.mxu0 %v2722_v18  ;;  %v1176_v18 = vld [vmem:[%s5242_s3 + $0x1340] sm:$0xff]  ;;  %v2854_v16 = vpack.c.bf16 %v633_v8, %v620_v7 }
 0x306   : > { %2819 = vmatpush1.bf16.msra.mxu1 %v2818_v19  ;;  %2725 = vmatprep.subr.bf16.mxu0 %v2724_v20  ;;  %v1165_v19 = vld [vmem:[%s5242_s3 + $0x12e8] sm:$0xff]  ;;  %v1178_v20 = vld [vmem:[%s5242_s3 + $0x1350] sm:$0xff]  ;;  %v2744_v23 = vpack.c.bf16 %v1176_v18, %v1163_v17  ;;  %v2856_v18 = vpack.c.bf16 %v660_v14, %v647_v15  ;;  %v752_v15 = vld [vmem:[%s5242_s3 + $0x600] sm:$0xff] }
 0x307   : > { %2821 = vmatprep.subr.bf16.mxu1 %v2820_v24  ;;  %v1162_v24 = vld [vmem:[%s5242_s3 + $0x12d0] sm:$0xff]  ;;  %v2840_v26 = vpack.c.bf16 %v1178_v20, %v1165_v19  ;;  %v659_v20 = vld [vmem:[%s5242_s3 + $0x318] sm:$0xff] }
 0x308   : > { %v2746_v29 = vpack.c.bf16 %v1175_v25, %v1162_v24  ;;  %v646_v19 = vld [vmem:[%s5242_s3 + $0x2b0] sm:$0xff]  ;;  %v673_v24 = vld [vmem:[%s5242_s3 + $0x388] sm:$0xff] }
 0x309   : > { %2727 = vmatpush1.bf16.msra.mxu0 %v2726_v30  ;;  %v2842_v30 = vpack.c.bf16 %v1177_v28, %v1164_v27  ;;  %v686_v25 = vld [vmem:[%s5242_s3 + $0x3f0] sm:$0xff]  ;;  %v688_v27 = vld [vmem:[%s5242_s3 + $0x400] sm:$0xff]  ;;  %v2858_v28 = vpack.c.bf16 %v659_v20, %v646_v19 }
 0x30a   : > { %2823 = vmatpush1.bf16.msra.mxu1 %v2822_v31  ;;  %2729 = vmatprep.subr.bf16.mxu0 %v2728_v32  ;;  %v1189_v31 = vld [vmem:[%s5242_s3 + $0x13a8] sm:$0xff]  ;;  %v1191_v32 = vld [vmem:[%s5242_s3 + $0x13b8] sm:$0xff] }
 0x30b   : > { %2825 = vmatprep.subr.bf16.mxu1 %v2824_v36  ;;  %v584_v36 = vld [vmem:[%s5242_s3 + $0xc0] sm:$0xff] }
 0x30c   : > { %v2940_v46 = vpack.c.bf16 %v584_v36, %v571_v35  ;;  %v687_v35 = vld [vmem:[%s5242_s3 + $0x3f8] sm:$0xff] }
 0x30d   : > { %2731 = vmatpush1.bf16.msra.mxu0 %v2730_v42  ;;  %v1190_v42 = vld [vmem:[%s5242_s3 + $0x13b0] sm:$0xff]  ;;  %v699_v36 = vld [vmem:[%s5242_s3 + $0x458] sm:$0xff] }
 0x30e   : > { %2827 = vmatpush1.bf16.msra.mxu1 %v2826_v43  ;;  %2733 = vmatprep.subr.bf16.mxu0 %v2732_v44  ;;  %v2844_v43 = vpack.c.bf16 %v582_v34, %v569_v33  ;;  %v595_v44 = vld [vmem:[%s5242_s3 + $0x118] sm:$0xff]  ;;  %v674_v33 = vld [vmem:[%s5242_s3 + $0x390] sm:$0xff] }
 0x30f   : > { %2829 = vmatprep.subr.bf16.mxu1 %v2828_v48  ;;  %v597_v48 = vld [vmem:[%s5242_s3 + $0x128] sm:$0xff]  ;;  %v2958_v41 = vpack.c.bf16 %v687_v35, %v674_v33  ;;  %v815_v35 = vld [vmem:[%s5242_s3 + $0x7f8] sm:$0xff] }
 0x310   : > { %v2944_v63 = vpack.c.bf16 %v610_v49, %v597_v48  ;;  %v725_v48 = vld [vmem:[%s5242_s3 + $0x528] sm:$0xff]  ;;  %v738_v49 = vld [vmem:[%s5242_s3 + $0x590] sm:$0xff] }
 0x311   : > { %2735 = vmatpush1.bf16.msra.mxu0 %v2734_v1  ;;  %v2848_v1 = vpack.c.bf16 %v608_v45, %v595_v44  ;;  %v711_v44 = vld [vmem:[%s5242_s3 + $0x4b8] sm:$0xff]  ;;  %v700_v45 = vld [vmem:[%s5242_s3 + $0x460] sm:$0xff] }
 0x312   : > { %2831 = vmatpush1.bf16.msra.mxu1 %v2830_v59  ;;  %2737 = vmatprep.subr.bf16.mxu0 %v2736_v60  ;;  %v609_v59 = vld [vmem:[%s5242_s3 + $0x188] sm:$0xff] }
 0x313   : > { %2833 = vmatprep.subr.bf16.mxu1 %v2832_v3  ;;  %v621_v60 = vld [vmem:[%s5242_s3 + $0x1e8] sm:$0xff]  ;;  %v636_v3 = vld [vmem:[%s5242_s3 + $0x260] sm:$0xff]  ;;  %v2946_v5 = vpack.c.bf16 %v609_v59, %v596_v56 }
 0x314   : > { %v2852_v6 = vpack.c.bf16 %v634_v61, %v621_v60  ;;  %v724_v59 = vld [vmem:[%s5242_s3 + $0x520] sm:$0xff]  ;;  %v737_v60 = vld [vmem:[%s5242_s3 + $0x588] sm:$0xff]  ;;  %v726_v61 = vld [vmem:[%s5242_s3 + $0x530] sm:$0xff] }
 0x315   : > { %2739 = vmatpush1.bf16.msra.mxu0 %v2738_v9  ;;  %v622_v9 = vld [vmem:[%s5242_s3 + $0x1f0] sm:$0xff]  ;;  %v2870_v7 = vpack.c.bf16 %v737_v60, %v724_v59 }
 0x316   : > { %2835 = vmatpush1.bf16.msra.mxu1 %v2834_v10  ;;  %2741 = vmatprep.subr.bf16.mxu0 %v2740_v12  ;;  %v2948_v10 = vpack.c.bf16 %v636_v3, %v623_v2  ;;  %v635_v12 = vld [vmem:[%s5242_s3 + $0x258] sm:$0xff] }
 0x317   : > { %2837 = vmatprep.subr.bf16.mxu1 %v2836_v13  ;;  %v662_v13 = vld [vmem:[%s5242_s3 + $0x330] sm:$0xff]  ;;  %v2950_v17 = vpack.c.bf16 %v635_v12, %v622_v9  ;;  %v739_v2 = vld [vmem:[%s5242_s3 + $0x598] sm:$0xff] }
 0x318   : > { %v751_v3 = vld [vmem:[%s5242_s3 + $0x5f8] sm:$0xff]  ;;  %v2966_v8 = vpack.c.bf16 %v739_v2, %v726_v61 }
 0x319   : > { %2743 = vmatpush1.bf16.msra.mxu0 %v2742_v21  ;;  %v648_v21 = vld [vmem:[%s5242_s3 + $0x2c0] sm:$0xff]  ;;  %v763_v12 = vld [vmem:[%s5242_s3 + $0x658] sm:$0xff] }
 0x31a   : > { %2839 = vmatpush1.bf16.msra.mxu1 %v2838_v22  ;;  %2745 = vmatprep.subr.bf16.mxu0 %v2744_v23  ;;  %v2952_v22 = vpack.c.bf16 %v662_v13, %v649_v11  ;;  %v661_v23 = vld [vmem:[%s5242_s3 + $0x328] sm:$0xff]  ;;  %v867_v2 = vld [vmem:[%s5242_s3 + $0x998] sm:$0xff] }
 0x31b   : > { %2841 = vmatprep.subr.bf16.mxu1 %v2840_v26  ;;  %v675_v26 = vld [vmem:[%s5242_s3 + $0x398] sm:$0xff]  ;;  %v765_v11 = vld [vmem:[%s5242_s3 + $0x668] sm:$0xff] }
 0x31c   : > { %v2956_v34 = vpack.c.bf16 %v688_v27, %v675_v26  ;;  %v777_v13 = vld [vmem:[%s5242_s3 + $0x6c8] sm:$0xff]  ;;  %v2970_v20 = vpack.c.bf16 %v765_v11, %v752_v15  ;;  %v791_v26 = vld [vmem:[%s5242_s3 + $0x738] sm:$0xff] }
 0x31d   : > { %2747 = vmatpush1.bf16.msra.mxu0 %v2746_v29  ;;  %v2954_v29 = vpack.c.bf16 %v661_v23, %v648_v21  ;;  %v789_v23 = vld [vmem:[%s5242_s3 + $0x728] sm:$0xff]  ;;  %v803_v27 = vld [vmem:[%s5242_s3 + $0x798] sm:$0xff] }
 0x31e   : > { %2843 = vmatpush1.bf16.msra.mxu1 %v2842_v30  ;;  %1586 = vmatprep.subr.mxu0 %v1189_v31  ;;  %v2860_v30 = vpack.c.bf16 %v686_v25, %v673_v24  ;;  %v672_v31 = vld [vmem:[%s5242_s3 + $0x380] sm:$0xff]  ;;  %v778_v24 = vld [vmem:[%s5242_s3 + $0x6d0] sm:$0xff]  ;;  %v893_v11 = vld [vmem:[%s5242_s3 + $0xa68] sm:$0xff] }
 0x31f   : > { %1728 = vmatprep.subr.mxu1 %v1191_v32  ;;  %v685_v32 = vld [vmem:[%s5242_s3 + $0x3e8] sm:$0xff] }
 0x320   : > { %v2862_v40 = vpack.c.bf16 %v685_v32, %v672_v31  ;;  %v2974_v32 = vpack.c.bf16 %v791_v26, %v778_v24  ;;  %v919_v26 = vld [vmem:[%s5242_s3 + $0xb38] sm:$0xff] }
 0x321   : > { %1587 = vmatpush1.msra.mxu0 %v1188_v39  ;;  %v714_v39 = vld [vmem:[%s5242_s3 + $0x4d0] sm:$0xff] }
 0x322   : > { %1729 = vmatpush1.msra.mxu1 %v1190_v42  ;;  %1619 = vmatmul.mubr.f32.vlgmr.msra.gmra.mrb[4].mxu0 %v3666_v52  ;;  %v2864_v42 = vpack.c.bf16 %v712_v37, %v699_v36  ;;  %v804_v36 = vld [vmem:[%s5242_s3 + $0x7a0] sm:$0xff] }
 0x323   : > { %1761 = vmatmul.mubr.f32.vlgmr.msra.gmra.mrb[4].mxu1 %v3666_v52  ;;  %2845 = vmatprep.subr.bf16.mxu0 %v2844_v43  ;;  %v698_v43 = vld [vmem:[%s5242_s3 + $0x450] sm:$0xff] }
 0x324   : > { %2941 = vmatprep.subr.bf16.mxu1 %v2940_v46  ;;  %2847 = vmatpush1.bf16.msra.mxu0 %v2846_v47  ;;  %v2960_v46 = vpack.c.bf16 %v714_v39, %v701_v38  ;;  %v713_v47 = vld [vmem:[%s5242_s3 + $0x4c8] sm:$0xff]  ;;  %v2866_v55 = vpack.c.bf16 %v711_v44, %v698_v43 }
 0x325   : > { %1831 = vmatprep.mubr.f32.mxu0 %v3674_v57  ;;  %2943 = vmatpush1.bf16.msra.mxu1 %v2942_v53  ;;  %v727_v53 = vld [vmem:[%s5242_s3 + $0x538] sm:$0xff]  ;;  %v2962_v56 = vpack.c.bf16 %v713_v47, %v700_v45  ;;  %v817_v38 = vld [vmem:[%s5242_s3 + $0x808] sm:$0xff] }
 0x326   : > { %1973 = vmatprep.mubr.f32.mxu1 %v3674_v57  ;;  %2849 = vmatprep.subr.bf16.mxu0 %v2848_v1  ;;  %v2868_v1 = vpack.c.bf16 %v738_v49, %v725_v48  ;;  %v829_v39 = vld [vmem:[%s5242_s3 + $0x868] sm:$0xff]  ;;  %v2978_v44 = vpack.c.bf16 %v817_v38, %v804_v36  ;;  %v830_v48 = vld [vmem:[%s5242_s3 + $0x870] sm:$0xff] }
 0x327   : > { %2945 = vmatprep.subr.bf16.mxu1 %v2944_v63  ;;  %v2964_v63 = vpack.c.bf16 %v740_v54, %v727_v53  ;;  %v841_v47 = vld [vmem:[%s5242_s3 + $0x8c8] sm:$0xff]  ;;  %v843_v53 = vld [vmem:[%s5242_s3 + $0x8d8] sm:$0xff] }
 0x328   : > { %2851 = vmatpush1.bf16.msra.mxu0 %v2850_v4  ;;  %v764_v4 = vld [vmem:[%s5242_s3 + $0x660] sm:$0xff]  ;;  %v855_v54 = vld [vmem:[%s5242_s3 + $0x938] sm:$0xff]  ;;  %v2982_v60 = vpack.c.bf16 %v843_v53, %v830_v48  ;;  %v945_v38 = vld [vmem:[%s5242_s3 + $0xc08] sm:$0xff] }
 0x329   : > { %2947 = vmatpush1.bf16.msra.mxu1 %v2946_v5  ;;  %2853 = vmatprep.subr.bf16.mxu0 %v2852_v6  ;;  %v753_v5 = vld [vmem:[%s5242_s3 + $0x608] sm:$0xff]  ;;  %v766_v6 = vld [vmem:[%s5242_s3 + $0x670] sm:$0xff]  ;;  %v2872_v9 = vpack.c.bf16 %v764_v4, %v751_v3  ;;  %v856_v3 = vld [vmem:[%s5242_s3 + $0x940] sm:$0xff] }
 0x32a   : > { %2949 = vmatprep.subr.bf16.mxu1 %v2948_v10  ;;  %v750_v10 = vld [vmem:[%s5242_s3 + $0x5f0] sm:$0xff]  ;;  %v2968_v14 = vpack.c.bf16 %v766_v6, %v753_v5  ;;  %v869_v5 = vld [vmem:[%s5242_s3 + $0x9a8] sm:$0xff]  ;;  %v971_v53 = vld [vmem:[%s5242_s3 + $0xcd8] sm:$0xff] }
 0x32b   : > { %v2874_v19 = vpack.c.bf16 %v763_v12, %v750_v10  ;;  %v881_v6 = vld [vmem:[%s5242_s3 + $0xa08] sm:$0xff]  ;;  %v2986_v12 = vpack.c.bf16 %v869_v5, %v856_v3 }
 0x32c   : > { %2855 = vmatpush1.bf16.msra.mxu0 %v2854_v16  ;;  %v790_v16 = vld [vmem:[%s5242_s3 + $0x730] sm:$0xff]  ;;  %v997_v5 = vld [vmem:[%s5242_s3 + $0xda8] sm:$0xff] }
 0x32d   : > { %2951 = vmatpush1.bf16.msra.mxu1 %v2950_v17  ;;  %2857 = vmatprep.subr.bf16.mxu0 %v2856_v18  ;;  %v779_v17 = vld [vmem:[%s5242_s3 + $0x6d8] sm:$0xff]  ;;  %v792_v18 = vld [vmem:[%s5242_s3 + $0x740] sm:$0xff]  ;;  %v2876_v21 = vpack.c.bf16 %v790_v16, %v777_v13  ;;  %v882_v13 = vld [vmem:[%s5242_s3 + $0xa10] sm:$0xff] }
 0x32e   : > { %2953 = vmatprep.subr.bf16.mxu1 %v2952_v22  ;;  %v776_v22 = vld [vmem:[%s5242_s3 + $0x6c0] sm:$0xff]  ;;  %v2972_v25 = vpack.c.bf16 %v792_v18, %v779_v17  ;;  %v895_v17 = vld [vmem:[%s5242_s3 + $0xa78] sm:$0xff] }
 0x32f   : > { %v2878_v31 = vpack.c.bf16 %v789_v23, %v776_v22  ;;  %v907_v18 = vld [vmem:[%s5242_s3 + $0xad8] sm:$0xff]  ;;  %v2990_v23 = vpack.c.bf16 %v895_v17, %v882_v13  ;;  %v1010_v13 = vld [vmem:[%s5242_s3 + $0xe10] sm:$0xff]  ;;  %v1012_v17 = vld [vmem:[%s5242_s3 + $0xe20] sm:$0xff] }
 0x330   : > { %2859 = vmatpush1.bf16.msra.mxu0 %v2858_v28  ;;  %v816_v28 = vld [vmem:[%s5242_s3 + $0x800] sm:$0xff] }
 0x331   : > { %2955 = vmatpush1.bf16.msra.mxu1 %v2954_v29  ;;  %2861 = vmatprep.subr.bf16.mxu0 %v2860_v30  ;;  %v805_v29 = vld [vmem:[%s5242_s3 + $0x7a8] sm:$0xff]  ;;  %v818_v30 = vld [vmem:[%s5242_s3 + $0x810] sm:$0xff]  ;;  %v2880_v33 = vpack.c.bf16 %v816_v28, %v803_v27  ;;  %v908_v27 = vld [vmem:[%s5242_s3 + $0xae0] sm:$0xff] }
 0x332   : > { %2957 = vmatprep.subr.bf16.mxu1 %v2956_v34  ;;  %v802_v34 = vld [vmem:[%s5242_s3 + $0x790] sm:$0xff]  ;;  %v2976_v37 = vpack.c.bf16 %v818_v30, %v805_v29  ;;  %v921_v29 = vld [vmem:[%s5242_s3 + $0xb48] sm:$0xff] }
 0x333   : > { %v2882_v43 = vpack.c.bf16 %v815_v35, %v802_v34  ;;  %v933_v30 = vld [vmem:[%s5242_s3 + $0xba8] sm:$0xff]  ;;  %v2994_v35 = vpack.c.bf16 %v921_v29, %v908_v27 }
 0x334   : > { %2863 = vmatpush1.bf16.msra.mxu0 %v2862_v40  ;;  %v842_v40 = vld [vmem:[%s5242_s3 + $0x8d0] sm:$0xff]  ;;  %v1049_v29 = vld [vmem:[%s5242_s3 + $0xf48] sm:$0xff] }
 0x335   : > { %2959 = vmatpush1.bf16.msra.mxu1 %v2958_v41  ;;  %2865 = vmatprep.subr.bf16.mxu0 %v2864_v42  ;;  %v831_v41 = vld [vmem:[%s5242_s3 + $0x878] sm:$0xff]  ;;  %v844_v42 = vld [vmem:[%s5242_s3 + $0x8e0] sm:$0xff]  ;;  %v2884_v45 = vpack.c.bf16 %v842_v40, %v829_v39  ;;  %v934_v39 = vld [vmem:[%s5242_s3 + $0xbb0] sm:$0xff] }
 0x336   : > { %2961 = vmatprep.subr.bf16.mxu1 %v2960_v46  ;;  %v828_v46 = vld [vmem:[%s5242_s3 + $0x860] sm:$0xff]  ;;  %v2980_v49 = vpack.c.bf16 %v844_v42, %v831_v41  ;;  %v947_v41 = vld [vmem:[%s5242_s3 + $0xc18] sm:$0xff] }
 0x337   : > { %v2886_v59 = vpack.c.bf16 %v841_v47, %v828_v46  ;;  %v959_v42 = vld [vmem:[%s5242_s3 + $0xc78] sm:$0xff]  ;;  %v2998_v47 = vpack.c.bf16 %v947_v41, %v934_v39 }
 0x338   : > { %2867 = vmatpush1.bf16.msra.mxu0 %v2866_v55  ;;  %v868_v55 = vld [vmem:[%s5242_s3 + $0x9a0] sm:$0xff]  ;;  %v1075_v41 = vld [vmem:[%s5242_s3 + $0x1018] sm:$0xff] }
 0x339   : > { %2963 = vmatpush1.bf16.msra.mxu1 %v2962_v56  ;;  %2869 = vmatprep.subr.bf16.mxu0 %v2868_v1  ;;  %v857_v56 = vld [vmem:[%s5242_s3 + $0x948] sm:$0xff]  ;;  %v870_v1 = vld [vmem:[%s5242_s3 + $0x9b0] sm:$0xff]  ;;  %v2888_v61 = vpack.c.bf16 %v868_v55, %v855_v54  ;;  %v960_v54 = vld [vmem:[%s5242_s3 + $0xc80] sm:$0xff] }
 0x33a   : > { %2965 = vmatprep.subr.bf16.mxu1 %v2964_v63  ;;  %v854_v63 = vld [vmem:[%s5242_s3 + $0x930] sm:$0xff]  ;;  %v2984_v4 = vpack.c.bf16 %v870_v1, %v857_v56  ;;  %v973_v56 = vld [vmem:[%s5242_s3 + $0xce8] sm:$0xff] }
 0x33b   : > { %v2890_v10 = vpack.c.bf16 %v867_v2, %v854_v63  ;;  %v985_v1 = vld [vmem:[%s5242_s3 + $0xd48] sm:$0xff]  ;;  %v3002_v2 = vpack.c.bf16 %v973_v56, %v960_v54 }
 0x33c   : > { %2871 = vmatpush1.bf16.msra.mxu0 %v2870_v7  ;;  %v894_v7 = vld [vmem:[%s5242_s3 + $0xa70] sm:$0xff]  ;;  %v1101_v56 = vld [vmem:[%s5242_s3 + $0x10e8] sm:$0xff] }
 0x33d   : > { %2967 = vmatpush1.bf16.msra.mxu1 %v2966_v8  ;;  %2873 = vmatprep.subr.bf16.mxu0 %v2872_v9  ;;  %v883_v8 = vld [vmem:[%s5242_s3 + $0xa18] sm:$0xff]  ;;  %v896_v9 = vld [vmem:[%s5242_s3 + $0xa80] sm:$0xff]  ;;  %v2892_v15 = vpack.c.bf16 %v894_v7, %v881_v6  ;;  %v986_v7 = vld [vmem:[%s5242_s3 + $0xd50] sm:$0xff] }
 0x33e   : > { %2969 = vmatprep.subr.bf16.mxu1 %v2968_v14  ;;  %v880_v14 = vld [vmem:[%s5242_s3 + $0xa00] sm:$0xff]  ;;  %v2988_v16 = vpack.c.bf16 %v896_v9, %v883_v8  ;;  %v999_v8 = vld [vmem:[%s5242_s3 + $0xdb8] sm:$0xff] }
 0x33f   : > { %v2894_v22 = vpack.c.bf16 %v893_v11, %v880_v14  ;;  %v1011_v9 = vld [vmem:[%s5242_s3 + $0xe18] sm:$0xff]  ;;  %v1026_v14 = vld [vmem:[%s5242_s3 + $0xe90] sm:$0xff]  ;;  %v3006_v11 = vpack.c.bf16 %v999_v8, %v986_v7 }
 0x340   : > { %2875 = vmatpush1.bf16.msra.mxu0 %v2874_v19  ;;  %v920_v19 = vld [vmem:[%s5242_s3 + $0xb40] sm:$0xff]  ;;  %v1114_v7 = vld [vmem:[%s5242_s3 + $0x1150] sm:$0xff]  ;;  %v1127_v8 = vld [vmem:[%s5242_s3 + $0x11b8] sm:$0xff] }
 0x341   : > { %2971 = vmatpush1.bf16.msra.mxu1 %v2970_v20  ;;  %2877 = vmatprep.subr.bf16.mxu0 %v2876_v21  ;;  %v909_v20 = vld [vmem:[%s5242_s3 + $0xae8] sm:$0xff]  ;;  %v922_v21 = vld [vmem:[%s5242_s3 + $0xb50] sm:$0xff]  ;;  %v2896_v24 = vpack.c.bf16 %v920_v19, %v907_v18 }
 0x342   : > { %2973 = vmatprep.subr.bf16.mxu1 %v2972_v25  ;;  %v906_v25 = vld [vmem:[%s5242_s3 + $0xad0] sm:$0xff]  ;;  %v2992_v28 = vpack.c.bf16 %v922_v21, %v909_v20  ;;  %v1025_v19 = vld [vmem:[%s5242_s3 + $0xe88] sm:$0xff] }
 0x343   : > { %v2898_v34 = vpack.c.bf16 %v919_v26, %v906_v25  ;;  %v1037_v20 = vld [vmem:[%s5242_s3 + $0xee8] sm:$0xff]  ;;  %v1050_v21 = vld [vmem:[%s5242_s3 + $0xf50] sm:$0xff]  ;;  %v3010_v26 = vpack.c.bf16 %v1025_v19, %v1012_v17  ;;  %v1140_v19 = vld [vmem:[%s5242_s3 + $0x1220] sm:$0xff] }
 0x344   : > { %2879 = vmatpush1.bf16.msra.mxu0 %v2878_v31  ;;  %v946_v31 = vld [vmem:[%s5242_s3 + $0xc10] sm:$0xff]  ;;  %v2916_v27 = vpack.c.bf16 %v1050_v21, %v1037_v20  ;;  %v1153_v20 = vld [vmem:[%s5242_s3 + $0x1288] sm:$0xff] }
 0x345   : > { %2975 = vmatpush1.bf16.msra.mxu1 %v2974_v32  ;;  %2881 = vmatprep.subr.bf16.mxu0 %v2880_v33  ;;  %v935_v32 = vld [vmem:[%s5242_s3 + $0xbb8] sm:$0xff]  ;;  %v948_v33 = vld [vmem:[%s5242_s3 + $0xc20] sm:$0xff]  ;;  %v2900_v36 = vpack.c.bf16 %v946_v31, %v933_v30  ;;  %v1038_v30 = vld [vmem:[%s5242_s3 + $0xef0] sm:$0xff] }
 0x346   : > { %2977 = vmatprep.subr.bf16.mxu1 %v2976_v37  ;;  %v932_v37 = vld [vmem:[%s5242_s3 + $0xba0] sm:$0xff]  ;;  %v2996_v40 = vpack.c.bf16 %v948_v33, %v935_v32  ;;  %v1051_v32 = vld [vmem:[%s5242_s3 + $0xf58] sm:$0xff]  ;;  %v1142_v21 = vld [vmem:[%s5242_s3 + $0x1230] sm:$0xff] }
 0x347   : > { %v2902_v46 = vpack.c.bf16 %v945_v38, %v932_v37  ;;  %v1063_v33 = vld [vmem:[%s5242_s3 + $0xfb8] sm:$0xff]  ;;  %v3014_v38 = vpack.c.bf16 %v1051_v32, %v1038_v30 }
 0x348   : > { %2883 = vmatpush1.bf16.msra.mxu0 %v2882_v43  ;;  %v972_v43 = vld [vmem:[%s5242_s3 + $0xce0] sm:$0xff]  ;;  %v1179_v32 = vld [vmem:[%s5242_s3 + $0x1358] sm:$0xff] }
 0x349   : > { %2979 = vmatpush1.bf16.msra.mxu1 %v2978_v44  ;;  %2885 = vmatprep.subr.bf16.mxu0 %v2884_v45  ;;  %v961_v44 = vld [vmem:[%s5242_s3 + $0xc88] sm:$0xff]  ;;  %v974_v45 = vld [vmem:[%s5242_s3 + $0xcf0] sm:$0xff]  ;;  %v2904_v48 = vpack.c.bf16 %v972_v43, %v959_v42  ;;  %v1064_v42 = vld [vmem:[%s5242_s3 + $0xfc0] sm:$0xff] }
 0x34a   : > { %2981 = vmatprep.subr.bf16.mxu1 %v2980_v49  ;;  %v958_v49 = vld [vmem:[%s5242_s3 + $0xc70] sm:$0xff]  ;;  %v3000_v55 = vpack.c.bf16 %v974_v45, %v961_v44  ;;  %v1077_v44 = vld [vmem:[%s5242_s3 + $0x1028] sm:$0xff] }
 0x34b   : > { %v2906_v63 = vpack.c.bf16 %v971_v53, %v958_v49  ;;  %v1089_v45 = vld [vmem:[%s5242_s3 + $0x1088] sm:$0xff]  ;;  %v3018_v53 = vpack.c.bf16 %v1077_v44, %v1064_v42  ;;  %v572_v42 = vld [vmem:[%s5242_s3 + $0x60] sm:$0xff] }
 0x34c   : > { %2887 = vmatpush1.bf16.msra.mxu0 %v2886_v59  ;;  %v998_v59 = vld [vmem:[%s5242_s3 + $0xdb0] sm:$0xff]  ;;  %v1192_v44 = vld [vmem:[%s5242_s3 + $0x13c0] sm:$0xff] }
 0x34d   : > { %2983 = vmatpush1.bf16.msra.mxu1 %v2982_v60  ;;  %2889 = vmatprep.subr.bf16.mxu0 %v2888_v61  ;;  %v987_v60 = vld [vmem:[%s5242_s3 + $0xd58] sm:$0xff]  ;;  %v1000_v61 = vld [vmem:[%s5242_s3 + $0xdc0] sm:$0xff]  ;;  %v2908_v3 = vpack.c.bf16 %v998_v59, %v985_v1  ;;  %v1090_v1 = vld [vmem:[%s5242_s3 + $0x1090] sm:$0xff] }
 0x34e   : > { %2985 = vmatprep.subr.bf16.mxu1 %v2984_v4  ;;  %v984_v4 = vld [vmem:[%s5242_s3 + $0xd40] sm:$0xff]  ;;  %v3004_v6 = vpack.c.bf16 %v1000_v61, %v987_v60  ;;  %v1103_v60 = vld [vmem:[%s5242_s3 + $0x10f8] sm:$0xff] }
 0x34f   : > { %v1115_v61 = vld [vmem:[%s5242_s3 + $0x1158] sm:$0xff] }
 0x350   : > { %2891 = vmatpush1.bf16.msra.mxu0 %v2890_v10  ;;  %v1024_v10 = vld [vmem:[%s5242_s3 + $0xe80] sm:$0xff] }
 0x351   : > { %2987 = vmatpush1.bf16.msra.mxu1 %v2986_v12  ;;  %2893 = vmatprep.subr.bf16.mxu0 %v2892_v15  ;;  %v2910_v12 = vpack.c.bf16 %v997_v5, %v984_v4  ;;  %v1013_v15 = vld [vmem:[%s5242_s3 + $0xe28] sm:$0xff]  ;;  %v2912_v18 = vpack.c.bf16 %v1024_v10, %v1011_v9  ;;  %v3022_v5 = vpack.c.bf16 %v1103_v60, %v1090_v1  ;;  %v1116_v9 = vld [vmem:[%s5242_s3 + $0x1160] sm:$0xff]  ;;  %v611_v1 = vld [vmem:[%s5242_s3 + $0x198] sm:$0xff] }
 0x352   : > { %2989 = vmatprep.subr.bf16.mxu1 %v2988_v16  ;;  %v1023_v16 = vld [vmem:[%s5242_s3 + $0xe78] sm:$0xff] }
 0x353   : > { %v2914_v25 = vpack.c.bf16 %v1023_v16, %v1010_v13  ;;  %v1156_v13 = vld [vmem:[%s5242_s3 + $0x12a0] sm:$0xff]  ;;  %v2930_v16 = vpack.c.bf16 %v1127_v8, %v1114_v7  ;;  %v637_v8 = vld [vmem:[%s5242_s3 + $0x268] sm:$0xff] }
 0x354   : > { %2895 = vmatpush1.bf16.msra.mxu0 %v2894_v22  ;;  %v3008_v22 = vpack.c.bf16 %v1026_v14, %v1013_v15  ;;  %v1141_v15 = vld [vmem:[%s5242_s3 + $0x1228] sm:$0xff]  ;;  %v1154_v14 = vld [vmem:[%s5242_s3 + $0x1290] sm:$0xff]  ;;  %v624_v7 = vld [vmem:[%s5242_s3 + $0x200] sm:$0xff] }
 0x355   : > { %2991 = vmatpush1.bf16.msra.mxu1 %v2990_v23  ;;  %2897 = vmatprep.subr.bf16.mxu0 %v2896_v24  ;;  %v1039_v23 = vld [vmem:[%s5242_s3 + $0xef8] sm:$0xff]  ;;  %v1052_v24 = vld [vmem:[%s5242_s3 + $0xf60] sm:$0xff] }
 0x356   : > { %2993 = vmatprep.subr.bf16.mxu1 %v2992_v28  ;;  %v1036_v28 = vld [vmem:[%s5242_s3 + $0xee0] sm:$0xff]  ;;  %v3012_v31 = vpack.c.bf16 %v1052_v24, %v1039_v23  ;;  %v1155_v23 = vld [vmem:[%s5242_s3 + $0x1298] sm:$0xff] }
 0x357   : > { %v2918_v37 = vpack.c.bf16 %v1049_v29, %v1036_v28  ;;  %v1167_v24 = vld [vmem:[%s5242_s3 + $0x12f8] sm:$0xff]  ;;  %v2934_v28 = vpack.c.bf16 %v1153_v20, %v1140_v19  ;;  %v3030_v29 = vpack.c.bf16 %v1155_v23, %v1142_v21  ;;  %v897_v19 = vld [vmem:[%s5242_s3 + $0xa88] sm:$0xff]  ;;  %v676_v21 = vld [vmem:[%s5242_s3 + $0x3a0] sm:$0xff] }
 0x358   : > { %2899 = vmatpush1.bf16.msra.mxu0 %v2898_v34  ;;  %v1076_v34 = vld [vmem:[%s5242_s3 + $0x1020] sm:$0xff] }
 0x359   : > { %2995 = vmatpush1.bf16.msra.mxu1 %v2994_v35  ;;  %2901 = vmatprep.subr.bf16.mxu0 %v2900_v36  ;;  %v1065_v35 = vld [vmem:[%s5242_s3 + $0xfc8] sm:$0xff]  ;;  %v1078_v36 = vld [vmem:[%s5242_s3 + $0x1030] sm:$0xff]  ;;  %v2920_v39 = vpack.c.bf16 %v1076_v34, %v1063_v33  ;;  %v1168_v34 = vld [vmem:[%s5242_s3 + $0x1300] sm:$0xff] }
 0x35a   : > { %2997 = vmatprep.subr.bf16.mxu1 %v2996_v40  ;;  %v1062_v40 = vld [vmem:[%s5242_s3 + $0xfb0] sm:$0xff]  ;;  %v3016_v43 = vpack.c.bf16 %v1078_v36, %v1065_v35  ;;  %v1181_v35 = vld [vmem:[%s5242_s3 + $0x1368] sm:$0xff] }
 0x35b   : > { %v2922_v49 = vpack.c.bf16 %v1075_v41, %v1062_v40  ;;  %v780_v40 = vld [vmem:[%s5242_s3 + $0x6e0] sm:$0xff]  ;;  %v793_v41 = vld [vmem:[%s5242_s3 + $0x748] sm:$0xff] }
 0x35c   : > { %2903 = vmatpush1.bf16.msra.mxu0 %v2902_v46  ;;  %v1102_v46 = vld [vmem:[%s5242_s3 + $0x10f0] sm:$0xff] }
 0x35d   : > { %2999 = vmatpush1.bf16.msra.mxu1 %v2998_v47  ;;  %2905 = vmatprep.subr.bf16.mxu0 %v2904_v48  ;;  %v1091_v47 = vld [vmem:[%s5242_s3 + $0x1098] sm:$0xff]  ;;  %v1104_v48 = vld [vmem:[%s5242_s3 + $0x1100] sm:$0xff]  ;;  %v2924_v54 = vpack.c.bf16 %v1102_v46, %v1089_v45  ;;  %v1001_v46 = vld [vmem:[%s5242_s3 + $0xdc8] sm:$0xff] }
 0x35e   : > { %3001 = vmatprep.subr.bf16.mxu1 %v3000_v55  ;;  %v1088_v55 = vld [vmem:[%s5242_s3 + $0x1080] sm:$0xff]  ;;  %v3020_v59 = vpack.c.bf16 %v1104_v48, %v1091_v47  ;;  %v1194_v47 = vld [vmem:[%s5242_s3 + $0x13d0] sm:$0xff]  ;;  %v3036_v48 = vpack.c.bf16 %v793_v41, %v780_v40  ;;  %v1131_v41 = vld [vmem:[%s5242_s3 + $0x11d8] sm:$0xff] }
 0x35f   : > { %v2926_v4 = vpack.c.bf16 %v1101_v56, %v1088_v55  ;;  %v988_v45 = vld [vmem:[%s5242_s3 + $0xd60] sm:$0xff]  ;;  %v598_v56 = vld [vmem:[%s5242_s3 + $0x130] sm:$0xff] }
 0x360   : > { %2907 = vmatpush1.bf16.msra.mxu0 %v2906_v63  ;;  %v1128_v63 = vld [vmem:[%s5242_s3 + $0x11c0] sm:$0xff]  ;;  %v3069_v55 = vpack.c.bf16 %v1001_v46, %v988_v45  ;;  %v1118_v40 = vld [vmem:[%s5242_s3 + $0x1170] sm:$0xff] }
 0x361   : > { %3003 = vmatpush1.bf16.msra.mxu1 %v3002_v2  ;;  %2909 = vmatprep.subr.bf16.mxu0 %v2908_v3  ;;  %v1117_v2 = vld [vmem:[%s5242_s3 + $0x1168] sm:$0xff]  ;;  %v1130_v3 = vld [vmem:[%s5242_s3 + $0x11d0] sm:$0xff] }
 0x362   : > { %3005 = vmatprep.subr.bf16.mxu1 %v3004_v6  ;;  %v2928_v6 = vpack.c.bf16 %v1128_v63, %v1115_v61  ;;  %v3024_v10 = vpack.c.bf16 %v1130_v3, %v1117_v2  ;;  %v1027_v61 = vld [vmem:[%s5242_s3 + $0xe98] sm:$0xff]  ;;  %v832_v63 = vld [vmem:[%s5242_s3 + $0x880] sm:$0xff]  ;;  %v845_v2 = vld [vmem:[%s5242_s3 + $0x8e8] sm:$0xff]  ;;  %v3146_v3 = vmov 0.0|0.0  }
 0x363   : > { %1832 = vmatmul.mubr.f32.vlgmr.msra.gmra.mrb[6].mxu0 %v3664_v51 }
 0x364   : > { %1974 = vmatmul.mubr.f32.vlgmr.msra.gmra.mrb[6].mxu1 %v3664_v51  ;;  %2911 = vmatpush1.bf16.msra.mxu0 %v2910_v12  ;;  %v1129_v12 = vld [vmem:[%s5242_s3 + $0x11c8] sm:$0xff] }
 0x365   : > { %2411 = vmatprep.mubr.msk.f32.mxu0 %vm257_vm0, %v3676_v58  ;;  %3007 = vmatpush1.bf16.msra.mxu1 %v3006_v11  ;;  %v1143_v11 = vld [vmem:[%s5242_s3 + $0x1238] sm:$0xff]  ;;  %v3026_v17 = vpack.c.bf16 %v1129_v12, %v1116_v9  ;;  %v1040_v9 = vld [vmem:[%s5242_s3 + $0xf00] sm:$0xff] }
 0x366   : > { %2412 = vmatprep.mubr.msk.f32.mxu1 %vm257_vm0, %v3676_v58  ;;  %2913 = vmatprep.subr.bf16.mxu0 %v2912_v18  ;;  %v2932_v18 = vpack.c.bf16 %v1154_v14, %v1141_v15  ;;  %v871_v12 = vld [vmem:[%s5242_s3 + $0x9b8] sm:$0xff]  ;;  %v3046_v15 = vpack.c.bf16 %v637_v8, %v624_v7 }
 0x367   : > { %3009 = vmatprep.subr.bf16.mxu1 %v3008_v22  ;;  %v3028_v22 = vpack.c.bf16 %v1156_v13, %v1143_v11  ;;  %v650_v11 = vld [vmem:[%s5242_s3 + $0x2d0] sm:$0xff]  ;;  %v663_v13 = vld [vmem:[%s5242_s3 + $0x338] sm:$0xff] }
 0x368   : > { %2915 = vmatpush1.bf16.msra.mxu0 %v2914_v25  ;;  %v1180_v25 = vld [vmem:[%s5242_s3 + $0x1360] sm:$0xff]  ;;  %v3050_v20 = vpack.c.bf16 %v663_v13, %v650_v11 }
 0x369   : > { %3011 = vmatpush1.bf16.msra.mxu1 %v3010_v26  ;;  %2917 = vmatprep.subr.bf16.mxu0 %v2916_v27  ;;  %v1169_v26 = vld [vmem:[%s5242_s3 + $0x1308] sm:$0xff]  ;;  %v1182_v27 = vld [vmem:[%s5242_s3 + $0x1370] sm:$0xff]  ;;  %v2936_v30 = vpack.c.bf16 %v1180_v25, %v1167_v24  ;;  %v1092_v25 = vld [vmem:[%s5242_s3 + $0x10a0] sm:$0xff] }
 0x36a   : > { %3013 = vmatprep.subr.bf16.mxu1 %v3012_v31  ;;  %v1166_v31 = vld [vmem:[%s5242_s3 + $0x12f0] sm:$0xff]  ;;  %v3032_v33 = vpack.c.bf16 %v1182_v27, %v1169_v26  ;;  %v689_v24 = vld [vmem:[%s5242_s3 + $0x408] sm:$0xff] }
 0x36b   : > { %v2938_v36 = vpack.c.bf16 %v1179_v32, %v1166_v31  ;;  %v1105_v26 = vld [vmem:[%s5242_s3 + $0x1108] sm:$0xff]  ;;  %v910_v27 = vld [vmem:[%s5242_s3 + $0xaf0] sm:$0xff] }
 0x36c   : > { %2919 = vmatpush1.bf16.msra.mxu0 %v2918_v37  ;;  %v3034_v37 = vpack.c.bf16 %v1181_v35, %v1168_v34  ;;  %v3081_v34 = vpack.c.bf16 %v1105_v26, %v1092_v25 }
 0x36d   : > { %3015 = vmatpush1.bf16.msra.mxu1 %v3014_v38  ;;  %2921 = vmatprep.subr.bf16.mxu0 %v2920_v39  ;;  %v1193_v38 = vld [vmem:[%s5242_s3 + $0x13c8] sm:$0xff]  ;;  %v1195_v39 = vld [vmem:[%s5242_s3 + $0x13d8] sm:$0xff] }
 0x36e   : > { %3017 = vmatprep.subr.bf16.mxu1 %v3016_v43  ;;  %v585_v43 = vld [vmem:[%s5242_s3 + $0xc8] sm:$0xff] }
 0x370   : > { %2923 = vmatpush1.bf16.msra.mxu0 %v2922_v49  ;;  %v806_v49 = vld [vmem:[%s5242_s3 + $0x7b0] sm:$0xff] }
 0x371   : > { %3019 = vmatpush1.bf16.msra.mxu1 %v3018_v53  ;;  %2925 = vmatprep.subr.bf16.mxu0 %v2924_v54  ;;  %v819_v53 = vld [vmem:[%s5242_s3 + $0x818] sm:$0xff]  ;;  %v3038_v54 = vpack.c.bf16 %v585_v43, %v572_v42  ;;  %v936_v42 = vld [vmem:[%s5242_s3 + $0xbc0] sm:$0xff]  ;;  %v949_v43 = vld [vmem:[%s5242_s3 + $0xc28] sm:$0xff] }
 0x372   : > { %3021 = vmatprep.subr.bf16.mxu1 %v3020_v59  ;;  %v1014_v59 = vld [vmem:[%s5242_s3 + $0xe30] sm:$0xff]  ;;  %v3040_v60 = vpack.c.bf16 %v819_v53, %v806_v49  ;;  %v3060_v49 = vpack.c.bf16 %v949_v43, %v936_v42  ;;  %v728_v53 = vld [vmem:[%s5242_s3 + $0x540] sm:$0xff] }
 0x374   : > { %2927 = vmatpush1.bf16.msra.mxu0 %v2926_v4  ;;  %v3042_v4 = vpack.c.bf16 %v611_v1, %v598_v56  ;;  %v1157_v56 = vld [vmem:[%s5242_s3 + $0x12a8] sm:$0xff]  ;;  %v962_v1 = vld [vmem:[%s5242_s3 + $0xc90] sm:$0xff] }
 0x375   : > { %3023 = vmatpush1.bf16.msra.mxu1 %v3022_v5  ;;  %2929 = vmatprep.subr.bf16.mxu0 %v2928_v6  ;;  %v3072_v5 = vpack.c.bf16 %v1027_v61, %v1014_v59  ;;  %v3044_v6 = vpack.c.bf16 %v845_v2, %v832_v63  ;;  %v975_v59 = vld [vmem:[%s5242_s3 + $0xcf8] sm:$0xff]  ;;  %v754_v2 = vld [vmem:[%s5242_s3 + $0x610] sm:$0xff] }
 0x376   : > { %3025 = vmatprep.subr.bf16.mxu1 %v3024_v10  ;;  %v858_v10 = vld [vmem:[%s5242_s3 + $0x950] sm:$0xff]  ;;  %v3064_v63 = vpack.c.bf16 %v975_v59, %v962_v1 }
 0x377   : > { %v3048_v14 = vpack.c.bf16 %v871_v12, %v858_v10 }
 0x378   : > { %2931 = vmatpush1.bf16.msra.mxu0 %v2930_v16  ;;  %v1066_v16 = vld [vmem:[%s5242_s3 + $0xfd0] sm:$0xff] }
 0x379   : > { %3027 = vmatpush1.bf16.msra.mxu1 %v3026_v17  ;;  %2933 = vmatprep.subr.bf16.mxu0 %v2932_v18  ;;  %v1079_v17 = vld [vmem:[%s5242_s3 + $0x1038] sm:$0xff]  ;;  %v884_v18 = vld [vmem:[%s5242_s3 + $0xa20] sm:$0xff] }
 0x37a   : > { %3029 = vmatprep.subr.bf16.mxu1 %v3028_v22  ;;  %v3078_v22 = vpack.c.bf16 %v1079_v17, %v1066_v16  ;;  %v3052_v23 = vpack.c.bf16 %v897_v19, %v884_v18 }
 0x37c   : > { %2935 = vmatpush1.bf16.msra.mxu0 %v2934_v28  ;;  %v923_v28 = vld [vmem:[%s5242_s3 + $0xb58] sm:$0xff] }
 0x37d   : > { %3031 = vmatpush1.bf16.msra.mxu1 %v3030_v29  ;;  %2937 = vmatprep.subr.bf16.mxu0 %v2936_v30 }
 0x37e   : > { %3033 = vmatprep.subr.bf16.mxu1 %v3032_v33  ;;  %v3054_v33 = vpack.c.bf16 %v689_v24, %v676_v21 }
 0x380   : > { %2939 = vmatpush1.bf16.msra.mxu0 %v2938_v36 }
 0x381   : > { %3035 = vmatpush1.bf16.msra.mxu1 %v3034_v37  ;;  %1870 = vmatprep.subr.mxu0 %v1193_v38  ;;  %v3056_v37 = vpack.c.bf16 %v923_v28, %v910_v27  ;;  %v702_v38 = vld [vmem:[%s5242_s3 + $0x470] sm:$0xff] }
 0x382   : > { %2012 = vmatprep.subr.mxu1 %v1195_v39  ;;  %v715_v39 = vld [vmem:[%s5242_s3 + $0x4d8] sm:$0xff] }
 0x383   : > { %v3058_v46 = vpack.c.bf16 %v715_v39, %v702_v38 }
 0x384   : > { %1871 = vmatpush1.msra.mxu0 %v1192_v44 }
 0x385   : > { %2013 = vmatpush1.msra.mxu1 %v1194_v47  ;;  %1903 = vmatmul.mubr.f32.vlgmr.msra.gmra.mrb[6].mxu0 %v3666_v52 }
 0x386   : > { %2045 = vmatmul.mubr.f32.vlgmr.msra.gmra.mrb[6].mxu1 %v3666_v52  ;;  %3037 = vmatprep.subr.bf16.mxu0 %v3036_v48  ;;  %v3084_v48 = vpack.c.bf16 %v1131_v41, %v1118_v40 }
 0x387   : > { %3068 = vmatprep.subr.bf16.mxu1 %v3146_v3  ;;  %3039 = vmatpush3.bf16.msra.mxu0 %v3038_v54  ;;  %v741_v54 = vld [vmem:[%s5242_s3 + $0x5a8] sm:$0xff] }
 0x388   : > { %2115 = vmatprep.mubr.f32.mxu0 %v3674_v57  ;;  %3070 = vmatpush1.bf16.msra.mxu1 %v3069_v55  ;;  %v1053_v57 = vld [vmem:[%s5242_s3 + $0xf68] sm:$0xff]  ;;  %v1144_v55 = vld [vmem:[%s5242_s3 + $0x1240] sm:$0xff] }
 0x389   : > { %2413 = vmatprep.mubr.msk.f32.mxu1 %vm257_vm0, %v3676_v58  ;;  %3041 = vmatprep.subr.bf16.mxu0 %v3040_v60  ;;  %v3075_v58 = vpack.c.bf16 %v1053_v57, %v1040_v9  ;;  %v3062_v60 = vpack.c.bf16 %v741_v54, %v728_v53  ;;  %v3087_v61 = vpack.c.bf16 %v1157_v56, %v1144_v55  ;;  %v1196_v9 = vld [vmem:[%s5242_s3 + $0x13e0] sm:$0xff] }
 0x38a   : > { %3071 = vmatprep.subr.bf16.mxu1 %v3146_v3 }
 0x38b   : > { %3043 = vmatpush3.bf16.msra.mxu0 %v3042_v4  ;;  %v767_v4 = vld [vmem:[%s5242_s3 + $0x678] sm:$0xff] }
 0x38c   : > { %3073 = vmatpush1.bf16.msra.mxu1 %v3072_v5  ;;  %3045 = vmatprep.subr.bf16.mxu0 %v3044_v6  ;;  %v1170_v5 = vld [vmem:[%s5242_s3 + $0x1310] sm:$0xff]  ;;  %v1183_v6 = vld [vmem:[%s5242_s3 + $0x1378] sm:$0xff]  ;;  %v3066_v7 = vpack.c.bf16 %v767_v4, %v754_v2 }
 0x38d   : > { %3074 = vmatprep.subr.bf16.mxu1 %v3146_v3  ;;  %v3090_v8 = vpack.c.bf16 %v1183_v6, %v1170_v5 }
 0x38f   : > { %3047 = vmatpush3.bf16.msra.mxu0 %v3046_v15 }
 0x390   : > { %3076 = vmatpush1.bf16.msra.mxu1 %v3075_v58  ;;  %3049 = vmatprep.subr.bf16.mxu0 %v3048_v14 }
 0x391   : > { %3077 = vmatprep.subr.bf16.mxu1 %v3146_v3 }
 0x392   : > { %v1336_v29 = vpop.f32.mrb[2].mxu0  ;;  %v1478_v30 = vpop.f32.mrb[2].mxu1 }
 0x393   : > { %3051 = vmatpush3.bf16.msra.mxu0 %v3050_v20  ;;  %v1338_v31 = vpop.f32.mrb[3].mxu0  ;;  %v1480_v32 = vpop.f32.mrb[3].mxu1 }
 0x394   : > { %3079 = vmatpush1.bf16.msra.mxu1 %v3078_v22  ;;  %v2204_v35 = vcombine.low %v1336_v29, %v1338_v31  ;;  %v2205_v36 = vcombine.low %v1478_v30, %v1480_v32  ;;  %3053 = vmatprep.subr.bf16.mxu0 %v3052_v23 }
 0x395   : > { %3080 = vmatprep.subr.bf16.mxu1 %v3146_v3 }
 0x396   : > { %v2214_v44 = vrot.slane %v2204_v35, %v3662_v50  ;;  %v2221_v45 = vrot.slane %v2205_v36, %v3662_v50 }
 0x397   : > { %3055 = vmatpush3.bf16.msra.mxu0 %v3054_v33 }
 0x398   : > { %v2236_v47 = vcombine.low %v2214_v44, %v2221_v45  ;;  %3082 = vmatpush1.bf16.msra.mxu1 %v3081_v34  ;;  %3057 = vmatprep.subr.bf16.mxu0 %v3056_v37 }
 0x399   : > { %3083 = vmatprep.subr.bf16.mxu1 %v3146_v3 }
 0x39a   : > { %v2244_v13 = vrot.slane %v2236_v47, %v3662_v50 }
 0x39b   : > { %3059 = vmatpush3.bf16.msra.mxu0 %v3058_v46 }
 0x39c   : > { %3085 = vmatpush1.bf16.msra.mxu1 %v3084_v48  ;;  %3061 = vmatprep.subr.bf16.mxu0 %v3060_v49 }
 0x39d   : > { %3086 = vmatprep.subr.bf16.mxu1 %v3146_v3 }
 0x39f   : > { %3063 = vmatpush3.bf16.msra.mxu0 %v3062_v60 }
 0x3a0   : > { %3088 = vmatpush1.bf16.msra.mxu1 %v3087_v61  ;;  %3065 = vmatprep.subr.bf16.mxu0 %v3064_v63 }
 0x3a1   : > { %3089 = vmatprep.subr.bf16.mxu1 %v3146_v3 }
 0x3a3   : > { %3067 = vmatpush3.bf16.msra.mxu0 %v3066_v7 }
 0x3a4   : > { %3091 = vmatpush1.bf16.msra.mxu1 %v3090_v8 }
 0x3a5   : > { %2153 = vmatprep.subr.mxu1 %v3144_v62 }
 0x3a6   : > { %2116 = vmatmul.mubr.f32.vlgmr.msra.gmra.mrb[8].mxu0 %v3664_v51 }
 0x3a8   : > { %2154 = vmatpush1.msra.mxu1 %v1196_v9 }
 0x3a9   : > { %2186 = vmatmul.mubr.f32.vlgmr.msra.gmra.mrb[8].mxu1 %v3666_v52 }
 0x3f5   : > { %v1620_v57 = vpop.f32.mrb[4].mxu0 }
 0x3f6   : > { %v1762_v10 = vpop.f32.mrb[4].mxu1  ;;  %v1622_v12 = vpop.f32.mrb[5].mxu0 }
 0x3f7   : > { %v2206_v15 = vcombine.low %v1620_v57, %v1622_v12  ;;  %v1764_v58 = vpop.f32.mrb[5].mxu1 }
 0x3f8   : > { %v2207_v3 = vcombine.low %v1762_v10, %v1764_v58 }
 0x3f9   : > { %v2228_v14 = vrot.slane %v2206_v15, %v3662_v50 }
 0x3fa   : > { %v2235_v11 = vrot.slane %v2207_v3, %v3662_v50 }
 0x3fc   : > { %v2237_v62 = vcombine.low %v2228_v14, %v2235_v11 }
 0x3fe   : > { %v2251_v16 = vrot.slane %v2237_v62, %v3662_v50 }
 0x400   : > { %v2252_v51 = vcombine.low %v2244_v13, %v2251_v16 }
 0x402   : > { %2294 = vst [vmem:[%s237_s7] sm:$0xff] %v2252_v51 }
 0x458   : > { %v1904_v52 = vpop.f32.mrb[6].mxu0 }
 0x459   : > { %v2046_v17 = vpop.f32.mrb[6].mxu1  ;;  %v1906_v18 = vpop.f32.mrb[7].mxu0 }
 0x45a   : > { %v2253_v19 = vcombine.low %v1904_v52, %v1906_v18  ;;  %v2048_v20 = vpop.f32.mrb[7].mxu1 }
 0x45b   : > { %v2254_v21 = vcombine.low %v2046_v17, %v2048_v20 }
 0x45c   : > { %v2261_v22 = vrot.slane %v2253_v19, %v3662_v50 }
 0x45d   : > { %v2268_v23 = vrot.slane %v2254_v21, %v3662_v50 }
 0x45f   : > { %v2276_v24 = vcombine.low %v2261_v22, %v2268_v23 }
 0x461   : > { %v2283_v32 = vrot.slane %v2276_v24, %v3662_v50 }
 0x479   : > { %v2449_v25 = vpop.f32.mrb[8].mxu0 }
 0x47a   : > { %v2450_v26 = vpop.f32.mrb[9].mxu0 }
 0x47b   : > { %v2451_v27 = vadd.f32 %v2450_v26, %v2449_v25 }
 0x47c   : > { %v2187_v28 = vpop.f32.mrb[8].mxu1 }
 0x47d   : > { %v2188_v29 = vadd.f32 %v2451_v27, %v2187_v28  ;;  %v2189_v30 = vpop.f32.mrb[9].mxu1 }
 0x47f   : > { %v2275_v31 = vrot.slane %v2188_v29, %v3662_v50 }
 0x481   : > { %v2290_v33 = vrot.slane %v2275_v31, %v3662_v50 }
 0x483   : > { %v2291_v34 = vcombine.low %v2283_v32, %v2290_v33 }
 0x485   : > { %2297 = vst.msk [vmem:[%s237_s7 + $0x8] sm:$0x1f] %vm2295_vm11, %v2291_v34 }
 0x486 PF: > { %s22_s23 = sadd.s32 1, %s3141_s23  }
 0x487   : > { %p19_p10 = scmp.ge.s32.totalorder %s22_s23, 4  }
 0x489   :  { %21 = sbr.rel (!%p19_p10) target bundleno = 16 (0x10), region = 77 }

// kernel: c2vq_recon_forward.9
= control target key start
LH: loop header
LB: loop body
LE: loop exit
PB: predicated region body
PF: predicated region fallthrough
CT: control target
= control target key end

     0   :  { %v1714_v0 = vmov 0.0   ;;  %vm1715_vm0 = vmmov 0   ;;  %v1716_v3 = vmov 0   ;;  %vm119_vm1 = vcmask 1043456   ;;  %s2829_s0 = inlined_call_operand.vmem [shape: bf16[72,288], index: 0, kind: input, shape index: {}]   ;;  %s2830_s2 = inlined_call_operand.vmem [shape: f32[8,1], index: 2, kind: input, shape index: {}]   ;;  %s2831_s3 = inlined_call_operand.vmem [shape: f32[288,1152], index: 3, kind: input, shape index: {}]   ;;  %s2832_s1 = inlined_call_operand.vmem [shape: bf16[8,72], index: 1, kind: input, shape index: {}]   ;;  %s2833_s4 = inlined_call_operand.vmem [shape: f32[8,1152], index: 4, kind: output, shape index: {}]  }
   0x1   :  { %1331 = vmatprep.subr.bf16.mxu1 %v1714_v0  ;;  %v1695_v1 = vld [vmem:[%s2829_s0 + $0x4] ss:$12 sps:$4 sm:$0xff]   ;;  %1341 = vmatprep.mubr.msk.bf16.mxu1 %vm1715_vm0, %v1714_v0  ;;  %v1697_v2 = vld [vmem:[%s2829_s0 + $0x8] ss:$12 sps:$4 sm:$0xff]   ;;  %v1698_v4 = vld [vmem:[%s2829_s0] ss:$12 sps:$4 sm:$0xff]  }
   0x2   :  { %161 = vmatprep.mubr.bf16.mxu0 %v1716_v3  ;;  %1694 = vset.pattern.permute.xlu0 %v1716_v3  ;;  %v1699_v5 = vld [vmem:[%s2829_s0 + $0x1c] ss:$12 sps:$4 sm:$0xff]   ;;  %v1701_v6 = vld [vmem:[%s2829_s0 + $0x20] ss:$12 sps:$4 sm:$0xff]   ;;  %v1702_v7 = vld [vmem:[%s2829_s0 + $0x18] ss:$12 sps:$4 sm:$0xff]  }
   0x3   :  { %129 = vmatprep.subr.bf16.mxu0 %v1695_v1  ;;  %1332 = vmatpush3.bf16.msra.mxu1 %v1697_v2  ;;  %v1703_v8 = vld [vmem:[%s2829_s0 + $0x34] ss:$12 sps:$4 sm:$0xff]   ;;  %v1705_v9 = vld [vmem:[%s2829_s0 + $0x38] ss:$12 sps:$4 sm:$0xff]   ;;  %v1706_v10 = vld [vmem:[%s2829_s0 + $0x30] ss:$12 sps:$4 sm:$0xff]  }
   0x4   :  { %130 = vmatpush1.bf16.msra.mxu0 %v1698_v4  ;;  %1333 = vmatprep.subr.bf16.mxu1 %v1714_v0  ;;  %v1707_v11 = vld [vmem:[%s2829_s0 + $0x4c] ss:$12 sps:$4 sm:$0xff]   ;;  %v35_v12 = vld [vmem:[%s2829_s0 + $0x60] sm:$0xff]  ;;  %v1709_v14 = vld [vmem:[%s2829_s0 + $0x50] ss:$12 sps:$4 sm:$0xff]   ;;  %vm115_vm2 = vcmask 588800  }
   0x5   :  { %131 = vmatprep.subr.bf16.mxu0 %v1699_v5  ;;  %v37_v13 = vld [vmem:[%s2830_s2] sm:$0xff]  ;;  %v1710_v15 = vld [vmem:[%s2829_s0 + $0x48] ss:$12 sps:$4 sm:$0xff]   ;;  %v1275_v17 = vcombine.high %v35_v12, %v35_v12  ;;  %v1274_v18 = vcombine.low %v35_v12, %v35_v12  ;;  %v232_v26 = vld [vmem:[%s2831_s3 + $0x98] sm:$0xff]  ;;  %vm537_vm3 = vcmask 261120  }
   0x6   :  { %40 = vperm.xlu0 %1694, %v37_v13   ;;  %v1712_v16 = vld [vmem:[%s2829_s0 + $0x68] ss:$0 sps:$4 sm:$0xff]   ;;  %v223_v20 = vld [vmem:[%s2831_s3 + $0x50] sm:$0xff]  ;;  %v213_v24 = vld [vmem:[%s2831_s3] sm:$0xff] }
   0x7   :  { %1334 = vmatpush3.bf16.msra.mxu1 %v1701_v6  ;;  %v214_v19 = vld [vmem:[%s2831_s3 + $0x8] sm:$0xff]  ;;  %v127_v21 = vsel %vm119_vm1, %v1712_v16, 0  ;;  %v121_v22 = vsel %vm119_vm1, %v1274_v18, 0  ;;  %v241_v27 = vld [vmem:[%s2831_s3 + $0xe0] sm:$0xff]  ;;  %v231_v31 = vld [vmem:[%s2831_s3 + $0x90] sm:$0xff] }
   0x8   :  { %132 = vmatpush1.bf16.msra.mxu0 %v1702_v7  ;;  %1335 = vmatprep.subr.bf16.mxu1 %v1714_v0  ;;  %v1356_v23 = vpack.c.bf16 %v223_v20, %v214_v19  ;;  %v222_v25 = vld [vmem:[%s2831_s3 + $0x48] sm:$0xff]  ;;  %v18_v28 = vld [vmem:[%s2832_s1] sm:$0xf]  ;;  %v1360_v30 = vpack.c.bf16 %v241_v27, %v232_v26  ;;  %v240_v32 = vld [vmem:[%s2831_s3 + $0xd8] sm:$0xff] }
   0x9   :  { %133 = vmatprep.subr.bf16.mxu0 %v1703_v8  ;;  %v1358_v29 = vpack.c.bf16 %v222_v25, %v213_v24  ;;  %v250_v33 = vld [vmem:[%s2831_s3 + $0x128] sm:$0xff]  ;;  %v259_v34 = vld [vmem:[%s2831_s3 + $0x170] sm:$0xff]  ;;  %v1362_v35 = vpack.c.bf16 %v240_v32, %v231_v31  ;;  %v249_v37 = vld [vmem:[%s2831_s3 + $0x120] sm:$0xff] }
   0xa   :  { %v1364_v36 = vpack.c.bf16 %v259_v34, %v250_v33  ;;  %v258_v38 = vld [vmem:[%s2831_s3 + $0x168] sm:$0xff]  ;;  %v268_v39 = vld [vmem:[%s2831_s3 + $0x1b8] sm:$0xff]  ;;  %v277_v40 = vld [vmem:[%s2831_s3 + $0x200] sm:$0xff] }
   0xb   :  { %1336 = vmatpush3.bf16.msra.mxu1 %v1705_v9  ;;  %v1366_v41 = vpack.c.bf16 %v258_v38, %v249_v37  ;;  %v267_v42 = vld [vmem:[%s2831_s3 + $0x1b0] sm:$0xff]  ;;  %v276_v43 = vld [vmem:[%s2831_s3 + $0x1f8] sm:$0xff]  ;;  %v1368_v44 = vpack.c.bf16 %v277_v40, %v268_v39  ;;  %v286_v45 = vld [vmem:[%s2831_s3 + $0x248] sm:$0xff] }
   0xc   :  { %134 = vmatpush1.bf16.msra.mxu0 %v1706_v10  ;;  %1337 = vmatprep.subr.bf16.mxu1 %v1714_v0  ;;  %v295_v46 = vld [vmem:[%s2831_s3 + $0x290] sm:$0xff]  ;;  %v502_v47 = vld [vmem:[%s2831_s3 + $0x908] sm:$0xff]  ;;  %v501_v49 = vld [vmem:[%s2831_s3 + $0x900] sm:$0xff]  ;;  %v1370_v53 = vpack.c.bf16 %v276_v43, %v267_v42 }
   0xd   :  { %135 = vmatprep.subr.bf16.mxu0 %v1707_v11  ;;  %v511_v48 = vld [vmem:[%s2831_s3 + $0x950] sm:$0xff]  ;;  %v510_v50 = vld [vmem:[%s2831_s3 + $0x948] sm:$0xff]  ;;  %v1372_v54 = vpack.c.bf16 %v295_v46, %v286_v45  ;;  %v285_v55 = vld [vmem:[%s2831_s3 + $0x240] sm:$0xff] }
   0xe   :  { %v1420_v51 = vpack.c.bf16 %v511_v48, %v502_v47  ;;  %v1422_v52 = vpack.c.bf16 %v510_v50, %v501_v49  ;;  %v294_v56 = vld [vmem:[%s2831_s3 + $0x288] sm:$0xff]  ;;  %v304_v57 = vld [vmem:[%s2831_s3 + $0x2d8] sm:$0xff]  ;;  %v313_v58 = vld [vmem:[%s2831_s3 + $0x320] sm:$0xff] }
   0xf   :  { %1338 = vmatpush3.bf16.msra.mxu1 %v1709_v14  ;;  %v1374_v59 = vpack.c.bf16 %v294_v56, %v285_v55  ;;  %v1376_v60 = vpack.c.bf16 %v313_v58, %v304_v57  ;;  %v303_v61 = vld [vmem:[%s2831_s3 + $0x2d0] sm:$0xff]  ;;  %v312_v62 = vld [vmem:[%s2831_s3 + $0x318] sm:$0xff]  ;;  %v322_v63 = vld [vmem:[%s2831_s3 + $0x368] sm:$0xff] }
  0x10   :  { %136 = vmatpush1.bf16.msra.mxu0 %v1710_v15  ;;  %1339 = vmatprep.subr.bf16.mxu1 %v1714_v0  ;;  %v331_v1 = vld [vmem:[%s2831_s3 + $0x3b0] sm:$0xff]  ;;  %v1378_v2 = vpack.c.bf16 %v312_v62, %v303_v61  ;;  %v321_v4 = vld [vmem:[%s2831_s3 + $0x360] sm:$0xff]  ;;  %v330_v5 = vld [vmem:[%s2831_s3 + $0x3a8] sm:$0xff] }
  0x11   :  { %1277 = vmatprep.subr.msk.bf16.mxu0 %vm119_vm1, %v1275_v17  ;;  %v1380_v3 = vpack.c.bf16 %v331_v1, %v322_v63  ;;  %v340_v6 = vld [vmem:[%s2831_s3 + $0x3f8] sm:$0xff]  ;;  %v349_v7 = vld [vmem:[%s2831_s3 + $0x440] sm:$0xff]  ;;  %v1382_v8 = vpack.c.bf16 %v330_v5, %v321_v4  ;;  %v339_v10 = vld [vmem:[%s2831_s3 + $0x3f0] sm:$0xff] }
  0x12   :  { %v1384_v9 = vpack.c.bf16 %v349_v7, %v340_v6  ;;  %v348_v11 = vld [vmem:[%s2831_s3 + $0x438] sm:$0xff]  ;;  %v358_v12 = vld [vmem:[%s2831_s3 + $0x488] sm:$0xff]  ;;  %v367_v13 = vld [vmem:[%s2831_s3 + $0x4d0] sm:$0xff] }
  0x13   :  { %1340 = vmatpush3.bf16.msra.mxu1 %v127_v21  ;;  %v1386_v14 = vpack.c.bf16 %v348_v11, %v339_v10  ;;  %v1388_v15 = vpack.c.bf16 %v367_v13, %v358_v12  ;;  %v357_v16 = vld [vmem:[%s2831_s3 + $0x480] sm:$0xff]  ;;  %v366_v17 = vld [vmem:[%s2831_s3 + $0x4c8] sm:$0xff]  ;;  %v376_v18 = vld [vmem:[%s2831_s3 + $0x518] sm:$0xff] }
  0x14   :  { %138 = vmatpush1.bf16.msra.mxu0 %v121_v22  ;;  %1421 = vmatprep.subr.bf16.mxu1 %v1420_v51  ;;  %v385_v19 = vld [vmem:[%s2831_s3 + $0x560] sm:$0xff]  ;;  %v1390_v20 = vpack.c.bf16 %v366_v17, %v357_v16  ;;  %v375_v22 = vld [vmem:[%s2831_s3 + $0x510] sm:$0xff]  ;;  %v394_v24 = vld [vmem:[%s2831_s3 + $0x5a8] sm:$0xff] }
  0x15   :  { %1357 = vmatprep.subr.bf16.mxu0 %v1356_v23  ;;  %v1392_v21 = vpack.c.bf16 %v385_v19, %v376_v18  ;;  %v384_v23 = vld [vmem:[%s2831_s3 + $0x558] sm:$0xff]  ;;  %v403_v25 = vld [vmem:[%s2831_s3 + $0x5f0] sm:$0xff]  ;;  %v421_v31 = vld [vmem:[%s2831_s3 + $0x680] sm:$0xff] }
  0x16   :  { %1342 = vmatmul.mubr.msk.bf16.vlgmr.msra.gmra.mrb[0].mxu1 %vm115_vm2, %v18_v28  ;;  %v1394_v26 = vpack.c.bf16 %v384_v23, %v375_v22  ;;  %v1396_v27 = vpack.c.bf16 %v403_v25, %v394_v24  ;;  %v411_v34 = vld [vmem:[%s2831_s3 + $0x630] sm:$0xff]  ;;  %v429_v40 = vld [vmem:[%s2831_s3 + $0x6c0] sm:$0xff]  ;;  %v448_v42 = vld [vmem:[%s2831_s3 + $0x758] sm:$0xff] }
  0x17   :  { %1278 = vmatmul.mubr.msk.bf16.vlgmr.msra.gmra.mrb[0].mxu0 %vm115_vm2, %v18_v28  ;;  %676 = vmatprep.mubr.f32.mxu1 %v1714_v0  ;;  %v393_v28 = vld [vmem:[%s2831_s3 + $0x5a0] sm:$0xff]  ;;  %v439_v37 = vld [vmem:[%s2831_s3 + $0x710] sm:$0xff]  ;;  %v456_v47 = vld [vmem:[%s2831_s3 + $0x798] sm:$0xff] }
  0x18   :  { %1359 = vmatpush1.bf16.msra.mxu0 %v1358_v29  ;;  %1423 = vmatpush1.bf16.msra.mxu1 %v1422_v52  ;;  %v402_v29 = vld [vmem:[%s2831_s3 + $0x5e8] sm:$0xff]  ;;  %v457_v43 = vld [vmem:[%s2831_s3 + $0x7a0] sm:$0xff]  ;;  %v447_v46 = vld [vmem:[%s2831_s3 + $0x750] sm:$0xff] }
  0x19   :  { %1361 = vmatprep.subr.bf16.mxu0 %v1360_v30  ;;  %v412_v30 = vld [vmem:[%s2831_s3 + $0x638] sm:$0xff]  ;;  %v1398_v32 = vpack.c.bf16 %v402_v29, %v393_v28  ;;  %v1408_v45 = vpack.c.bf16 %v457_v43, %v448_v42  ;;  %v466_v48 = vld [vmem:[%s2831_s3 + $0x7e8] sm:$0xff]  ;;  %v475_v49 = vld [vmem:[%s2831_s3 + $0x830] sm:$0xff]  ;;  %v1410_v50 = vpack.c.bf16 %v456_v47, %v447_v46 }
  0x1a   :  { %v1400_v33 = vpack.c.bf16 %v421_v31, %v412_v30  ;;  %v1412_v51 = vpack.c.bf16 %v475_v49, %v466_v48  ;;  %v465_v52 = vld [vmem:[%s2831_s3 + $0x7e0] sm:$0xff]  ;;  %v519_v57 = vld [vmem:[%s2831_s3 + $0x990] sm:$0xff]  ;;  %v528_v58 = vld [vmem:[%s2831_s3 + $0x9d8] sm:$0xff] }
  0x1b   :  { %v529_v56 = vld [vmem:[%s2831_s3 + $0x9e0] sm:$0xff]  ;;  %v484_v61 = vld [vmem:[%s2831_s3 + $0x878] sm:$0xff]  ;;  %v483_v1 = vld [vmem:[%s2831_s3 + $0x870] sm:$0xff] }
  0x1c   :  { %1363 = vmatpush1.bf16.msra.mxu0 %v1362_v35  ;;  %v420_v35 = vld [vmem:[%s2831_s3 + $0x678] sm:$0xff]  ;;  %v493_v62 = vld [vmem:[%s2831_s3 + $0x8c0] sm:$0xff]  ;;  %v218_v7 = vld [vmem:[%s2831_s3 + $0x28] sm:$0xff] }
  0x1d   :  { %1365 = vmatprep.subr.bf16.mxu0 %v1364_v36  ;;  %v430_v36 = vld [vmem:[%s2831_s3 + $0x6c8] sm:$0xff]  ;;  %v1402_v38 = vpack.c.bf16 %v420_v35, %v411_v34  ;;  %v1416_v63 = vpack.c.bf16 %v493_v62, %v484_v61  ;;  %v225_v5 = vld [vmem:[%s2831_s3 + $0x60] sm:$0xff]  ;;  %v215_v11 = vld [vmem:[%s2831_s3 + $0x10] sm:$0xff] }
  0x1e   :  { %v1404_v39 = vpack.c.bf16 %v439_v37, %v430_v36  ;;  %v224_v12 = vld [vmem:[%s2831_s3 + $0x58] sm:$0xff]  ;;  %v234_v17 = vld [vmem:[%s2831_s3 + $0xa8] sm:$0xff]  ;;  %v243_v18 = vld [vmem:[%s2831_s3 + $0xf0] sm:$0xff] }
  0x1f   :  { %v1430_v22 = vpack.c.bf16 %v224_v12, %v215_v11  ;;  %v217_v23 = vld [vmem:[%s2831_s3 + $0x20] sm:$0xff]  ;;  %v226_v24 = vld [vmem:[%s2831_s3 + $0x68] sm:$0xff]  ;;  %v236_v30 = vld [vmem:[%s2831_s3 + $0xb8] sm:$0xff] }
  0x20   :  { %1367 = vmatpush1.bf16.msra.mxu0 %v1366_v41  ;;  %v438_v41 = vld [vmem:[%s2831_s3 + $0x708] sm:$0xff]  ;;  %v233_v25 = vld [vmem:[%s2831_s3 + $0xa0] sm:$0xff]  ;;  %v252_v34 = vld [vmem:[%s2831_s3 + $0x138] sm:$0xff] }
  0x21   :  { %1369 = vmatprep.subr.bf16.mxu0 %v1368_v44  ;;  %v1406_v44 = vpack.c.bf16 %v438_v41, %v429_v40  ;;  %v242_v29 = vld [vmem:[%s2831_s3 + $0xe8] sm:$0xff]  ;;  %v245_v31 = vld [vmem:[%s2831_s3 + $0x100] sm:$0xff]  ;;  %v235_v42 = vld [vmem:[%s2831_s3 + $0xb0] sm:$0xff] }
  0x22   :  { %v261_v35 = vld [vmem:[%s2831_s3 + $0x180] sm:$0xff]  ;;  %v1434_v40 = vpack.c.bf16 %v242_v29, %v233_v25  ;;  %v1504_v41 = vpack.c.bf16 %v245_v31, %v236_v30  ;;  %v244_v43 = vld [vmem:[%s2831_s3 + $0xf8] sm:$0xff]  ;;  %v254_v47 = vld [vmem:[%s2831_s3 + $0x148] sm:$0xff] }
  0x23   :  { %v260_v46 = vld [vmem:[%s2831_s3 + $0x178] sm:$0xff]  ;;  %v263_v48 = vld [vmem:[%s2831_s3 + $0x190] sm:$0xff]  ;;  %v270_v49 = vld [vmem:[%s2831_s3 + $0x1c8] sm:$0xff] }
  0x24   :  { %1371 = vmatpush1.bf16.msra.mxu0 %v1370_v53  ;;  %v474_v53 = vld [vmem:[%s2831_s3 + $0x828] sm:$0xff]  ;;  %v288_v61 = vld [vmem:[%s2831_s3 + $0x258] sm:$0xff]  ;;  %v297_v62 = vld [vmem:[%s2831_s3 + $0x2a0] sm:$0xff] }
  0x25   :  { %1373 = vmatprep.subr.bf16.mxu0 %v1372_v54  ;;  %v520_v54 = vld [vmem:[%s2831_s3 + $0x998] sm:$0xff]  ;;  %v1414_v55 = vpack.c.bf16 %v474_v53, %v465_v52  ;;  %v1508_v53 = vpack.c.bf16 %v263_v48, %v254_v47  ;;  %v315_v11 = vld [vmem:[%s2831_s3 + $0x330] sm:$0xff]  ;;  %v353_v48 = vld [vmem:[%s2831_s3 + $0x460] sm:$0xff] }
  0x26   :  { %v316_v29 = vld [vmem:[%s2831_s3 + $0x338] sm:$0xff]  ;;  %v323_v30 = vld [vmem:[%s2831_s3 + $0x370] sm:$0xff] }
  0x27   :  { %v344_v47 = vld [vmem:[%s2831_s3 + $0x418] sm:$0xff] }
  0x28   :  { %1375 = vmatpush1.bf16.msra.mxu0 %v1374_v59  ;;  %v1424_v59 = vpack.c.bf16 %v529_v56, %v520_v54  ;;  %v253_v54 = vld [vmem:[%s2831_s3 + $0x140] sm:$0xff] }
  0x29   :  { %1377 = vmatprep.subr.bf16.mxu0 %v1376_v60  ;;  %v1426_v60 = vpack.c.bf16 %v528_v58, %v519_v57  ;;  %v269_v56 = vld [vmem:[%s2831_s3 + $0x1c0] sm:$0xff]  ;;  %v278_v58 = vld [vmem:[%s2831_s3 + $0x208] sm:$0xff] }
  0x2a   :  { %1425 = vmatprep.subr.bf16.mxu1 %v1424_v59  ;;  %v272_v59 = vld [vmem:[%s2831_s3 + $0x1d8] sm:$0xff] }
  0x2b   :  { %1427 = vmatpush1.bf16.msra.mxu1 %v1426_v60  ;;  %v281_v60 = vld [vmem:[%s2831_s3 + $0x220] sm:$0xff] }
  0x2c   :  { %1379 = vmatpush1.bf16.msra.mxu0 %v1378_v2  ;;  %v492_v2 = vld [vmem:[%s2831_s3 + $0x8b8] sm:$0xff] }
  0x2d   :  { %1381 = vmatprep.subr.bf16.mxu0 %v1380_v3  ;;  %v216_v3 = vld [vmem:[%s2831_s3 + $0x18] sm:$0xff]  ;;  %v1418_v4 = vpack.c.bf16 %v492_v2, %v483_v1  ;;  %v1442_v1 = vpack.c.bf16 %v278_v58, %v269_v56  ;;  %v1512_v2 = vpack.c.bf16 %v281_v60, %v272_v59  ;;  %v359_v56 = vld [vmem:[%s2831_s3 + $0x490] sm:$0xff]  ;;  %v362_v59 = vld [vmem:[%s2831_s3 + $0x4a8] sm:$0xff] }
  0x2e   :  { %v1428_v6 = vpack.c.bf16 %v225_v5, %v216_v3  ;;  %v271_v3 = vld [vmem:[%s2831_s3 + $0x1d0] sm:$0xff]  ;;  %v368_v58 = vld [vmem:[%s2831_s3 + $0x4d8] sm:$0xff] }
  0x2f   :  { %v287_v5 = vld [vmem:[%s2831_s3 + $0x250] sm:$0xff] }
  0x30   :  { %1383 = vmatpush1.bf16.msra.mxu0 %v1382_v8  ;;  %1429 = vmatprep.subr.bf16.mxu1 %v1428_v6  ;;  %v227_v8 = vld [vmem:[%s2831_s3 + $0x70] sm:$0xff]  ;;  %v1444_v6 = vpack.c.bf16 %v297_v62, %v288_v61  ;;  %v378_v61 = vld [vmem:[%s2831_s3 + $0x528] sm:$0xff] }
  0x31   :  { %1385 = vmatprep.subr.bf16.mxu0 %v1384_v9  ;;  %v1500_v9 = vpack.c.bf16 %v227_v8, %v218_v7  ;;  %v296_v7 = vld [vmem:[%s2831_s3 + $0x298] sm:$0xff]  ;;  %v290_v8 = vld [vmem:[%s2831_s3 + $0x268] sm:$0xff]  ;;  %v371_v60 = vld [vmem:[%s2831_s3 + $0x4f0] sm:$0xff] }
  0x32   :  { %v387_v62 = vld [vmem:[%s2831_s3 + $0x570] sm:$0xff] }
  0x34   :  { %1387 = vmatpush1.bf16.msra.mxu0 %v1386_v14 }
  0x35   :  { %1389 = vmatprep.subr.bf16.mxu0 %v1388_v15 }
  0x38   :  { %1391 = vmatpush1.bf16.msra.mxu0 %v1390_v20 }
  0x39   :  { %1393 = vmatprep.subr.bf16.mxu0 %v1392_v21 }
  0x3c   :  { %1395 = vmatpush1.bf16.msra.mxu0 %v1394_v26 }
  0x3d   :  { %1397 = vmatprep.subr.bf16.mxu0 %v1396_v27 }
  0x40   :  { %1399 = vmatpush1.bf16.msra.mxu0 %v1398_v32 }
  0x41   :  { %1401 = vmatprep.subr.bf16.mxu0 %v1400_v33  ;;  %v1432_v33 = vpack.c.bf16 %v243_v18, %v234_v17  ;;  %v305_v17 = vld [vmem:[%s2831_s3 + $0x2e0] sm:$0xff] }
  0x44   :  { %1403 = vmatpush1.bf16.msra.mxu0 %v1402_v38  ;;  %v1502_v38 = vpack.c.bf16 %v226_v24, %v217_v23  ;;  %v333_v23 = vld [vmem:[%s2831_s3 + $0x3c0] sm:$0xff] }
  0x45   :  { %1405 = vmatprep.subr.bf16.mxu0 %v1404_v39 }
  0x48   :  { %1407 = vmatpush1.bf16.msra.mxu0 %v1406_v44  ;;  %v251_v44 = vld [vmem:[%s2831_s3 + $0x130] sm:$0xff] }
  0x49   :  { %1409 = vmatprep.subr.bf16.mxu0 %v1408_v45  ;;  %v1436_v45 = vpack.c.bf16 %v261_v35, %v252_v34  ;;  %v1438_v52 = vpack.c.bf16 %v260_v46, %v251_v44  ;;  %v335_v34 = vld [vmem:[%s2831_s3 + $0x3d0] sm:$0xff]  ;;  %v342_v35 = vld [vmem:[%s2831_s3 + $0x408] sm:$0xff]  ;;  %v341_v44 = vld [vmem:[%s2831_s3 + $0x400] sm:$0xff] }
  0x4a   :  { %v350_v46 = vld [vmem:[%s2831_s3 + $0x448] sm:$0xff] }
  0x4c   :  { %1411 = vmatpush1.bf16.msra.mxu0 %v1410_v50  ;;  %v279_v50 = vld [vmem:[%s2831_s3 + $0x210] sm:$0xff] }
  0x4d   :  { %1413 = vmatprep.subr.bf16.mxu0 %v1412_v51  ;;  %v1506_v51 = vpack.c.bf16 %v244_v43, %v235_v42  ;;  %v1440_v57 = vpack.c.bf16 %v279_v50, %v270_v49  ;;  %v325_v42 = vld [vmem:[%s2831_s3 + $0x380] sm:$0xff]  ;;  %v334_v43 = vld [vmem:[%s2831_s3 + $0x3c8] sm:$0xff]  ;;  %v360_v49 = vld [vmem:[%s2831_s3 + $0x498] sm:$0xff] }
  0x4e   :  { %v369_v50 = vld [vmem:[%s2831_s3 + $0x4e0] sm:$0xff] }
  0x50   :  { %1415 = vmatpush1.bf16.msra.mxu0 %v1414_v55  ;;  %v262_v55 = vld [vmem:[%s2831_s3 + $0x188] sm:$0xff] }
  0x51   :  { %1417 = vmatprep.subr.bf16.mxu0 %v1416_v63  ;;  %v1510_v63 = vpack.c.bf16 %v262_v55, %v253_v54  ;;  %v343_v54 = vld [vmem:[%s2831_s3 + $0x410] sm:$0xff]  ;;  %v352_v55 = vld [vmem:[%s2831_s3 + $0x458] sm:$0xff] }
  0x54   :  { %1419 = vmatpush1.bf16.msra.mxu0 %v1418_v4  ;;  %v280_v4 = vld [vmem:[%s2831_s3 + $0x218] sm:$0xff] }
  0x55   :  { %1501 = vmatprep.subr.bf16.mxu0 %v1500_v9  ;;  %v299_v9 = vld [vmem:[%s2831_s3 + $0x2b0] sm:$0xff]  ;;  %v1514_v12 = vpack.c.bf16 %v280_v4, %v271_v3  ;;  %v361_v3 = vld [vmem:[%s2831_s3 + $0x4a0] sm:$0xff]  ;;  %v370_v4 = vld [vmem:[%s2831_s3 + $0x4e8] sm:$0xff] }
  0x85   :  { %v41_v10 = vpop.permute.xlu0 %40 }
  0xe9   :  { %v204_v13 = vpop.f32.mrb[0].mxu1 }
  0xea   :  { %v205_v14 = vadd.f32 %v204_v13, %v41_v10  ;;  %v163_v15 = vpop.f32.mrb[0].mxu0  ;;  %v1343_v16 = vpop.f32.mrb[1].mxu1  ;;  %v1446_v13 = vpack.c.bf16 %v296_v7, %v287_v5  ;;  %v377_v5 = vld [vmem:[%s2831_s3 + $0x520] sm:$0xff]  ;;  %v386_v7 = vld [vmem:[%s2831_s3 + $0x568] sm:$0xff] }
  0xeb   :  { %v164_v19 = vadd.f32 %v163_v15, %v41_v10  ;;  %v165_v20 = vpop.f32.mrb[1].mxu0  ;;  %v207_v21 = vpop.f32.mrb[2].mxu1  ;;  %v289_v15 = vld [vmem:[%s2831_s3 + $0x260] sm:$0xff]  ;;  %v298_v16 = vld [vmem:[%s2831_s3 + $0x2a8] sm:$0xff] }
  0xec   :  { %v2048_v26 = vmax.f32 %v205_v14, 0.0  ;;  %v166_v27 = vadd.f32 %v165_v20, %v41_v10  ;;  %v1344_v28 = vpop.f32.mrb[3].mxu1  ;;  %v167_v32 = vpop.f32.mrb[2].mxu0  ;;  %v306_v10 = vld [vmem:[%s2831_s3 + $0x2e8] sm:$0xff]  ;;  %v1516_v14 = vpack.c.bf16 %v299_v9, %v290_v8  ;;  %v308_v20 = vld [vmem:[%s2831_s3 + $0x2f8] sm:$0xff]  ;;  %v317_v21 = vld [vmem:[%s2831_s3 + $0x340] sm:$0xff]  ;;  %v1518_v24 = vpack.c.bf16 %v298_v16, %v289_v15 }
  0xed   :  { %v168_v36 = vpop.f32.mrb[3].mxu0  ;;  %v2069_v39 = vmax.f32 %v164_v19, 0.0  ;;  %v1448_v18 = vpack.c.bf16 %v315_v11, %v306_v10  ;;  %v314_v19 = vld [vmem:[%s2831_s3 + $0x328] sm:$0xff]  ;;  %v307_v28 = vld [vmem:[%s2831_s3 + $0x2f0] sm:$0xff]  ;;  %v332_v32 = vld [vmem:[%s2831_s3 + $0x3b8] sm:$0xff] }
  0xee   :  { %v2065_v37 = vmax.f32 %v166_v27, 0.0  ;;  %1280 = vmatmul.mubr.msk.f32.vlgmr.msra.gmra.mrb[4].mxu1 %vm537_vm3, %v2048_v26  ;;  %v1450_v25 = vpack.c.bf16 %v314_v19, %v305_v17  ;;  %v1520_v27 = vpack.c.bf16 %v317_v21, %v308_v20  ;;  %v351_v36 = vld [vmem:[%s2831_s3 + $0x450] sm:$0xff]  ;;  %v380_v8 = vld [vmem:[%s2831_s3 + $0x538] sm:$0xff]  ;;  %v389_v9 = vld [vmem:[%s2831_s3 + $0x580] sm:$0xff] }
  0xef   :  { %1431 = vmatpush1.bf16.msra.mxu1 %v1430_v22  ;;  %v324_v22 = vld [vmem:[%s2831_s3 + $0x378] sm:$0xff]  ;;  %v405_v11 = vld [vmem:[%s2831_s3 + $0x600] sm:$0xff]  ;;  %v379_v15 = vld [vmem:[%s2831_s3 + $0x530] sm:$0xff] }
  0xf0   :  { %605 = vmatprep.mubr.f32.mxu0 %v2065_v37  ;;  %747 = vmatprep.mubr.f32.mxu1 %v2065_v37  ;;  %v1452_v31 = vpack.c.bf16 %v333_v23, %v324_v22  ;;  %v396_v10 = vld [vmem:[%s2831_s3 + $0x5b8] sm:$0xff]  ;;  %v395_v17 = vld [vmem:[%s2831_s3 + $0x5b0] sm:$0xff]  ;;  %v398_v20 = vld [vmem:[%s2831_s3 + $0x5c8] sm:$0xff] }
  0xf1   :  { %606 = vmatmul.mubr.f32.vlgmr.msra.gmra.mrb[4].mxu0 %v2069_v39  ;;  %1433 = vmatprep.subr.bf16.mxu1 %v1432_v33  ;;  %v326_v33 = vld [vmem:[%s2831_s3 + $0x388] sm:$0xff]  ;;  %v388_v16 = vld [vmem:[%s2831_s3 + $0x578] sm:$0xff]  ;;  %v407_v21 = vld [vmem:[%s2831_s3 + $0x610] sm:$0xff] }
  0xf2   :  { %1503 = vmatpush1.bf16.msra.mxu0 %v1502_v38  ;;  %889 = vmatprep.mubr.f32.mxu0 %v2065_v37  ;;  %v1522_v38 = vpack.c.bf16 %v316_v29, %v307_v28  ;;  %v404_v19 = vld [vmem:[%s2831_s3 + $0x5f8] sm:$0xff]  ;;  %v414_v22 = vld [vmem:[%s2831_s3 + $0x648] sm:$0xff]  ;;  %v423_v23 = vld [vmem:[%s2831_s3 + $0x690] sm:$0xff] }
  0xf3   :  { %1435 = vmatpush1.bf16.msra.mxu1 %v1434_v40  ;;  %1505 = vmatprep.subr.bf16.mxu0 %v1504_v41  ;;  %v1454_v40 = vpack.c.bf16 %v332_v32, %v323_v30  ;;  %v1524_v41 = vpack.c.bf16 %v335_v34, %v326_v33  ;;  %v397_v28 = vld [vmem:[%s2831_s3 + $0x5c0] sm:$0xff]  ;;  %v406_v29 = vld [vmem:[%s2831_s3 + $0x608] sm:$0xff]  ;;  %v416_v33 = vld [vmem:[%s2831_s3 + $0x658] sm:$0xff] }
  0xf4   :  { %1437 = vmatprep.subr.bf16.mxu1 %v1436_v45  ;;  %v1456_v45 = vpack.c.bf16 %v351_v36, %v342_v35  ;;  %v413_v30 = vld [vmem:[%s2831_s3 + $0x640] sm:$0xff]  ;;  %v422_v32 = vld [vmem:[%s2831_s3 + $0x688] sm:$0xff]  ;;  %v432_v35 = vld [vmem:[%s2831_s3 + $0x6d8] sm:$0xff] }
  0xf5   :  { %v425_v34 = vld [vmem:[%s2831_s3 + $0x6a0] sm:$0xff] }
  0xf6   :  { %1507 = vmatpush1.bf16.msra.mxu0 %v1506_v51  ;;  %v1526_v51 = vpack.c.bf16 %v334_v43, %v325_v42  ;;  %v441_v36 = vld [vmem:[%s2831_s3 + $0x720] sm:$0xff]  ;;  %v415_v42 = vld [vmem:[%s2831_s3 + $0x650] sm:$0xff]  ;;  %v424_v43 = vld [vmem:[%s2831_s3 + $0x698] sm:$0xff] }
  0xf7   :  { %1439 = vmatpush1.bf16.msra.mxu1 %v1438_v52  ;;  %1509 = vmatprep.subr.bf16.mxu0 %v1508_v53  ;;  %v1458_v52 = vpack.c.bf16 %v350_v46, %v341_v44  ;;  %v1528_v53 = vpack.c.bf16 %v353_v48, %v344_v47  ;;  %v431_v44 = vld [vmem:[%s2831_s3 + $0x6d0] sm:$0xff]  ;;  %v440_v46 = vld [vmem:[%s2831_s3 + $0x718] sm:$0xff]  ;;  %v434_v47 = vld [vmem:[%s2831_s3 + $0x6e8] sm:$0xff] }
  0xf8   :  { %1441 = vmatprep.subr.bf16.mxu1 %v1440_v57  ;;  %v1460_v57 = vpack.c.bf16 %v369_v50, %v360_v49  ;;  %v443_v48 = vld [vmem:[%s2831_s3 + $0x730] sm:$0xff]  ;;  %v450_v49 = vld [vmem:[%s2831_s3 + $0x768] sm:$0xff] }
  0xf9   :  { %v459_v50 = vld [vmem:[%s2831_s3 + $0x7b0] sm:$0xff] }
  0xfa   :  { %1511 = vmatpush1.bf16.msra.mxu0 %v1510_v63  ;;  %v1530_v63 = vpack.c.bf16 %v352_v55, %v343_v54  ;;  %v433_v54 = vld [vmem:[%s2831_s3 + $0x6e0] sm:$0xff]  ;;  %v442_v55 = vld [vmem:[%s2831_s3 + $0x728] sm:$0xff] }
  0xfb   :  { %1443 = vmatpush1.bf16.msra.mxu1 %v1442_v1  ;;  %1513 = vmatprep.subr.bf16.mxu0 %v1512_v2  ;;  %v1462_v1 = vpack.c.bf16 %v368_v58, %v359_v56  ;;  %v1532_v2 = vpack.c.bf16 %v371_v60, %v362_v59  ;;  %v449_v56 = vld [vmem:[%s2831_s3 + $0x760] sm:$0xff]  ;;  %v458_v58 = vld [vmem:[%s2831_s3 + $0x7a8] sm:$0xff]  ;;  %v452_v59 = vld [vmem:[%s2831_s3 + $0x778] sm:$0xff] }
  0xfc   :  { %1445 = vmatprep.subr.bf16.mxu1 %v1444_v6  ;;  %v1464_v6 = vpack.c.bf16 %v387_v62, %v378_v61  ;;  %v461_v60 = vld [vmem:[%s2831_s3 + $0x7c0] sm:$0xff]  ;;  %v468_v61 = vld [vmem:[%s2831_s3 + $0x7f8] sm:$0xff] }
  0xfd   :  { %v477_v62 = vld [vmem:[%s2831_s3 + $0x840] sm:$0xff] }
  0xfe   :  { %1515 = vmatpush1.bf16.msra.mxu0 %v1514_v12  ;;  %v1534_v12 = vpack.c.bf16 %v370_v4, %v361_v3  ;;  %v451_v3 = vld [vmem:[%s2831_s3 + $0x770] sm:$0xff]  ;;  %v460_v4 = vld [vmem:[%s2831_s3 + $0x7b8] sm:$0xff] }
  0xff   :  { %1447 = vmatpush1.bf16.msra.mxu1 %v1446_v13  ;;  %1517 = vmatprep.subr.bf16.mxu0 %v1516_v14  ;;  %v1466_v13 = vpack.c.bf16 %v386_v7, %v377_v5  ;;  %v1536_v14 = vpack.c.bf16 %v389_v9, %v380_v8  ;;  %v467_v5 = vld [vmem:[%s2831_s3 + $0x7f0] sm:$0xff]  ;;  %v476_v7 = vld [vmem:[%s2831_s3 + $0x838] sm:$0xff]  ;;  %v470_v8 = vld [vmem:[%s2831_s3 + $0x808] sm:$0xff] }
 0x100   :  { %1449 = vmatprep.subr.bf16.mxu1 %v1448_v18  ;;  %v1468_v18 = vpack.c.bf16 %v405_v11, %v396_v10  ;;  %v479_v9 = vld [vmem:[%s2831_s3 + $0x850] sm:$0xff]  ;;  %v486_v10 = vld [vmem:[%s2831_s3 + $0x888] sm:$0xff] }
 0x101   :  { %v495_v11 = vld [vmem:[%s2831_s3 + $0x8d0] sm:$0xff] }
 0x102   :  { %1519 = vmatpush1.bf16.msra.mxu0 %v1518_v24  ;;  %v1538_v24 = vpack.c.bf16 %v388_v16, %v379_v15  ;;  %v469_v15 = vld [vmem:[%s2831_s3 + $0x800] sm:$0xff]  ;;  %v478_v16 = vld [vmem:[%s2831_s3 + $0x848] sm:$0xff] }
 0x103   :  { %1451 = vmatpush1.bf16.msra.mxu1 %v1450_v25  ;;  %1521 = vmatprep.subr.bf16.mxu0 %v1520_v27  ;;  %v1470_v25 = vpack.c.bf16 %v404_v19, %v395_v17  ;;  %v1540_v27 = vpack.c.bf16 %v407_v21, %v398_v20  ;;  %v485_v17 = vld [vmem:[%s2831_s3 + $0x880] sm:$0xff]  ;;  %v494_v19 = vld [vmem:[%s2831_s3 + $0x8c8] sm:$0xff]  ;;  %v488_v20 = vld [vmem:[%s2831_s3 + $0x898] sm:$0xff] }
 0x104   :  { %1453 = vmatprep.subr.bf16.mxu1 %v1452_v31  ;;  %v1472_v31 = vpack.c.bf16 %v423_v23, %v414_v22  ;;  %v497_v21 = vld [vmem:[%s2831_s3 + $0x8e0] sm:$0xff]  ;;  %v504_v22 = vld [vmem:[%s2831_s3 + $0x918] sm:$0xff] }
 0x105   :  { %v513_v23 = vld [vmem:[%s2831_s3 + $0x960] sm:$0xff] }
 0x106   :  { %1523 = vmatpush1.bf16.msra.mxu0 %v1522_v38  ;;  %v1542_v38 = vpack.c.bf16 %v406_v29, %v397_v28  ;;  %v487_v28 = vld [vmem:[%s2831_s3 + $0x890] sm:$0xff]  ;;  %v496_v29 = vld [vmem:[%s2831_s3 + $0x8d8] sm:$0xff] }
 0x107   :  { %1455 = vmatpush1.bf16.msra.mxu1 %v1454_v40  ;;  %1525 = vmatprep.subr.bf16.mxu0 %v1524_v41  ;;  %v1474_v40 = vpack.c.bf16 %v422_v32, %v413_v30  ;;  %v1544_v41 = vpack.c.bf16 %v425_v34, %v416_v33  ;;  %v503_v30 = vld [vmem:[%s2831_s3 + $0x910] sm:$0xff]  ;;  %v512_v32 = vld [vmem:[%s2831_s3 + $0x958] sm:$0xff]  ;;  %v506_v33 = vld [vmem:[%s2831_s3 + $0x928] sm:$0xff] }
 0x108   :  { %1457 = vmatprep.subr.bf16.mxu1 %v1456_v45  ;;  %v1476_v45 = vpack.c.bf16 %v441_v36, %v432_v35  ;;  %v515_v34 = vld [vmem:[%s2831_s3 + $0x970] sm:$0xff]  ;;  %v522_v35 = vld [vmem:[%s2831_s3 + $0x9a8] sm:$0xff] }
 0x109   :  { %v531_v36 = vld [vmem:[%s2831_s3 + $0x9f0] sm:$0xff] }
 0x10a   :  { %1527 = vmatpush1.bf16.msra.mxu0 %v1526_v51  ;;  %v1546_v51 = vpack.c.bf16 %v424_v43, %v415_v42  ;;  %v505_v42 = vld [vmem:[%s2831_s3 + $0x920] sm:$0xff]  ;;  %v514_v43 = vld [vmem:[%s2831_s3 + $0x968] sm:$0xff] }
 0x10b   :  { %1459 = vmatpush1.bf16.msra.mxu1 %v1458_v52  ;;  %1529 = vmatprep.subr.bf16.mxu0 %v1528_v53  ;;  %v1478_v52 = vpack.c.bf16 %v440_v46, %v431_v44  ;;  %v1548_v53 = vpack.c.bf16 %v443_v48, %v434_v47  ;;  %v521_v44 = vld [vmem:[%s2831_s3 + $0x9a0] sm:$0xff]  ;;  %v530_v46 = vld [vmem:[%s2831_s3 + $0x9e8] sm:$0xff]  ;;  %v524_v47 = vld [vmem:[%s2831_s3 + $0x9b8] sm:$0xff] }
 0x10c   :  { %1461 = vmatprep.subr.bf16.mxu1 %v1460_v57  ;;  %v1480_v57 = vpack.c.bf16 %v459_v50, %v450_v49  ;;  %v533_v48 = vld [vmem:[%s2831_s3 + $0xa00] sm:$0xff]  ;;  %v220_v49 = vld [vmem:[%s2831_s3 + $0x38] sm:$0xff] }
 0x10d   :  { %v229_v50 = vld [vmem:[%s2831_s3 + $0x80] sm:$0xff] }
 0x10e   :  { %1531 = vmatpush1.bf16.msra.mxu0 %v1530_v63  ;;  %v1550_v63 = vpack.c.bf16 %v442_v55, %v433_v54  ;;  %v523_v54 = vld [vmem:[%s2831_s3 + $0x9b0] sm:$0xff]  ;;  %v532_v55 = vld [vmem:[%s2831_s3 + $0x9f8] sm:$0xff] }
 0x10f   :  { %1463 = vmatpush1.bf16.msra.mxu1 %v1462_v1  ;;  %1533 = vmatprep.subr.bf16.mxu0 %v1532_v2  ;;  %v1482_v1 = vpack.c.bf16 %v458_v58, %v449_v56  ;;  %v1552_v2 = vpack.c.bf16 %v461_v60, %v452_v59  ;;  %v1572_v56 = vpack.c.bf16 %v229_v50, %v220_v49  ;;  %v228_v58 = vld [vmem:[%s2831_s3 + $0x78] sm:$0xff]  ;;  %v365_v59 = vld [vmem:[%s2831_s3 + $0x4c0] sm:$0xff]  ;;  %v374_v60 = vld [vmem:[%s2831_s3 + $0x508] sm:$0xff] }
 0x110   :  { %1465 = vmatprep.subr.bf16.mxu1 %v1464_v6  ;;  %v1484_v6 = vpack.c.bf16 %v477_v62, %v468_v61  ;;  %v238_v61 = vld [vmem:[%s2831_s3 + $0xc8] sm:$0xff]  ;;  %v247_v62 = vld [vmem:[%s2831_s3 + $0x110] sm:$0xff] }
 0x111   :  { %v319_v49 = vld [vmem:[%s2831_s3 + $0x350] sm:$0xff] }
 0x112   :  { %1535 = vmatpush1.bf16.msra.mxu0 %v1534_v12  ;;  %v1554_v12 = vpack.c.bf16 %v460_v4, %v451_v3  ;;  %v230_v3 = vld [vmem:[%s2831_s3 + $0x88] sm:$0xff]  ;;  %v237_v4 = vld [vmem:[%s2831_s3 + $0xc0] sm:$0xff] }
 0x113   :  { %1467 = vmatpush1.bf16.msra.mxu1 %v1466_v13  ;;  %1537 = vmatprep.subr.bf16.mxu0 %v1536_v14  ;;  %v1486_v13 = vpack.c.bf16 %v476_v7, %v467_v5  ;;  %v1556_v14 = vpack.c.bf16 %v479_v9, %v470_v8  ;;  %v1644_v5 = vpack.c.bf16 %v374_v60, %v365_v59  ;;  %v246_v7 = vld [vmem:[%s2831_s3 + $0x108] sm:$0xff]  ;;  %v383_v8 = vld [vmem:[%s2831_s3 + $0x550] sm:$0xff]  ;;  %v392_v9 = vld [vmem:[%s2831_s3 + $0x598] sm:$0xff] }
 0x114   :  { %1469 = vmatprep.subr.bf16.mxu1 %v1468_v18  ;;  %v1488_v18 = vpack.c.bf16 %v495_v11, %v486_v10  ;;  %v256_v10 = vld [vmem:[%s2831_s3 + $0x158] sm:$0xff]  ;;  %v265_v11 = vld [vmem:[%s2831_s3 + $0x1a0] sm:$0xff] }
 0x115   :  { %v464_v59 = vld [vmem:[%s2831_s3 + $0x7d8] sm:$0xff] }
 0x116   :  { %1539 = vmatpush1.bf16.msra.mxu0 %v1538_v24  ;;  %v1558_v24 = vpack.c.bf16 %v478_v16, %v469_v15  ;;  %v239_v15 = vld [vmem:[%s2831_s3 + $0xd0] sm:$0xff]  ;;  %v248_v16 = vld [vmem:[%s2831_s3 + $0x118] sm:$0xff] }
 0x117   :  { %1471 = vmatpush1.bf16.msra.mxu1 %v1470_v25  ;;  %1541 = vmatprep.subr.bf16.mxu0 %v1540_v27  ;;  %v1490_v25 = vpack.c.bf16 %v494_v19, %v485_v17  ;;  %v1560_v27 = vpack.c.bf16 %v497_v21, %v488_v20  ;;  %v255_v17 = vld [vmem:[%s2831_s3 + $0x150] sm:$0xff]  ;;  %v264_v19 = vld [vmem:[%s2831_s3 + $0x198] sm:$0xff]  ;;  %v401_v20 = vld [vmem:[%s2831_s3 + $0x5e0] sm:$0xff] }
 0x118   :  { %1473 = vmatprep.subr.bf16.mxu1 %v1472_v31  ;;  %v1492_v31 = vpack.c.bf16 %v513_v23, %v504_v22  ;;  %v410_v21 = vld [vmem:[%s2831_s3 + $0x628] sm:$0xff]  ;;  %v283_v23 = vld [vmem:[%s2831_s3 + $0x230] sm:$0xff]  ;;  %v328_v60 = vld [vmem:[%s2831_s3 + $0x398] sm:$0xff] }
 0x119   :  { %v274_v22 = vld [vmem:[%s2831_s3 + $0x1e8] sm:$0xff] }
 0x11a   :  { %1543 = vmatpush1.bf16.msra.mxu0 %v1542_v38  ;;  %v1562_v38 = vpack.c.bf16 %v496_v29, %v487_v28  ;;  %v257_v28 = vld [vmem:[%s2831_s3 + $0x160] sm:$0xff]  ;;  %v266_v29 = vld [vmem:[%s2831_s3 + $0x1a8] sm:$0xff] }
 0x11b   :  { %1475 = vmatpush1.bf16.msra.mxu1 %v1474_v40  ;;  %1545 = vmatprep.subr.bf16.mxu0 %v1544_v41  ;;  %v1494_v40 = vpack.c.bf16 %v512_v32, %v503_v30  ;;  %v1564_v41 = vpack.c.bf16 %v515_v34, %v506_v33  ;;  %v273_v30 = vld [vmem:[%s2831_s3 + $0x1e0] sm:$0xff]  ;;  %v419_v32 = vld [vmem:[%s2831_s3 + $0x670] sm:$0xff]  ;;  %v428_v33 = vld [vmem:[%s2831_s3 + $0x6b8] sm:$0xff] }
 0x11c   :  { %1477 = vmatprep.subr.bf16.mxu1 %v1476_v45  ;;  %v1496_v45 = vpack.c.bf16 %v531_v36, %v522_v35  ;;  %v292_v34 = vld [vmem:[%s2831_s3 + $0x278] sm:$0xff]  ;;  %v301_v35 = vld [vmem:[%s2831_s3 + $0x2c0] sm:$0xff]  ;;  %v1654_v36 = vpack.c.bf16 %v266_v29, %v257_v28 }
 0x11d   :  { %v356_v28 = vld [vmem:[%s2831_s3 + $0x478] sm:$0xff] }
 0x11e   :  { %1547 = vmatpush1.bf16.msra.mxu0 %v1546_v51  ;;  %v1566_v51 = vpack.c.bf16 %v514_v43, %v505_v42  ;;  %v284_v42 = vld [vmem:[%s2831_s3 + $0x238] sm:$0xff]  ;;  %v291_v43 = vld [vmem:[%s2831_s3 + $0x270] sm:$0xff] }
 0x11f   :  { %1479 = vmatpush1.bf16.msra.mxu1 %v1478_v52  ;;  %1549 = vmatprep.subr.bf16.mxu0 %v1548_v53  ;;  %v1498_v52 = vpack.c.bf16 %v530_v46, %v521_v44  ;;  %v1568_v53 = vpack.c.bf16 %v533_v48, %v524_v47  ;;  %v1588_v44 = vpack.c.bf16 %v301_v35, %v292_v34  ;;  %v437_v46 = vld [vmem:[%s2831_s3 + $0x700] sm:$0xff]  ;;  %v446_v47 = vld [vmem:[%s2831_s3 + $0x748] sm:$0xff] }
 0x120   :  { %1481 = vmatprep.subr.bf16.mxu1 %v1480_v57  ;;  %v219_v57 = vld [vmem:[%s2831_s3 + $0x30] sm:$0xff]  ;;  %v310_v48 = vld [vmem:[%s2831_s3 + $0x308] sm:$0xff] }
 0x122   :  { %1551 = vmatpush1.bf16.msra.mxu0 %v1550_v63  ;;  %v1570_v63 = vpack.c.bf16 %v532_v55, %v523_v54  ;;  %v302_v54 = vld [vmem:[%s2831_s3 + $0x2c8] sm:$0xff]  ;;  %v309_v55 = vld [vmem:[%s2831_s3 + $0x300] sm:$0xff] }
 0x123   :  { %1483 = vmatpush1.bf16.msra.mxu1 %v1482_v1  ;;  %1553 = vmatprep.subr.bf16.mxu0 %v1552_v2  ;;  %v1574_v1 = vpack.c.bf16 %v228_v58, %v219_v57  ;;  %v221_v2 = vld [vmem:[%s2831_s3 + $0x40] sm:$0xff]  ;;  %v318_v57 = vld [vmem:[%s2831_s3 + $0x348] sm:$0xff]  ;;  %v455_v58 = vld [vmem:[%s2831_s3 + $0x790] sm:$0xff] }
 0x124   :  { %1485 = vmatprep.subr.bf16.mxu1 %v1484_v6  ;;  %v1576_v6 = vpack.c.bf16 %v247_v62, %v238_v61  ;;  %v337_v61 = vld [vmem:[%s2831_s3 + $0x3e0] sm:$0xff] }
 0x126   :  { %1555 = vmatpush1.bf16.msra.mxu0 %v1554_v12  ;;  %v1646_v12 = vpack.c.bf16 %v230_v3, %v221_v2  ;;  %v311_v2 = vld [vmem:[%s2831_s3 + $0x310] sm:$0xff]  ;;  %v320_v3 = vld [vmem:[%s2831_s3 + $0x358] sm:$0xff] }
 0x127   :  { %1487 = vmatpush1.bf16.msra.mxu1 %v1486_v13  ;;  %1557 = vmatprep.subr.bf16.mxu0 %v1556_v14  ;;  %v1578_v13 = vpack.c.bf16 %v246_v7, %v237_v4  ;;  %v1648_v14 = vpack.c.bf16 %v392_v9, %v383_v8  ;;  %v327_v4 = vld [vmem:[%s2831_s3 + $0x390] sm:$0xff]  ;;  %v473_v7 = vld [vmem:[%s2831_s3 + $0x820] sm:$0xff]  ;;  %v482_v8 = vld [vmem:[%s2831_s3 + $0x868] sm:$0xff] }
 0x128   :  { %1489 = vmatprep.subr.bf16.mxu1 %v1488_v18  ;;  %v1580_v18 = vpack.c.bf16 %v265_v11, %v256_v10  ;;  %v346_v9 = vld [vmem:[%s2831_s3 + $0x428] sm:$0xff]  ;;  %v355_v10 = vld [vmem:[%s2831_s3 + $0x470] sm:$0xff]  ;;  %v1666_v11 = vpack.c.bf16 %v320_v3, %v311_v2  ;;  %v481_v2 = vld [vmem:[%s2831_s3 + $0x860] sm:$0xff] }
 0x12a   :  { %1559 = vmatpush1.bf16.msra.mxu0 %v1558_v24  ;;  %v1650_v24 = vpack.c.bf16 %v248_v16, %v239_v15  ;;  %v338_v15 = vld [vmem:[%s2831_s3 + $0x3e8] sm:$0xff]  ;;  %v345_v16 = vld [vmem:[%s2831_s3 + $0x420] sm:$0xff] }
 0x12b   :  { %1491 = vmatpush1.bf16.msra.mxu1 %v1490_v25  ;;  %1561 = vmatprep.subr.bf16.mxu0 %v1560_v27  ;;  %v1582_v25 = vpack.c.bf16 %v264_v19, %v255_v17  ;;  %v1652_v27 = vpack.c.bf16 %v410_v21, %v401_v20  ;;  %v1600_v17 = vpack.c.bf16 %v355_v10, %v346_v9  ;;  %v491_v19 = vld [vmem:[%s2831_s3 + $0x8b0] sm:$0xff]  ;;  %v500_v20 = vld [vmem:[%s2831_s3 + $0x8f8] sm:$0xff] }
 0x12c   :  { %1493 = vmatprep.subr.bf16.mxu1 %v1492_v31  ;;  %v1584_v31 = vpack.c.bf16 %v283_v23, %v274_v22  ;;  %v364_v21 = vld [vmem:[%s2831_s3 + $0x4b8] sm:$0xff]  ;;  %v373_v22 = vld [vmem:[%s2831_s3 + $0x500] sm:$0xff] }
 0x12d   :  { %v1604_v29 = vpack.c.bf16 %v373_v22, %v364_v21 }
 0x12e   :  { %748 = vmatmul.mubr.f32.vlgmr.msra.gmra.mrb[6].mxu1 %v2069_v39  ;;  %1563 = vmatpush1.bf16.msra.mxu0 %v1562_v38 }
 0x12f   :  { %1495 = vmatpush1.bf16.msra.mxu1 %v1494_v40  ;;  %1565 = vmatprep.subr.bf16.mxu0 %v1564_v41  ;;  %v1656_v40 = vpack.c.bf16 %v428_v33, %v419_v32  ;;  %v275_v41 = vld [vmem:[%s2831_s3 + $0x1f0] sm:$0xff] }
 0x130   :  { %1497 = vmatprep.subr.bf16.mxu1 %v1496_v45  ;;  %818 = vmatprep.mubr.f32.mxu1 %v1714_v0  ;;  %v300_v45 = vld [vmem:[%s2831_s3 + $0x2b8] sm:$0xff]  ;;  %v1658_v50 = vpack.c.bf16 %v284_v42, %v275_v41  ;;  %v391_v32 = vld [vmem:[%s2831_s3 + $0x590] sm:$0xff]  ;;  %v409_v41 = vld [vmem:[%s2831_s3 + $0x620] sm:$0xff] }
 0x131   :  { %890 = vmatmul.mubr.f32.vlgmr.msra.gmra.mrb[6].mxu0 %v2069_v39 }
 0x132   :  { %1567 = vmatpush1.bf16.msra.mxu0 %v1566_v51  ;;  %960 = vmatprep.mubr.f32.mxu0 %v1714_v0  ;;  %v1590_v51 = vpack.c.bf16 %v300_v45, %v291_v43  ;;  %v408_v45 = vld [vmem:[%s2831_s3 + $0x618] sm:$0xff] }
 0x133   :  { %1499 = vmatpush1.bf16.msra.mxu1 %v1498_v52  ;;  %1569 = vmatprep.subr.bf16.mxu0 %v1568_v53  ;;  %v1660_v52 = vpack.c.bf16 %v446_v47, %v437_v46  ;;  %v293_v53 = vld [vmem:[%s2831_s3 + $0x280] sm:$0xff]  ;;  %v418_v46 = vld [vmem:[%s2831_s3 + $0x668] sm:$0xff]  ;;  %v427_v47 = vld [vmem:[%s2831_s3 + $0x6b0] sm:$0xff] }
 0x134   :  { %1573 = vmatprep.subr.bf16.mxu1 %v1572_v56  ;;  %v1592_v56 = vpack.c.bf16 %v319_v49, %v310_v48  ;;  %v1662_v62 = vpack.c.bf16 %v302_v54, %v293_v53  ;;  %v1616_v49 = vpack.c.bf16 %v427_v47, %v418_v46  ;;  %v445_v53 = vld [vmem:[%s2831_s3 + $0x740] sm:$0xff] }
 0x136   :  { %1281 = vmatmul.mubr.msk.f32.vlgmr.msra.gmra.mrb[6].mxu1 %vm537_vm3, %v2048_v26  ;;  %1571 = vmatpush1.bf16.msra.mxu0 %v1570_v63  ;;  %v1594_v63 = vpack.c.bf16 %v318_v57, %v309_v55  ;;  %v444_v57 = vld [vmem:[%s2831_s3 + $0x738] sm:$0xff] }
 0x137   :  { %1575 = vmatpush1.bf16.msra.mxu1 %v1574_v1  ;;  %1031 = vmatprep.mubr.f32.mxu1 %v2065_v37  ;;  %v1664_v1 = vpack.c.bf16 %v464_v59, %v455_v58  ;;  %v454_v58 = vld [vmem:[%s2831_s3 + $0x788] sm:$0xff]  ;;  %v463_v59 = vld [vmem:[%s2831_s3 + $0x7d0] sm:$0xff] }
 0x138   :  { %1645 = vmatprep.subr.bf16.mxu0 %v1644_v5  ;;  %1577 = vmatprep.subr.bf16.mxu1 %v1576_v6  ;;  %v1596_v5 = vpack.c.bf16 %v337_v61, %v328_v60  ;;  %v336_v6 = vld [vmem:[%s2831_s3 + $0x3d8] sm:$0xff]  ;;  %v1624_v61 = vpack.c.bf16 %v463_v59, %v454_v58 }
 0x139   :  { %1282 = vmatmul.mubr.msk.f32.vlgmr.msra.gmra.mrb[6].mxu0 %vm537_vm3, %v2048_v26 }
 0x13a   :  { %1647 = vmatpush3.bf16.msra.mxu0 %v1646_v12  ;;  %1173 = vmatprep.mubr.f32.mxu0 %v2065_v37  ;;  %v282_v37 = vld [vmem:[%s2831_s3 + $0x228] sm:$0xff]  ;;  %v1598_v12 = vpack.c.bf16 %v336_v6, %v327_v4  ;;  %v480_v6 = vld [vmem:[%s2831_s3 + $0x858] sm:$0xff] }
 0x13b   :  { %1579 = vmatpush1.bf16.msra.mxu1 %v1578_v13  ;;  %1649 = vmatprep.subr.bf16.mxu0 %v1648_v14  ;;  %v1586_v38 = vpack.c.bf16 %v282_v37, %v273_v30  ;;  %v1668_v13 = vpack.c.bf16 %v482_v8, %v473_v7  ;;  %v329_v14 = vld [vmem:[%s2831_s3 + $0x3a0] sm:$0xff]  ;;  %v363_v30 = vld [vmem:[%s2831_s3 + $0x4b0] sm:$0xff]  ;;  %v382_v37 = vld [vmem:[%s2831_s3 + $0x548] sm:$0xff] }
 0x13c   :  { %1581 = vmatprep.subr.bf16.mxu1 %v1580_v18  ;;  %v354_v18 = vld [vmem:[%s2831_s3 + $0x468] sm:$0xff]  ;;  %v1670_v23 = vpack.c.bf16 %v338_v15, %v329_v14  ;;  %v1608_v35 = vpack.c.bf16 %v391_v32, %v382_v37  ;;  %v499_v8 = vld [vmem:[%s2831_s3 + $0x8f0] sm:$0xff]  ;;  %v517_v14 = vld [vmem:[%s2831_s3 + $0x980] sm:$0xff] }
 0x13d   :  { %v490_v7 = vld [vmem:[%s2831_s3 + $0x8a8] sm:$0xff] }
 0x13e   :  { %1651 = vmatpush3.bf16.msra.mxu0 %v1650_v24  ;;  %v1602_v24 = vpack.c.bf16 %v354_v18, %v345_v16  ;;  %v1632_v10 = vpack.c.bf16 %v499_v8, %v490_v7  ;;  %v516_v18 = vld [vmem:[%s2831_s3 + $0x978] sm:$0xff] }
 0x13f   :  { %1583 = vmatpush1.bf16.msra.mxu1 %v1582_v25  ;;  %1653 = vmatprep.subr.bf16.mxu0 %v1652_v27  ;;  %v1672_v25 = vpack.c.bf16 %v500_v20, %v491_v19  ;;  %v347_v27 = vld [vmem:[%s2831_s3 + $0x430] sm:$0xff]  ;;  %v526_v19 = vld [vmem:[%s2831_s3 + $0x9c8] sm:$0xff] }
 0x140   :  { %1585 = vmatprep.subr.bf16.mxu1 %v1584_v31  ;;  %v372_v31 = vld [vmem:[%s2831_s3 + $0x4f8] sm:$0xff]  ;;  %v1674_v33 = vpack.c.bf16 %v356_v28, %v347_v27  ;;  %v535_v20 = vld [vmem:[%s2831_s3 + $0xa10] sm:$0xff]  ;;  %v509_v27 = vld [vmem:[%s2831_s3 + $0x940] sm:$0xff] }
 0x141   :  { %v1606_v34 = vpack.c.bf16 %v372_v31, %v363_v30  ;;  %v1640_v22 = vpack.c.bf16 %v535_v20, %v526_v19  ;;  %v518_v28 = vld [vmem:[%s2831_s3 + $0x988] sm:$0xff]  ;;  %v1717_v30 = vmov 0.0|0.0   ;;  %v536_v31 = vld [vmem:[%s2831_s3 + $0xa18] sm:$0xff] }
 0x142   :  { %1655 = vmatpush3.bf16.msra.mxu0 %v1654_v36  ;;  %v381_v36 = vld [vmem:[%s2831_s3 + $0x540] sm:$0xff] }
 0x143   :  { %1587 = vmatpush1.bf16.msra.mxu1 %v1586_v38  ;;  %1657 = vmatprep.subr.bf16.mxu0 %v1656_v40  ;;  %v390_v38 = vld [vmem:[%s2831_s3 + $0x588] sm:$0xff]  ;;  %v400_v40 = vld [vmem:[%s2831_s3 + $0x5d8] sm:$0xff] }
 0x144   :  { %1589 = vmatprep.subr.bf16.mxu1 %v1588_v44  ;;  %v1610_v42 = vpack.c.bf16 %v390_v38, %v381_v36  ;;  %v1612_v43 = vpack.c.bf16 %v409_v41, %v400_v40  ;;  %v399_v44 = vld [vmem:[%s2831_s3 + $0x5d0] sm:$0xff] }
 0x145   :  { %v1614_v48 = vpack.c.bf16 %v408_v45, %v399_v44 }
 0x146   :  { %1659 = vmatpush3.bf16.msra.mxu0 %v1658_v50  ;;  %v417_v50 = vld [vmem:[%s2831_s3 + $0x660] sm:$0xff] }
 0x147   :  { %1591 = vmatpush1.bf16.msra.mxu1 %v1590_v51  ;;  %1661 = vmatprep.subr.bf16.mxu0 %v1660_v52  ;;  %v426_v51 = vld [vmem:[%s2831_s3 + $0x6a8] sm:$0xff]  ;;  %v436_v52 = vld [vmem:[%s2831_s3 + $0x6f8] sm:$0xff] }
 0x148   :  { %1593 = vmatprep.subr.bf16.mxu1 %v1592_v56  ;;  %v1618_v54 = vpack.c.bf16 %v426_v51, %v417_v50  ;;  %v1620_v55 = vpack.c.bf16 %v445_v53, %v436_v52  ;;  %v435_v56 = vld [vmem:[%s2831_s3 + $0x6f0] sm:$0xff] }
 0x149   :  { %v1622_v60 = vpack.c.bf16 %v444_v57, %v435_v56 }
 0x14a   :  { %1663 = vmatpush3.bf16.msra.mxu0 %v1662_v62  ;;  %v453_v62 = vld [vmem:[%s2831_s3 + $0x780] sm:$0xff] }
 0x14b   :  { %1595 = vmatpush1.bf16.msra.mxu1 %v1594_v63  ;;  %1665 = vmatprep.subr.bf16.mxu0 %v1664_v1  ;;  %v462_v63 = vld [vmem:[%s2831_s3 + $0x7c8] sm:$0xff]  ;;  %v472_v1 = vld [vmem:[%s2831_s3 + $0x818] sm:$0xff] }
 0x14c   :  { %1597 = vmatprep.subr.bf16.mxu1 %v1596_v5  ;;  %v1626_v3 = vpack.c.bf16 %v462_v63, %v453_v62  ;;  %v1628_v4 = vpack.c.bf16 %v481_v2, %v472_v1  ;;  %v471_v5 = vld [vmem:[%s2831_s3 + $0x810] sm:$0xff] }
 0x14d   :  { %v1630_v9 = vpack.c.bf16 %v480_v6, %v471_v5 }
 0x14e   :  { %1667 = vmatpush3.bf16.msra.mxu0 %v1666_v11  ;;  %v489_v11 = vld [vmem:[%s2831_s3 + $0x8a0] sm:$0xff] }
 0x14f   :  { %1599 = vmatpush1.bf16.msra.mxu1 %v1598_v12  ;;  %1669 = vmatprep.subr.bf16.mxu0 %v1668_v13  ;;  %v498_v12 = vld [vmem:[%s2831_s3 + $0x8e8] sm:$0xff]  ;;  %v508_v13 = vld [vmem:[%s2831_s3 + $0x938] sm:$0xff] }
 0x150   :  { %1601 = vmatprep.subr.bf16.mxu1 %v1600_v17  ;;  %v1634_v15 = vpack.c.bf16 %v498_v12, %v489_v11  ;;  %v1636_v16 = vpack.c.bf16 %v517_v14, %v508_v13  ;;  %v507_v17 = vld [vmem:[%s2831_s3 + $0x930] sm:$0xff] }
 0x151   :  { %v1638_v21 = vpack.c.bf16 %v516_v18, %v507_v17 }
 0x152   :  { %1671 = vmatpush3.bf16.msra.mxu0 %v1670_v23  ;;  %v525_v23 = vld [vmem:[%s2831_s3 + $0x9c0] sm:$0xff] }
 0x153   :  { %1603 = vmatpush1.bf16.msra.mxu1 %v1602_v24  ;;  %1673 = vmatprep.subr.bf16.mxu0 %v1672_v25  ;;  %v534_v24 = vld [vmem:[%s2831_s3 + $0xa08] sm:$0xff] }
 0x154   :  { %1605 = vmatprep.subr.bf16.mxu1 %v1604_v29  ;;  %v1642_v25 = vpack.c.bf16 %v534_v24, %v525_v23  ;;  %v1677_v29 = vpack.c.bf16 %v518_v28, %v509_v27 }
 0x156   :  { %1675 = vmatpush3.bf16.msra.mxu0 %v1674_v33 }
 0x157   :  { %1607 = vmatpush1.bf16.msra.mxu1 %v1606_v34 }
 0x158   :  { %1609 = vmatprep.subr.bf16.mxu1 %v1608_v35 }
 0x159   :  { %1174 = vmatmul.mubr.f32.vlgmr.msra.gmra.mrb[8].mxu0 %v2069_v39 }
 0x15b   :  { %1611 = vmatpush1.bf16.msra.mxu1 %v1610_v42 }
 0x15c   :  { %1613 = vmatprep.subr.bf16.mxu1 %v1612_v43 }
 0x15f   :  { %1615 = vmatpush1.bf16.msra.mxu1 %v1614_v48 }
 0x160   :  { %1617 = vmatprep.subr.bf16.mxu1 %v1616_v49 }
 0x163   :  { %1619 = vmatpush1.bf16.msra.mxu1 %v1618_v54 }
 0x164   :  { %1621 = vmatprep.subr.bf16.mxu1 %v1620_v55 }
 0x167   :  { %1623 = vmatpush1.bf16.msra.mxu1 %v1622_v60 }
 0x168   :  { %1625 = vmatprep.subr.bf16.mxu1 %v1624_v61 }
 0x16b   :  { %1627 = vmatpush1.bf16.msra.mxu1 %v1626_v3 }
 0x16c   :  { %1629 = vmatprep.subr.bf16.mxu1 %v1628_v4 }
 0x16f   :  { %1631 = vmatpush1.bf16.msra.mxu1 %v1630_v9 }
 0x170   :  { %1633 = vmatprep.subr.bf16.mxu1 %v1632_v10 }
 0x173   :  { %1635 = vmatpush1.bf16.msra.mxu1 %v1634_v15 }
 0x174   :  { %1637 = vmatprep.subr.bf16.mxu1 %v1636_v16 }
 0x176   :  { %1032 = vmatmul.mubr.f32.vlgmr.msra.gmra.mrb[8].mxu1 %v2069_v39  ;;  %v527_v39 = vld [vmem:[%s2831_s3 + $0x9d0] sm:$0xff] }
 0x177   :  { %1639 = vmatpush1.bf16.msra.mxu1 %v1638_v21  ;;  %1102 = vmatprep.mubr.f32.mxu1 %v1714_v0  ;;  %v1680_v37 = vpack.c.bf16 %v536_v31, %v527_v39 }
 0x178   :  { %1641 = vmatprep.subr.bf16.mxu1 %v1640_v22 }
 0x17b   :  { %1643 = vmatpush1.bf16.msra.mxu1 %v1642_v25 }
 0x17c   :  { %1676 = vmatprep.subr.bf16.mxu1 %v1717_v30 }
 0x17e   :  { %1283 = vmatmul.mubr.msk.f32.vlgmr.msra.gmra.mrb[8].mxu1 %vm537_vm3, %v2048_v26 }
 0x17f   :  { %1678 = vmatpush3.bf16.msra.mxu1 %v1677_v29  ;;  %1353 = vmatprep.mubr.msk.f32.mxu1 %vm1715_vm0, %v1714_v0 }
 0x180   :  { %1679 = vmatprep.subr.bf16.mxu1 %v1717_v30 }
 0x183   :  { %1681 = vmatpush3.bf16.msra.mxu1 %v1680_v37 }
 0x186   :  { %1354 = vmatmul.mubr.msk.f32.vlgmr.msra.gmra.mrb[10].mxu1 %vm537_vm3, %v2048_v26 }
 0x1c1   :  { %v678_v32 = vpop.f32.mrb[4].mxu1 }
 0x1c2   :  { %v680_v33 = vpop.f32.mrb[5].mxu1 }
 0x1c4   :  { %v607_v34 = vpop.f32.mrb[4].mxu0 }
 0x1c5   :  { %v679_v35 = vadd.f32 %v678_v32, %v607_v34  ;;  %v609_v36 = vpop.f32.mrb[5].mxu0 }
 0x1c6   :  { %v681_v38 = vadd.f32 %v680_v33, %v609_v36 }
 0x1c7   :  { %1249 = vst [vmem:[%s2833_s4] sm:$0xff] %v679_v35 }
 0x1c8   :  { %1250 = vst [vmem:[%s2833_s4 + $0x8] sm:$0xff] %v681_v38 }
 0x209   :  { %v820_v0 = vpop.f32.mrb[6].mxu1 }
 0x20a   :  { %1251 = vst [vmem:[%s2833_s4 + $0x10] sm:$0xff] %v820_v0  ;;  %v822_v26 = vpop.f32.mrb[7].mxu1 }
 0x20b   :  { %1252 = vst [vmem:[%s2833_s4 + $0x18] sm:$0xff] %v822_v26 }
 0x20c   :  { %v962_v40 = vpop.f32.mrb[6].mxu0 }
 0x20d   :  { %1253 = vst [vmem:[%s2833_s4 + $0x20] sm:$0xff] %v962_v40  ;;  %v964_v41 = vpop.f32.mrb[7].mxu0 }
 0x20e   :  { %1254 = vst [vmem:[%s2833_s4 + $0x28] sm:$0xff] %v964_v41 }
 0x22c   :  { %v1323_v42 = vpop.f32.mrb[8].mxu0 }
 0x22d   :  { %v1324_v43 = vpop.f32.mrb[9].mxu0 }
 0x22e   :  { %v1325_v44 = vadd.f32 %v1324_v43, %v1323_v42 }
 0x251   :  { %v1104_v45 = vpop.f32.mrb[8].mxu1 }
 0x252   :  { %1255 = vst [vmem:[%s2833_s4 + $0x30] sm:$0xff] %v1104_v45  ;;  %v1106_v46 = vpop.f32.mrb[9].mxu1 }
 0x253   :  { %1256 = vst [vmem:[%s2833_s4 + $0x38] sm:$0xff] %v1106_v46 }
 0x259   :  { %v1245_v47 = vpop.f32.mrb[10].mxu1 }
 0x25a   :  { %v1246_v48 = vadd.f32 %v1325_v44, %v1245_v47  ;;  %v1355_v49 = vpop.f32.mrb[11].mxu1 }
 0x25c   :  { %1257 = vst [vmem:[%s2833_s4 + $0x40] sm:$0xff] %v1246_v48 }

// kernel: c2vq_recon_forward.10
= control target key start
LH: loop header
LB: loop body
LE: loop exit
PB: predicated region body
PF: predicated region fallthrough
CT: control target
= control target key end

     0   :  { %s649_s12 = smov 0   ;;  %s651_s13 = smov 0   ;;  %s727_s0 = inlined_call_operand.vmem [shape: bf16[72,1536], index: 0, kind: input, shape index: {}]   ;;  %s728_s1 = inlined_call_operand.vmem [shape: bf16[8,72], index: 1, kind: input, shape index: {}]   ;;  %s729_s2 = inlined_call_operand.vmem [shape: f32[8,1], index: 2, kind: input, shape index: {}]   ;;  %s730_s3 = inlined_call_operand.vmem [shape: f32[8,1536], index: 3, kind: output, shape index: {}]  }
   0x1   :  { %s653_s14 = smov 0  }
   0x2 LB: > { %s512_s15 = sadd.s32 4294967295, %s626_s14   ;;  %s666_s16 = sadd.s32 1, %s626_s14   ;;  %s626_s14 = sphi %s653_s14, %s733_s14   ;;  %s622_s13 = sphi %s651_s13, %s732_s13   ;;  %s618_s12 = sphi %s649_s12, %s731_s12  }
   0x3   : > { %s17_s17 = ssub.s32 %s626_s14, %s666_s16  ;;  %s20_s18 = sadd.s32 1, %s622_s13 }
   0x4   : > { %p18_p0 = scmp.eq.s32.totalorder %s17_s17, 0  ;;  %p27_p1 = scmp.ne.s32.totalorder %s622_s13, %s618_s12 }
   0x5   : > { %p28_p2 = scmp.eq.s32.totalorder %s626_s14, 0  ;;  %p515_p4 = scmp.ge.s32.totalorder %s626_s14, 3 }
   0x6   : > { %s675_s19 = scalar_select %p18_p0, %s622_s13, %s20_s18  }
   0x7   : > { %p29_p3 = por %p28_p2, %p27_p1  ;;  %127 = sbr.rel (%p515_p4) target bundleno = 28 (0x1c), region = 24 }
   0xe   : > { %130 = sbr.rel (!%p29_p3) target bundleno = 28 (0x1c), region = 28  ;;  %s132_s20 = sand.u32 (%p29_p3), 1, %s622_s13  }
   0xf   : > { %s547_s21 = sshll.u32 (%p29_p3), %s626_s14, 4  ;;  %s548_s22 = smul.u32 (%p29_p3), 144, %s132_s20 }
  0x10   : > { %s683_s25 = scalar_lea.vmem (%p29_p3), %s727_s0, %s547_s21 }
  0x11   : > { %v150_v0 = vld [vmem:[%s683_s25] sm:$0xff] (%p29_p3)  ;;  %v152_v1 = vld [vmem:[%s683_s25 + $0x8] sm:$0xff] (%p29_p3)  ;;  %v154_v2 = vld [vmem:[%s683_s25 + $0x30] sm:$0xff] (%p29_p3)  ;;  %s134_s26 = scalar_lea.vmem (%p29_p3), [#allocation2], %s548_s22 }
  0x12   : > { %v156_v3 = vld [vmem:[%s683_s25 + $0x38] sm:$0xff] (%p29_p3)  ;;  %v158_v4 = vld [vmem:[%s683_s25 + $0x60] sm:$0xff] (%p29_p3)  ;;  %v160_v5 = vld [vmem:[%s683_s25 + $0x68] sm:$0xff] (%p29_p3)  ;;  %151 = vst [vmem:[%s134_s26] sm:$0xff] (%p29_p3), %v150_v0 }
  0x13   : > { %153 = vst [vmem:[%s134_s26 + $0x8] sm:$0xff] (%p29_p3), %v152_v1  ;;  %155 = vst [vmem:[%s134_s26 + $0x10] sm:$0xff] (%p29_p3), %v154_v2  ;;  %v162_v6 = vld [vmem:[%s683_s25 + $0x90] sm:$0xff] (%p29_p3)  ;;  %v164_v7 = vld [vmem:[%s683_s25 + $0x98] sm:$0xff] (%p29_p3) }
  0x14   : > { %157 = vst [vmem:[%s134_s26 + $0x18] sm:$0xff] (%p29_p3), %v156_v3  ;;  %159 = vst [vmem:[%s134_s26 + $0x20] sm:$0xff] (%p29_p3), %v158_v4  ;;  %v166_v8 = vld [vmem:[%s683_s25 + $0xc0] sm:$0xff] (%p29_p3)  ;;  %v168_v9 = vld [vmem:[%s683_s25 + $0xc8] sm:$0xff] (%p29_p3) }
  0x15   : > { %161 = vst [vmem:[%s134_s26 + $0x28] sm:$0xff] %v160_v5  ;;  %163 = vst [vmem:[%s134_s26 + $0x30] sm:$0xff] %v162_v6  ;;  %v170_v10 = vld [vmem:[%s683_s25 + $0xf0] sm:$0xff]  ;;  %v172_v11 = vld [vmem:[%s683_s25 + $0xf8] sm:$0xff] }
  0x16   : > { %165 = vst [vmem:[%s134_s26 + $0x38] sm:$0xff] %v164_v7  ;;  %167 = vst [vmem:[%s134_s26 + $0x40] sm:$0xff] %v166_v8  ;;  %v174_v12 = vld [vmem:[%s683_s25 + $0x120] sm:$0xff]  ;;  %v176_v13 = vld [vmem:[%s683_s25 + $0x128] sm:$0xff] }
  0x17   : > { %169 = vst [vmem:[%s134_s26 + $0x48] sm:$0xff] %v168_v9  ;;  %171 = vst [vmem:[%s134_s26 + $0x50] sm:$0xff] %v170_v10  ;;  %v178_v14 = vld [vmem:[%s683_s25 + $0x150] sm:$0xff]  ;;  %v180_v15 = vld [vmem:[%s683_s25 + $0x158] sm:$0xff] }
  0x18   : > { %173 = vst [vmem:[%s134_s26 + $0x58] sm:$0xff] %v172_v11  ;;  %175 = vst [vmem:[%s134_s26 + $0x60] sm:$0xff] %v174_v12  ;;  %v182_v16 = vld [vmem:[%s683_s25 + $0x180] sm:$0xff]  ;;  %v184_v17 = vld [vmem:[%s683_s25 + $0x188] sm:$0xff] }
  0x19   : > { %177 = vst [vmem:[%s134_s26 + $0x68] sm:$0xff] %v176_v13  ;;  %179 = vst [vmem:[%s134_s26 + $0x70] sm:$0xff] %v178_v14 }
  0x1a   : > { %181 = vst [vmem:[%s134_s26 + $0x78] sm:$0xff] %v180_v15  ;;  %183 = vst [vmem:[%s134_s26 + $0x80] sm:$0xff] %v182_v16 }
  0x1b   : > { %185 = vst [vmem:[%s134_s26 + $0x88] sm:$0xff] %v184_v17 }
  0x1c PF: > { %p518_p5 = scmp.ge.s32.totalorder %s626_s14, 1  ;;  %p190_p6 = scmp.lt.s32.totalorder %s626_s14, 4 }
  0x1e   : > { %p191_p7 = pnand %p518_p5, %p190_p6 }
  0x1f   : > { %s197_s27 = sand.u32 (!%p191_p7), 1, %s618_s12   ;;  %v628_v18 = vmov (!%p191_p7), 0   ;;  %v247_v19 = vld [vmem:[%s729_s2] sm:$0xff] (!%p191_p7)  ;;  %vm347_vm0 = vcmask (!%p191_p7), 1043456   ;;  %vm343_vm1 = vcmask (!%p191_p7), 588800   ;;  %s519_s7 = sshll.u32 (!%p191_p7), %s512_s15, 2 }
  0x20   : > { %194 = sbr.rel (%p191_p7) target bundleno = 275 (0x113), region = 51  ;;  %392 = vmatprep.mubr.bf16.mxu0 (!%p191_p7), %v628_v18  ;;  %433 = vmatprep.mubr.bf16.mxu1 (!%p191_p7), %v628_v18  ;;  %v228_v44 = vld [vmem:[%s728_s1] sm:$0xf] (!%p191_p7)  ;;  %p222_p8 = scmp.lt.s32.totalorder (!%p191_p7), %s519_s7, 11 }
  0x21   : > { %s549_s28 = smul.u32 (!%p191_p7), 144, %s197_s27  ;;  %575 = vset.pattern.permute.xlu0 (!%p191_p7), %v628_v18 }
  0x22   : > { %250 = vperm.xlu0 (!%p191_p7), %575, %v247_v19  }
  0x23   : > { %s199_s4 = scalar_lea.vmem (!%p191_p7), [#allocation2], %s549_s28 }
  0x24   : > { %v576_v20 = vld [vmem:[%s199_s4 + $0x4] ss:$16 sps:$4 sm:$0xff] (!%p191_p7)   ;;  %v578_v21 = vld [vmem:[%s199_s4 + $0xc] ss:$16 sps:$4 sm:$0xff] (!%p191_p7)   ;;  %v580_v22 = vld [vmem:[%s199_s4] ss:$16 sps:$4 sm:$0xff] (!%p191_p7)  }
  0x25   : > { %360 = vmatprep.subr.bf16.mxu0 (!%p191_p7), %v576_v20  ;;  %v581_v23 = vld [vmem:[%s199_s4 + $0x8] ss:$16 sps:$4 sm:$0xff] (!%p191_p7)   ;;  %401 = vmatprep.subr.bf16.mxu1 (!%p191_p7), %v578_v21  ;;  %v582_v24 = vld [vmem:[%s199_s4 + $0x24] ss:$16 sps:$4 sm:$0xff] (!%p191_p7)   ;;  %v584_v25 = vld [vmem:[%s199_s4 + $0x2c] ss:$16 sps:$4 sm:$0xff] (!%p191_p7)  }
  0x26   : > { %361 = vmatpush1.bf16.msra.mxu0 (!%p191_p7), %v580_v22  ;;  %402 = vmatpush1.bf16.msra.mxu1 (!%p191_p7), %v581_v23  ;;  %v586_v26 = vld [vmem:[%s199_s4 + $0x20] ss:$16 sps:$4 sm:$0xff] (!%p191_p7)   ;;  %v587_v27 = vld [vmem:[%s199_s4 + $0x28] ss:$16 sps:$4 sm:$0xff] (!%p191_p7)   ;;  %v588_v28 = vld [vmem:[%s199_s4 + $0x44] ss:$16 sps:$4 sm:$0xff] (!%p191_p7)  }
  0x27   : > { %362 = vmatprep.subr.bf16.mxu0 %v582_v24  ;;  %403 = vmatprep.subr.bf16.mxu1 %v584_v25  ;;  %v590_v29 = vld [vmem:[%s199_s4 + $0x4c] ss:$16 sps:$4 sm:$0xff]   ;;  %v592_v30 = vld [vmem:[%s199_s4 + $0x40] ss:$16 sps:$4 sm:$0xff]   ;;  %v593_v31 = vld [vmem:[%s199_s4 + $0x48] ss:$16 sps:$4 sm:$0xff]  }
  0x28   : > { %v594_v32 = vld [vmem:[%s199_s4 + $0x64] ss:$16 sps:$4 sm:$0xff]   ;;  %v596_v33 = vld [vmem:[%s199_s4 + $0x6c] ss:$16 sps:$4 sm:$0xff]   ;;  %v598_v36 = vld [vmem:[%s199_s4 + $0x60] ss:$16 sps:$4 sm:$0xff]  }
  0x29   : > { %v245_v34 = vld [vmem:[%s199_s4 + $0x80] sm:$0xff]  ;;  %v246_v35 = vld [vmem:[%s199_s4 + $0x88] sm:$0xff]  ;;  %s735_s7 = smov (!%p222_p8, %s519_s7), 11 }
  0x2a   : > { %363 = vmatpush1.bf16.msra.mxu0 %v586_v26  ;;  %404 = vmatpush1.bf16.msra.mxu1 %v587_v27  ;;  %v599_v37 = vld [vmem:[%s199_s4 + $0x68] ss:$16 sps:$4 sm:$0xff]   ;;  %v538_v38 = vcombine.high %v245_v34, %v245_v34  ;;  %v540_v39 = vcombine.high %v246_v35, %v246_v35  ;;  %v537_v40 = vcombine.low %v245_v34, %v245_v34  ;;  %s520_s8 = sshll.u32 %s735_s7, 3 }
  0x2b   : > { %364 = vmatprep.subr.bf16.mxu0 %v588_v28  ;;  %405 = vmatprep.subr.bf16.mxu1 %v590_v29  ;;  %v539_v41 = vcombine.low %v246_v35, %v246_v35  ;;  %s225_s11 = scalar_lea.vmem %s730_s3, %s520_s8 }
  0x2c   : > { %v349_v42 = vsel %vm347_vm0, %v537_v40, 0 }
  0x2d   : > { %v355_v43 = vsel %vm347_vm0, %v539_v41, 0 }
  0x2e   : > { %365 = vmatpush1.bf16.msra.mxu0 %v592_v30  ;;  %406 = vmatpush1.bf16.msra.mxu1 %v593_v31 }
  0x2f   : > { %366 = vmatprep.subr.bf16.mxu0 %v594_v32  ;;  %407 = vmatprep.subr.bf16.mxu1 %v596_v33 }
  0x32   : > { %367 = vmatpush1.bf16.msra.mxu0 %v598_v36  ;;  %408 = vmatpush1.bf16.msra.mxu1 %v599_v37 }
  0x33   : > { %541 = vmatprep.subr.msk.bf16.mxu0 %vm347_vm0, %v538_v38  ;;  %543 = vmatprep.subr.msk.bf16.mxu1 %vm347_vm0, %v540_v39 }
  0x36   : > { %369 = vmatpush1.bf16.msra.mxu0 %v349_v42  ;;  %410 = vmatpush1.bf16.msra.mxu1 %v355_v43 }
  0x39   : > { %542 = vmatmul.mubr.msk.bf16.vlgmr.msra.gmra.mrb[0].mxu0 %vm343_vm1, %v228_v44  ;;  %544 = vmatmul.mubr.msk.bf16.vlgmr.msra.gmra.mrb[0].mxu1 %vm343_vm1, %v228_v44 }
  0xa1   : > { %v251_v45 = vpop.permute.xlu0 %250 }
 0x10c   : > { %v394_v46 = vpop.f32.mrb[0].mxu0  ;;  %v435_v47 = vpop.f32.mrb[0].mxu1 }
 0x10d   : > { %v395_v48 = vadd.f32 %v394_v46, %v251_v45  ;;  %v436_v49 = vadd.f32 %v435_v47, %v251_v45  ;;  %v396_v50 = vpop.f32.mrb[1].mxu0  ;;  %v437_v51 = vpop.f32.mrb[1].mxu1 }
 0x10e   : > { %v397_v52 = vadd.f32 %v396_v50, %v251_v45  ;;  %v438_v53 = vadd.f32 %v437_v51, %v251_v45  ;;  %v398_v54 = vpop.f32.mrb[2].mxu0  ;;  %v439_v55 = vpop.f32.mrb[2].mxu1 }
 0x10f   : > { %v442_v56 = vmax.f32 %v395_v48, 0.0  ;;  %v444_v57 = vmax.f32 %v436_v49, 0.0  ;;  %v399_v58 = vpop.f32.mrb[3].mxu0  ;;  %v440_v59 = vpop.f32.mrb[3].mxu1 }
 0x110   : > { %v443_v60 = vmax.f32 %v397_v52, 0.0  ;;  %v445_v61 = vmax.f32 %v438_v53, 0.0 }
 0x111   : > { %446 = vst [vmem:[%s225_s11] sm:$0xff] %v442_v56  ;;  %448 = vst [vmem:[%s225_s11 + $0x10] sm:$0xff] %v444_v57 }
 0x112   : > { %447 = vst [vmem:[%s225_s11 + $0x8] sm:$0xff] %v443_v60  ;;  %449 = vst [vmem:[%s225_s11 + $0x18] sm:$0xff] %v445_v61 }
 0x113 PF: > { %p10_p9 = scmp.ge.s32.totalorder %s666_s16, 5   ;;  %s731_s12 = smov %s622_s13 }
 0x114   : > { %s732_s13 = smov %s675_s19  ;;  %s733_s14 = smov %s666_s16 }
 0x115   :  { %12 = sbr.rel (!%p10_p9) target bundleno = 2 (0x2), region = 90 }

// kernel: c2vq_recon_forward.11
= control target key start
LH: loop header
LB: loop body
LE: loop exit
PB: predicated region body
PF: predicated region fallthrough
CT: control target
= control target key end

     0   :  { %s796_s0 = inlined_call_operand.vmem [shape: bf16[72,1536], index: 0, kind: input, shape index: {}]   ;;  %s797_s1 = inlined_call_operand.vmem [shape: bf16[1,72], index: 1, kind: input, shape index: {}]   ;;  %s798_s2 = inlined_call_operand.<no memory space> [shape: f32[1,1], index: 2, kind: input, shape index: {}]   ;;  %s799_s3 = inlined_call_operand.vmem [shape: f32[1,1536], index: 3, kind: output, shape index: {}]  }
   0x1   :  { %v8_v0 = vstv %s798_s2 }
   0x2   :  { %9 = vst [vmem:[#allocation2] sm:$0x1] %v8_v0 }
   0x3   :  { %s721_s14 = smov 0   ;;  %s723_s15 = smov 0  }
   0x4   :  { %s725_s16 = smov 0  }
   0x5 LB: > { %s560_s2 = sadd.s32 4294967295, %s694_s16   ;;  %s738_s17 = sadd.s32 1, %s694_s16   ;;  %s694_s16 = sphi %s725_s16, %s802_s16   ;;  %s690_s15 = sphi %s723_s15, %s801_s15   ;;  %s686_s14 = sphi %s721_s14, %s800_s14  }
   0x6   : > { %s19_s18 = ssub.s32 %s694_s16, %s738_s17  ;;  %s22_s19 = sadd.s32 1, %s690_s15 }
   0x7   : > { %p20_p0 = scmp.eq.s32.totalorder %s19_s18, 0  ;;  %p29_p1 = scmp.ne.s32.totalorder %s690_s15, %s686_s14 }
   0x8   : > { %p30_p2 = scmp.eq.s32.totalorder %s694_s16, 0  ;;  %p563_p4 = scmp.ge.s32.totalorder %s694_s16, 3 }
   0x9   : > { %s747_s20 = scalar_select %p20_p0, %s690_s15, %s22_s19  }
   0xa   : > { %p31_p3 = por %p30_p2, %p29_p1  ;;  %129 = sbr.rel (%p563_p4) target bundleno = 31 (0x1f), region = 24 }
  0x11   : > { %132 = sbr.rel (!%p31_p3) target bundleno = 31 (0x1f), region = 28  ;;  %s134_s21 = sand.u32 (%p31_p3), 1, %s690_s15  }
  0x12   : > { %s598_s22 = sshll.u32 (%p31_p3), %s694_s16, 4  ;;  %s599_s23 = smul.u32 (%p31_p3), 144, %s134_s21 }
  0x13   : > { %s755_s26 = scalar_lea.vmem (%p31_p3), %s796_s0, %s598_s22 }
  0x14   : > { %v152_v1 = vld [vmem:[%s755_s26] sm:$0xff] (%p31_p3)  ;;  %v154_v2 = vld [vmem:[%s755_s26 + $0x8] sm:$0xff] (%p31_p3)  ;;  %v156_v3 = vld [vmem:[%s755_s26 + $0x30] sm:$0xff] (%p31_p3)  ;;  %s136_s27 = scalar_lea.vmem (%p31_p3), [#allocation3], %s599_s23 }
  0x15   : > { %v158_v4 = vld [vmem:[%s755_s26 + $0x38] sm:$0xff] (%p31_p3)  ;;  %v160_v5 = vld [vmem:[%s755_s26 + $0x60] sm:$0xff] (%p31_p3)  ;;  %v162_v6 = vld [vmem:[%s755_s26 + $0x68] sm:$0xff] (%p31_p3)  ;;  %153 = vst [vmem:[%s136_s27] sm:$0xff] (%p31_p3), %v152_v1 }
  0x16   : > { %155 = vst [vmem:[%s136_s27 + $0x8] sm:$0xff] (%p31_p3), %v154_v2  ;;  %157 = vst [vmem:[%s136_s27 + $0x10] sm:$0xff] (%p31_p3), %v156_v3  ;;  %v164_v7 = vld [vmem:[%s755_s26 + $0x90] sm:$0xff] (%p31_p3)  ;;  %v166_v8 = vld [vmem:[%s755_s26 + $0x98] sm:$0xff] (%p31_p3) }
  0x17   : > { %159 = vst [vmem:[%s136_s27 + $0x18] sm:$0xff] (%p31_p3), %v158_v4  ;;  %161 = vst [vmem:[%s136_s27 + $0x20] sm:$0xff] (%p31_p3), %v160_v5  ;;  %v168_v9 = vld [vmem:[%s755_s26 + $0xc0] sm:$0xff] (%p31_p3)  ;;  %v170_v10 = vld [vmem:[%s755_s26 + $0xc8] sm:$0xff] (%p31_p3) }
  0x18   : > { %163 = vst [vmem:[%s136_s27 + $0x28] sm:$0xff] %v162_v6  ;;  %165 = vst [vmem:[%s136_s27 + $0x30] sm:$0xff] %v164_v7  ;;  %v172_v11 = vld [vmem:[%s755_s26 + $0xf0] sm:$0xff]  ;;  %v174_v12 = vld [vmem:[%s755_s26 + $0xf8] sm:$0xff] }
  0x19   : > { %167 = vst [vmem:[%s136_s27 + $0x38] sm:$0xff] %v166_v8  ;;  %169 = vst [vmem:[%s136_s27 + $0x40] sm:$0xff] %v168_v9  ;;  %v176_v13 = vld [vmem:[%s755_s26 + $0x120] sm:$0xff]  ;;  %v178_v14 = vld [vmem:[%s755_s26 + $0x128] sm:$0xff] }
  0x1a   : > { %171 = vst [vmem:[%s136_s27 + $0x48] sm:$0xff] %v170_v10  ;;  %173 = vst [vmem:[%s136_s27 + $0x50] sm:$0xff] %v172_v11  ;;  %v180_v15 = vld [vmem:[%s755_s26 + $0x150] sm:$0xff]  ;;  %v182_v16 = vld [vmem:[%s755_s26 + $0x158] sm:$0xff] }
  0x1b   : > { %175 = vst [vmem:[%s136_s27 + $0x58] sm:$0xff] %v174_v12  ;;  %177 = vst [vmem:[%s136_s27 + $0x60] sm:$0xff] %v176_v13  ;;  %v184_v17 = vld [vmem:[%s755_s26 + $0x180] sm:$0xff]  ;;  %v186_v18 = vld [vmem:[%s755_s26 + $0x188] sm:$0xff] }
  0x1c   : > { %179 = vst [vmem:[%s136_s27 + $0x68] sm:$0xff] %v178_v14  ;;  %181 = vst [vmem:[%s136_s27 + $0x70] sm:$0xff] %v180_v15 }
  0x1d   : > { %183 = vst [vmem:[%s136_s27 + $0x78] sm:$0xff] %v182_v16  ;;  %185 = vst [vmem:[%s136_s27 + $0x80] sm:$0xff] %v184_v17 }
  0x1e   : > { %187 = vst [vmem:[%s136_s27 + $0x88] sm:$0xff] %v186_v18 }
  0x1f PF: > { %p566_p5 = scmp.ge.s32.totalorder %s694_s16, 1  ;;  %p192_p6 = scmp.lt.s32.totalorder %s694_s16, 4 }
  0x21   : > { %p193_p7 = pnand %p566_p5, %p192_p6 }
  0x22   : > { %s199_s28 = sand.u32 (!%p193_p7), 1, %s686_s14   ;;  %v696_v19 = vmov (!%p193_p7), 0   ;;  %v247_v20 = vld [vmem:[#allocation2] sm:$0x1] (!%p193_p7)  ;;  %vm351_vm0 = vcmask (!%p193_p7), 1043456   ;;  %vm347_vm1 = vcmask (!%p193_p7), 588800   ;;  %v253_v46 = vlaneseq (!%p193_p7) }
  0x23   : > { %196 = sbr.rel (%p193_p7) target bundleno = 312 (0x138), region = 51  ;;  %396 = vmatprep.mubr.bf16.mxu0 (!%p193_p7), %v696_v19  ;;  %437 = vmatprep.mubr.bf16.mxu1 (!%p193_p7), %v696_v19  ;;  %v228_v45 = vld [vmem:[%s797_s1] sm:$0x1] (!%p193_p7)  ;;  %v697_v11 = vmov (!%p193_p7), 1966171168   ;;  %s567_s6 = sshll.u32 (!%p193_p7), %s560_s2, 2 }
  0x24   : > { %s600_s29 = smul.u32 (!%p193_p7), 144, %s199_s28  ;;  %627 = vset.pattern.permute.xlu0 (!%p193_p7), %v696_v19  ;;  %v254_v47 = vshrl.u32 (!%p193_p7), %v253_v46, 7  ;;  %v477_v12 = vunpack.c.l.s4 (!%p193_p7), %v697_v11  ;;  %p223_p8 = scmp.lt.s32.totalorder (!%p193_p7), %s567_s6, 11  ;;  %vm501_vm2 = vcmp.lt.s32.totalorder (!%p193_p7), %v253_v46, 512 }
  0x25   : > { %250 = vperm.xlu0 (!%p193_p7), %627, %v247_v20  }
  0x26   : > { %s201_s30 = scalar_lea.vmem (!%p193_p7), [#allocation3], %s600_s29  ;;  %v255_v48 = vsub.s32 (!%p193_p7), 0, %v254_v47  ;;  %v478_v13 = vunpack.c.0.s8 (!%p193_p7), %v477_v12 }
  0x27   : > { %v628_v21 = vld [vmem:[%s201_s30 + $0x4] ss:$16 sps:$4 sm:$0xff] (!%p193_p7)   ;;  %v630_v22 = vld [vmem:[%s201_s30 + $0xc] ss:$16 sps:$4 sm:$0xff] (!%p193_p7)   ;;  %v632_v23 = vld [vmem:[%s201_s30] ss:$16 sps:$4 sm:$0xff] (!%p193_p7)  }
  0x28   : > { %364 = vmatprep.subr.bf16.mxu0 (!%p193_p7), %v628_v21  ;;  %v633_v24 = vld [vmem:[%s201_s30 + $0x8] ss:$16 sps:$4 sm:$0xff] (!%p193_p7)   ;;  %405 = vmatprep.subr.bf16.mxu1 (!%p193_p7), %v630_v22  ;;  %v634_v25 = vld [vmem:[%s201_s30 + $0x24] ss:$16 sps:$4 sm:$0xff] (!%p193_p7)   ;;  %v636_v26 = vld [vmem:[%s201_s30 + $0x2c] ss:$16 sps:$4 sm:$0xff] (!%p193_p7)   ;;  %v481_v16 = vsub.s32 (!%p193_p7), %v478_v13, %v254_v47 }
  0x29   : > { %365 = vmatpush1.bf16.msra.mxu0 (!%p193_p7), %v632_v23  ;;  %406 = vmatpush1.bf16.msra.mxu1 (!%p193_p7), %v633_v24  ;;  %v638_v27 = vld [vmem:[%s201_s30 + $0x20] ss:$16 sps:$4 sm:$0xff] (!%p193_p7)   ;;  %v639_v28 = vld [vmem:[%s201_s30 + $0x28] ss:$16 sps:$4 sm:$0xff] (!%p193_p7)   ;;  %v640_v29 = vld [vmem:[%s201_s30 + $0x44] ss:$16 sps:$4 sm:$0xff] (!%p193_p7)  }
  0x2a   : > { %366 = vmatprep.subr.bf16.mxu0 %v634_v25  ;;  %407 = vmatprep.subr.bf16.mxu1 %v636_v26  ;;  %v642_v30 = vld [vmem:[%s201_s30 + $0x4c] ss:$16 sps:$4 sm:$0xff]   ;;  %v644_v31 = vld [vmem:[%s201_s30 + $0x40] ss:$16 sps:$4 sm:$0xff]   ;;  %v645_v32 = vld [vmem:[%s201_s30 + $0x48] ss:$16 sps:$4 sm:$0xff]  }
  0x2b   : > { %v646_v33 = vld [vmem:[%s201_s30 + $0x64] ss:$16 sps:$4 sm:$0xff]   ;;  %v648_v34 = vld [vmem:[%s201_s30 + $0x6c] ss:$16 sps:$4 sm:$0xff]   ;;  %v650_v37 = vld [vmem:[%s201_s30 + $0x60] ss:$16 sps:$4 sm:$0xff]  }
  0x2c   : > { %v245_v35 = vld [vmem:[%s201_s30 + $0x80] sm:$0xff]  ;;  %v246_v36 = vld [vmem:[%s201_s30 + $0x88] sm:$0xff]  ;;  %s804_s6 = smov (!%p223_p8, %s567_s6), 11 }
  0x2d   : > { %367 = vmatpush1.bf16.msra.mxu0 %v638_v27  ;;  %408 = vmatpush1.bf16.msra.mxu1 %v639_v28  ;;  %v651_v38 = vld [vmem:[%s201_s30 + $0x68] ss:$16 sps:$4 sm:$0xff]   ;;  %v585_v39 = vcombine.high %v245_v35, %v245_v35  ;;  %v587_v40 = vcombine.high %v246_v36, %v246_v36  ;;  %v584_v41 = vcombine.low %v245_v35, %v245_v35  ;;  %s225_s9 = scalar_lea.vmem %s799_s3, %s804_s6 }
  0x2e   : > { %368 = vmatprep.subr.bf16.mxu0 %v640_v29  ;;  %409 = vmatprep.subr.bf16.mxu1 %v642_v30  ;;  %v586_v42 = vcombine.low %v246_v36, %v246_v36 }
  0x2f   : > { %v353_v43 = vsel %vm351_vm0, %v584_v41, 0 }
  0x30   : > { %v359_v44 = vsel %vm351_vm0, %v586_v42, 0 }
  0x31   : > { %369 = vmatpush1.bf16.msra.mxu0 %v644_v31  ;;  %410 = vmatpush1.bf16.msra.mxu1 %v645_v32 }
  0x32   : > { %370 = vmatprep.subr.bf16.mxu0 %v646_v33  ;;  %411 = vmatprep.subr.bf16.mxu1 %v648_v34 }
  0x35   : > { %371 = vmatpush1.bf16.msra.mxu0 %v650_v37  ;;  %412 = vmatpush1.bf16.msra.mxu1 %v651_v38 }
  0x36   : > { %588 = vmatprep.subr.msk.bf16.mxu0 %vm351_vm0, %v585_v39  ;;  %590 = vmatprep.subr.msk.bf16.mxu1 %vm351_vm0, %v587_v40 }
  0x39   : > { %373 = vmatpush1.bf16.msra.mxu0 %v353_v43  ;;  %414 = vmatpush1.bf16.msra.mxu1 %v359_v44 }
  0x3c   : > { %589 = vmatmul.mubr.msk.bf16.vlgmr.msra.gmra.mrb[0].mxu0 %vm347_vm1, %v228_v45  ;;  %591 = vmatmul.mubr.msk.bf16.vlgmr.msra.gmra.mrb[0].mxu1 %vm347_vm1, %v228_v45 }
  0xa4   : > { %v251_v49 = vpop.permute.xlu0 %250 }
  0xa5   : > { %v256_v50 = vrot.slane %v251_v49, %v255_v48 }
 0x10f   : > { %v398_v51 = vpop.f32.mrb[0].mxu0  ;;  %v439_v52 = vpop.f32.mrb[0].mxu1 }
 0x110   : > { %v399_v53 = vadd.f32 %v398_v51, %v256_v50  ;;  %v440_v54 = vadd.f32 %v439_v52, %v256_v50  ;;  %v400_v55 = vpop.f32.mrb[1].mxu0  ;;  %v441_v56 = vpop.f32.mrb[1].mxu1 }
 0x111   : > { %v401_v57 = vadd.f32 %v400_v55, %v256_v50  ;;  %v442_v58 = vadd.f32 %v441_v56, %v256_v50  ;;  %v402_v59 = vpop.f32.mrb[2].mxu0  ;;  %v443_v60 = vpop.f32.mrb[2].mxu1 }
 0x112   : > { %v592_v61 = vmul.f32 -1.442695, %v399_v53  ;;  %v594_v62 = vmul.f32 -1.442695, %v440_v54  ;;  %v403_v63 = vpop.f32.mrb[3].mxu0  ;;  %v444_v0 = vpop.f32.mrb[3].mxu1 }
 0x113   : > { %v593_v1 = vmul.f32 -1.442695, %v401_v57  ;;  %v595_v2 = vmul.f32 -1.442695, %v442_v58 }
 0x114   : > { %656 = vpow2.f32 %v592_v61 }
 0x115   : > { %658 = vpow2.f32 %v594_v62 }
 0x116   : > { %660 = vpow2.f32 %v593_v1 }
 0x117   : > { %662 = vpow2.f32 %v595_v2 }
 0x11e   : > { %v657_v3 = vpop.eup %656 }
 0x11f   : > { %v659_v4 = vpop.eup %658  ;;  %v458_v5 = vadd.f32 1.0, %v657_v3 }
 0x120   : > { %v661_v6 = vpop.eup %660  ;;  %v460_v7 = vadd.f32 1.0, %v659_v4 }
 0x121   : > { %v663_v8 = vpop.eup %662  ;;  %664 = vrcp.f32 %v458_v5  ;;  %v459_v9 = vadd.f32 1.0, %v661_v6 }
 0x122   : > { %666 = vrcp.f32 %v460_v7  ;;  %v461_v10 = vadd.f32 1.0, %v663_v8 }
 0x123   : > { %668 = vrcp.f32 %v459_v9 }
 0x124   : > { %670 = vrcp.f32 %v461_v10 }
 0x12b   : > { %v665_v14 = vpop.eup %664 }
 0x12c   : > { %v667_v15 = vpop.eup %666 }
 0x12d   : > { %v669_v17 = vpop.eup %668 }
 0x12e   : > { %v671_v18 = vpop.eup %670  ;;  %v474_v19 = vcombine.low %v665_v14, %v669_v17 }
 0x12f   : > { %v475_v20 = vcombine.low %v667_v15, %v671_v18 }
 0x130   : > { %v482_v21 = vrot.slane %v474_v19, %v481_v16 }
 0x131   : > { %v489_v22 = vrot.slane %v475_v20, %v481_v16 }
 0x133   : > { %v490_v23 = vcombine.low %v482_v21, %v489_v22 }
 0x135   : > { %v497_v24 = vrot.slane %v490_v23, %v481_v16 }
 0x137   : > { %503 = vst.msk [vmem:[%s225_s9] sm:$0xf] %vm501_vm2, %v497_v24 }
 0x138 PF: > { %p12_p9 = scmp.ge.s32.totalorder %s738_s17, 5   ;;  %s800_s14 = smov %s690_s15 }
 0x139   : > { %s801_s15 = smov %s747_s20  ;;  %s802_s16 = smov %s738_s17 }
 0x13a   :  { %14 = sbr.rel (!%p12_p9) target bundleno = 5 (0x5), region = 90 }

</bundles_post_ra>
